<compile_context>
chip_gen: v7x
topology: tpu7x:2x2x1
jax: 0.10.0
libtpu: 0.0.40
codegen_flags: <defaults>
</compile_context>

<pallas_src>
import math

import jax
import jax.numpy as jnp
from jax import lax
from jax.experimental import pallas as pl
from jax.experimental.pallas import tpu as pltpu


# ----------------------------- in-kernel math helpers ----------------------------- #

def _erf_poly(x):
  """Abramowitz–Stegun 7.1.26 erf approximation, |error| <= ~1.5e-7 (f32)."""
  a1, a2, a3, a4, a5 = (0.254829592, -0.284496736, 1.421413741,
                        -1.453152027, 1.061405429)
  p = 0.3275911
  sign = jnp.where(x >= 0.0, 1.0, -1.0)
  ax = jnp.abs(x)
  # EUP approximate reciprocal: separate bundle slot, frees VALU; its ~1e-4
  # relative error is far below the bf16-operand matmul noise floor.
  t = pl.reciprocal(1.0 + p * ax, approx=True)
  poly = ((((a5 * t + a4) * t + a3) * t + a2) * t + a1) * t
  return sign * (1.0 - poly * jnp.exp(-ax * ax))


def _gelu_exact(x):
  return 0.5 * x * (1.0 + _erf_poly(x * (1.0 / math.sqrt(2.0))))


# --------------------------------- Pallas kernels --------------------------------- #

def _ff_kernel(x_ref, w1_ref, b1_ref, w2_ref, b2_ref, o_ref, acc_ref):
  """glu=False path: gelu(x @ W1 + b1) @ W2 + b2, accumulated over inner tiles."""
  k = pl.program_id(1)

  @pl.when(k == 0)
  def _():
    acc_ref[...] = jnp.zeros_like(acc_ref)

  # Linear #1 (this inner-tile slab), bf16 MXU operands, f32 accumulation.
  h = jnp.dot(x_ref[...], w1_ref[...], preferred_element_type=jnp.float32)
  h = h + b1_ref[...].astype(jnp.float32)

  # Exact (erf) GELU in f32.  Dropout(p=0.0) is an identity (eval mode).
  h = _gelu_exact(h)

  # Linear #2 partial product, accumulated over the inner (hidden) axis.
  acc_ref[...] += jnp.dot(h.astype(jnp.bfloat16), w2_ref[...],
                          preferred_element_type=jnp.float32)

  @pl.when(k == pl.num_programs(1) - 1)
  def _():
    o_ref[...] = (acc_ref[...] + b2_ref[...].astype(jnp.float32)).astype(o_ref.dtype)


def _ff_geglu_kernel(x_ref, w1v_ref, b1v_ref, w1g_ref, b1g_ref, w2_ref, b2_ref,
                     o_ref, acc_ref):
  """glu=True (GEGLU) path: (v * gelu(g)) @ W2 + b2 with [v, g] = x @ W1 + b1."""
  k = pl.program_id(1)

  @pl.when(k == 0)
  def _():
    acc_ref[...] = jnp.zeros_like(acc_ref)

  x_bf = x_ref[...]
  v = jnp.dot(x_bf, w1v_ref[...], preferred_element_type=jnp.float32)
  v = v + b1v_ref[...].astype(jnp.float32)
  g = jnp.dot(x_bf, w1g_ref[...], preferred_element_type=jnp.float32)
  g = g + b1g_ref[...].astype(jnp.float32)

  h = v * _gelu_exact(g)

  acc_ref[...] += jnp.dot(h.astype(jnp.bfloat16), w2_ref[...],
                          preferred_element_type=jnp.float32)

  @pl.when(k == pl.num_programs(1) - 1)
  def _():
    o_ref[...] = (acc_ref[...] + b2_ref[...].astype(jnp.float32)).astype(o_ref.dtype)


# ----------------------------------- wrapper -------------------------------------- #

def _pick_inner_tile(inner, requested=None):
  if requested is not None and inner % requested == 0 and requested % 128 == 0:
    return requested
  for cand in (512, 256, 128):
    if inner % cand == 0:
      return cand
  return inner  # fall back to a single full-inner slab (still a legal full-dim block)


def feed_forward(x, params, *, glu=False, block_rows=128, block_inner=None):
  """Fused FeedForward forward pass.

  x: (..., dim) float array.
  glu=False: params = (w1 (dim, inner), b1 (inner,), w2 (inner, dim_out), b2 (dim_out,))
  glu=True : params = (w1 (dim, 2*inner), b1 (2*inner,), w2 (inner, dim_out), b2 (dim_out,))
  Weight layout is the transpose of PyTorch nn.Linear.weight.
  """
  w1, b1, w2, b2 = params
  dim = x.shape[-1]
  inner = w2.shape[0]
  dim_out = w2.shape[1]
  proj_cols = 2 * inner if glu else inner
  assert w1.shape == (dim, proj_cols) and b1.shape == (proj_cols,)
  assert b2.shape == (dim_out,)

  lead = x.shape[:-1]
  n = int(math.prod(lead)) if lead else 1
  xf = x.reshape(n, dim)

  # Row tiling (pad rows to a tile multiple; padded rows are sliced off afterwards).
  tm = block_rows
  n_pad = pl.cdiv(n, tm) * tm
  if n_pad != n:
    xf = jnp.pad(xf, ((0, n_pad - n), (0, 0)))
  # bf16 activations: halves the X DMA traffic and is the MXU operand dtype anyway.
  xf = xf.astype(jnp.bfloat16)

  ti = _pick_inner_tile(inner, block_inner)
  grid = (n_pad // tm, inner // ti)

  w2_bf = w2.astype(jnp.bfloat16)
  b2_2d = b2.reshape(1, dim_out)

  out_shape = jax.ShapeDtypeStruct((n_pad, dim_out), x.dtype)
  out_spec = pl.BlockSpec((tm, dim_out), lambda r, k: (r, 0))
  scratch = [pltpu.VMEM((tm, dim_out), jnp.float32)]
  cparams = pltpu.CompilerParams(dimension_semantics=("parallel", "arbitrary"))

  if not glu:
    w1_bf = w1.astype(jnp.bfloat16)
    b1_2d = b1.reshape(1, inner)
    out = pl.pallas_call(
        _ff_kernel,
        out_shape=out_shape,
        grid_spec=pltpu.PrefetchScalarGridSpec(
            num_scalar_prefetch=0,
            grid=grid,
            in_specs=[
                pl.BlockSpec((tm, dim), lambda r, k: (r, 0)),        # x row tile
                pl.BlockSpec((dim, ti), lambda r, k: (0, k)),        # W1 inner slab
                pl.BlockSpec((1, ti), lambda r, k: (0, k)),          # b1 inner slab
                pl.BlockSpec((ti, dim_out), lambda r, k: (k, 0)),    # W2 inner slab
                pl.BlockSpec((1, dim_out), lambda r, k: (0, 0)),     # b2
            ],
            out_specs=out_spec,
            scratch_shapes=scratch,
        ),
        compiler_params=cparams,
    )(xf, w1_bf, b1_2d, w2_bf, b2_2d)
  else:
    # PyTorch GEGLU: proj(x).chunk(2, -1) -> (value, gate); value cols first.
    w1v_bf = w1[:, :inner].astype(jnp.bfloat16)
    w1g_bf = w1[:, inner:].astype(jnp.bfloat16)
    b1v_2d = b1[:inner].reshape(1, inner)
    b1g_2d = b1[inner:].reshape(1, inner)
    out = pl.pallas_call(
        _ff_geglu_kernel,
        out_shape=out_shape,
        grid_spec=pltpu.PrefetchScalarGridSpec(
            num_scalar_prefetch=0,
            grid=grid,
            in_specs=[
                pl.BlockSpec((tm, dim), lambda r, k: (r, 0)),        # x row tile
                pl.BlockSpec((dim, ti), lambda r, k: (0, k)),        # W1 value slab
                pl.BlockSpec((1, ti), lambda r, k: (0, k)),          # b1 value slab
                pl.BlockSpec((dim, ti), lambda r, k: (0, k)),        # W1 gate slab
                pl.BlockSpec((1, ti), lambda r, k: (0, k)),          # b1 gate slab
                pl.BlockSpec((ti, dim_out), lambda r, k: (k, 0)),    # W2 inner slab
                pl.BlockSpec((1, dim_out), lambda r, k: (0, 0)),     # b2
            ],
            out_specs=out_spec,
            scratch_shapes=scratch,
        ),
        compiler_params=cparams,
    )(xf, w1v_bf, b1v_2d, w1g_bf, b1g_2d, w2_bf, b2_2d)

  out = out[:n]
  return out.reshape(*lead, dim_out)


# ------------------------------- init & reference --------------------------------- #

def init_params(key, dim, inner, dim_out, glu=False):
  """PyTorch nn.Linear default init (uniform(-1/sqrt(fan_in), 1/sqrt(fan_in)))."""
  k1, k2, k3, k4 = jax.random.split(key, 4)
  proj_cols = 2 * inner if glu else inner
  bound1 = 1.0 / math.sqrt(dim)
  bound2 = 1.0 / math.sqrt(inner)
  w1 = jax.random.uniform(k1, (dim, proj_cols), jnp.float32, -bound1, bound1)
  b1 = jax.random.uniform(k2, (proj_cols,), jnp.float32, -bound1, bound1)
  w2 = jax.random.uniform(k3, (inner, dim_out), jnp.float32, -bound2, bound2)
  b2 = jax.random.uniform(k4, (dim_out,), jnp.float32, -bound2, bound2)
  return w1, b1, w2, b2


def _gelu_ref(x):
  return 0.5 * x * (1.0 + lax.erf(x * (1.0 / math.sqrt(2.0))))


def ref_forward(x, params, glu=False):
  """Pure-JAX f32 reference of the PyTorch forward (eval mode, exact GELU)."""
  w1, b1, w2, b2 = params
  h = jnp.dot(x, w1, precision=lax.Precision.HIGHEST) + b1
  if glu:
    inner = w2.shape[0]
    v, g = h[..., :inner], h[..., inner:]
    h = v * _gelu_ref(g)
  else:
    h = _gelu_ref(h)
  return jnp.dot(h, w2, precision=lax.Precision.HIGHEST) + b2


# ------------------------------------- main ---------------------------------------- #

if __name__ == "__main__":
  key = jax.random.PRNGKey(0)
  kx, kp1, kp2 = jax.random.split(key, 3)

  # Small shapes consistent with FeedForward inside a transformer block of the UNet:
  # tokens (B, S, dim), mult=4 -> inner = 4*dim.  dim is 128-aligned (lane dense).
  B, S, dim, mult = 2, 128, 128, 4
  inner = dim * mult
  x = jax.random.normal(kx, (B, S, dim), jnp.float32)

  # ---- default path (glu=False), as constructed by FeedForward(dim) ----
  params = init_params(kp1, dim, inner, dim, glu=False)
  out = jax.block_until_ready(feed_forward(x, params, glu=False))
  ref = ref_forward(x, params, glu=False)
  assert out.shape == ref.shape == (B, S, dim)
  assert out.dtype == x.dtype
  assert bool(jnp.isfinite(out).all())
  # bf16 MXU operands + f32 accumulation vs. full-f32 reference.
  assert jnp.allclose(out, ref, atol=5e-2, rtol=5e-2)

  # ---- GEGLU path (glu=True) ----
  params_g = init_params(kp2, dim, inner, dim, glu=True)
  out_g = jax.block_until_ready(feed_forward(x, params_g, glu=True))
  ref_g = ref_forward(x, params_g, glu=True)
  assert out_g.shape == ref_g.shape == (B, S, dim)
  assert bool(jnp.isfinite(out_g).all())
  assert jnp.allclose(out_g, ref_g, atol=5e-2, rtol=5e-2)

  print("KERNEL_OK")
</pallas_src>

<mosaic_0001>
module attributes {stable_mosaic.version = 11 : i64} {
  func.func @_ff_kernel(%arg0: i32, %arg1: i32, %arg2: memref<128x128xbf16, #tpu.memory_space<vmem>>, %arg3: memref<128x512xbf16, #tpu.memory_space<vmem>>, %arg4: memref<1x512xf32, #tpu.memory_space<vmem>>, %arg5: memref<512x128xbf16, #tpu.memory_space<vmem>>, %arg6: memref<1x128xf32, #tpu.memory_space<vmem>>, %arg7: memref<128x128xf32, #tpu.memory_space<vmem>>, %arg8: memref<128x128xf32, #tpu.memory_space<vmem>>) attributes {dimension_semantics = [#tpu.dimension_semantics<parallel>, #tpu.dimension_semantics<arbitrary>], iteration_bounds = array<i64: 2, 1>, scalar_prefetch = 0 : i64, scratch_operands = 1 : i64, tpu.core_type = #tpu.core_type<tc>, window_params = [{transform_indices = @transform_0, window_bounds = array<i64: 128, 128>}, {transform_indices = @transform_1, window_bounds = array<i64: 128, 512>}, {transform_indices = @transform_2, window_bounds = array<i64: 1, 512>}, {transform_indices = @transform_3, window_bounds = array<i64: 512, 128>}, {pipeline_mode = #tpu.pipeline_mode<synchronous>, transform_indices = @transform_4, window_bounds = array<i64: 1, 128>}, {transform_indices = @transform_5, window_bounds = array<i64: 128, 128>}]} {
    %c0_i32 = arith.constant 0 : i32
    %0 = arith.cmpi eq, %arg1, %c0_i32 : i32
    %1 = arith.extui %0 : i1 to i32
    %c0_i32_0 = arith.constant 0 : i32
    %2 = arith.cmpi ne, %1, %c0_i32_0 : i32
    scf.if %2 {
      %cst_30 = arith.constant 0.000000e+00 : f32
      %58 = vector.broadcast %cst_30 : f32 to vector<128x128xf32>
      %c0_31 = arith.constant 0 : index
      %c0_32 = arith.constant 0 : index
      %59 = vector.load %arg8[%c0_31, %c0_32] : memref<128x128xf32, #tpu.memory_space<vmem>>, vector<128x128xf32>
      tpu.vector_store %arg8[%c0_31, %c0_32], %58 {strides = array<i32>} : memref<128x128xf32, #tpu.memory_space<vmem>>, vector<128x128xf32>,
    } else {
    }
    %c0 = arith.constant 0 : index
    %c0_1 = arith.constant 0 : index
    %3 = vector.load %arg2[%c0, %c0_1] : memref<128x128xbf16, #tpu.memory_space<vmem>>, vector<128x128xbf16>
    %c0_2 = arith.constant 0 : index
    %c0_3 = arith.constant 0 : index
    %4 = vector.load %arg3[%c0_2, %c0_3] : memref<128x512xbf16, #tpu.memory_space<vmem>>, vector<128x512xbf16>
    %cst = arith.constant dense<0.000000e+00> : vector<128x512xf32>
    %5 = tpu.matmul %3, %4, %cst {dimension_numbers = #tpu.dot_dimension_numbers<[1], [0], [0], [1], [0, 0, 1, 1], [], []>} : vector<128x128xbf16>, vector<128x512xbf16>, vector<128x512xf32> -> vector<128x512xf32>
    %c0_4 = arith.constant 0 : index
    %c0_5 = arith.constant 0 : index
    %6 = vector.load %arg4[%c0_4, %c0_5] : memref<1x512xf32, #tpu.memory_space<vmem>>, vector<1x512xf32>
    %7 = vector.broadcast %6 : vector<1x512xf32> to vector<128x512xf32>
    %8 = arith.addf %5, %7 : vector<128x512xf32>
    %cst_6 = arith.constant 5.000000e-01 : f32
    %9 = vector.broadcast %cst_6 : f32 to vector<128x512xf32>
    %10 = arith.mulf %9, %8 : vector<128x512xf32>
    %cst_7 = arith.constant 0.707106769 : f32
    %11 = vector.broadcast %cst_7 : f32 to vector<128x512xf32>
    %12 = arith.mulf %8, %11 : vector<128x512xf32>
    %cst_8 = arith.constant 0.000000e+00 : f32
    %13 = vector.broadcast %cst_8 : f32 to vector<128x512xf32>
    %14 = arith.cmpf oge, %12, %13 : vector<128x512xf32>
    %cst_9 = arith.constant 1.000000e+00 : f32
    %cst_10 = arith.constant -1.000000e+00 : f32
    %15 = vector.broadcast %cst_9 : f32 to vector<128x512xf32>
    %16 = vector.broadcast %cst_10 : f32 to vector<128x512xf32>
    %17 = arith.select %14, %15, %16 : vector<128x512xi1>, vector<128x512xf32>
    %18 = math.absf %12 : vector<128x512xf32>
    %cst_11 = arith.constant 0.327591091 : f32
    %19 = vector.broadcast %cst_11 : f32 to vector<128x512xf32>
    %20 = arith.mulf %19, %18 : vector<128x512xf32>
    %cst_12 = arith.constant 1.000000e+00 : f32
    %21 = vector.broadcast %cst_12 : f32 to vector<128x512xf32>
    %22 = arith.addf %21, %20 : vector<128x512xf32>
    %23 = tpu.reciprocal %22 {approx = true} : vector<128x512xf32> -> vector<128x512xf32>
    %cst_13 = arith.constant 1.06140542 : f32
    %24 = vector.broadcast %cst_13 : f32 to vector<128x512xf32>
    %25 = arith.mulf %24, %23 : vector<128x512xf32>
    %cst_14 = arith.constant -1.45315206 : f32
    %26 = vector.broadcast %cst_14 : f32 to vector<128x512xf32>
    %27 = arith.addf %25, %26 : vector<128x512xf32>
    %28 = arith.mulf %27, %23 : vector<128x512xf32>
    %cst_15 = arith.constant 1.42141378 : f32
    %29 = vector.broadcast %cst_15 : f32 to vector<128x512xf32>
    %30 = arith.addf %28, %29 : vector<128x512xf32>
    %31 = arith.mulf %30, %23 : vector<128x512xf32>
    %cst_16 = arith.constant -0.284496725 : f32
    %32 = vector.broadcast %cst_16 : f32 to vector<128x512xf32>
    %33 = arith.addf %31, %32 : vector<128x512xf32>
    %34 = arith.mulf %33, %23 : vector<128x512xf32>
    %cst_17 = arith.constant 0.254829586 : f32
    %35 = vector.broadcast %cst_17 : f32 to vector<128x512xf32>
    %36 = arith.addf %34, %35 : vector<128x512xf32>
    %37 = arith.mulf %36, %23 : vector<128x512xf32>
    %cst_18 = arith.constant 0.000000e+00 : f32
    %38 = vector.broadcast %cst_18 : f32 to vector<128x512xf32>
    %39 = arith.subf %38, %18 : vector<128x512xf32>
    %40 = arith.mulf %39, %18 : vector<128x512xf32>
    %41 = math.exp %40 : vector<128x512xf32>
    %42 = arith.mulf %37, %41 : vector<128x512xf32>
    %cst_19 = arith.constant 1.000000e+00 : f32
    %43 = vector.broadcast %cst_19 : f32 to vector<128x512xf32>
    %44 = arith.subf %43, %42 : vector<128x512xf32>
    %45 = arith.mulf %17, %44 : vector<128x512xf32>
    %cst_20 = arith.constant 1.000000e+00 : f32
    %46 = vector.broadcast %cst_20 : f32 to vector<128x512xf32>
    %47 = arith.addf %46, %45 : vector<128x512xf32>
    %48 = arith.mulf %10, %47 : vector<128x512xf32>
    %c0_21 = arith.constant 0 : index
    %c0_22 = arith.constant 0 : index
    %49 = vector.load %arg8[%c0_21, %c0_22] : memref<128x128xf32, #tpu.memory_space<vmem>>, vector<128x128xf32>
    %50 = arith.truncf %48 : vector<128x512xf32> to vector<128x512xbf16>
    %c0_23 = arith.constant 0 : index
    %c0_24 = arith.constant 0 : index
    %51 = vector.load %arg5[%c0_23, %c0_24] : memref<512x128xbf16, #tpu.memory_space<vmem>>, vector<512x128xbf16>
    %cst_25 = arith.constant dense<0.000000e+00> : vector<128x128xf32>
    %52 = tpu.matmul %50, %51, %cst_25 {dimension_numbers = #tpu.dot_dimension_numbers<[1], [0], [0], [1], [0, 0, 1, 1], [], []>} : vector<128x512xbf16>, vector<512x128xbf16>, vector<128x128xf32> -> vector<128x128xf32>
    %53 = arith.addf %49, %52 : vector<128x128xf32>
    %c0_26 = arith.constant 0 : index
    %c0_27 = arith.constant 0 : index
    %54 = vector.load %arg8[%c0_26, %c0_27] : memref<128x128xf32, #tpu.memory_space<vmem>>, vector<128x128xf32>
    tpu.vector_store %arg8[%c0_26, %c0_27], %53 {strides = array<i32>} : memref<128x128xf32, #tpu.memory_space<vmem>>, vector<128x128xf32>,
    %c0_i32_28 = arith.constant 0 : i32
    %55 = arith.cmpi eq, %arg1, %c0_i32_28 : i32
    %56 = arith.extui %55 : i1 to i32
    %c0_i32_29 = arith.constant 0 : i32
    %57 = arith.cmpi ne, %56, %c0_i32_29 : i32
    scf.if %57 {
      %c0_30 = arith.constant 0 : index
      %c0_31 = arith.constant 0 : index
      %58 = vector.load %arg8[%c0_30, %c0_31] : memref<128x128xf32, #tpu.memory_space<vmem>>, vector<128x128xf32>
      %c0_32 = arith.constant 0 : index
      %c0_33 = arith.constant 0 : index
      %59 = vector.load %arg6[%c0_32, %c0_33] : memref<1x128xf32, #tpu.memory_space<vmem>>, vector<1x128xf32>
      %60 = vector.broadcast %59 : vector<1x128xf32> to vector<128x128xf32>
      %61 = arith.addf %58, %60 : vector<128x128xf32>
      %c0_34 = arith.constant 0 : index
      %c0_35 = arith.constant 0 : index
      %62 = vector.load %arg7[%c0_34, %c0_35] : memref<128x128xf32, #tpu.memory_space<vmem>>, vector<128x128xf32>
      tpu.vector_store %arg7[%c0_34, %c0_35], %61 {strides = array<i32>} : memref<128x128xf32, #tpu.memory_space<vmem>>, vector<128x128xf32>,
    } else {
    }
    return
  }
  func.func @transform_0(%arg0: i32, %arg1: i32) -> (i32, i32) {
    %c0_i32 = arith.constant 0 : i32
    %c0_i32_0 = arith.constant 0 : i32
    return %arg0, %c0_i32 : i32, i32
  }
  func.func @transform_1(%arg0: i32, %arg1: i32) -> (i32, i32) {
    %c0_i32 = arith.constant 0 : i32
    %c0_i32_0 = arith.constant 0 : i32
    return %c0_i32, %arg1 : i32, i32
  }
  func.func @transform_2(%arg0: i32, %arg1: i32) -> (i32, i32) {
    %c0_i32 = arith.constant 0 : i32
    %c0_i32_0 = arith.constant 0 : i32
    return %c0_i32, %arg1 : i32, i32
  }
  func.func @transform_3(%arg0: i32, %arg1: i32) -> (i32, i32) {
    %c0_i32 = arith.constant 0 : i32
    %c0_i32_0 = arith.constant 0 : i32
    return %arg1, %c0_i32 : i32, i32
  }
  func.func @transform_4(%arg0: i32, %arg1: i32) -> (i32, i32) {
    %c0_i32 = arith.constant 0 : i32
    %c0_i32_0 = arith.constant 0 : i32
    %c0_i32_1 = arith.constant 0 : i32
    return %c0_i32, %c0_i32_0 : i32, i32
  }
  func.func @transform_5(%arg0: i32, %arg1: i32) -> (i32, i32) {
    %c0_i32 = arith.constant 0 : i32
    %c0_i32_0 = arith.constant 0 : i32
    return %arg0, %c0_i32 : i32, i32
  }
}

</mosaic_0001>

<bundles_post_ra>
// kernel: tpu_custom_call.1
= control target key start
LH: loop header
LB: loop body
LE: loop exit
PB: predicated region body
PF: predicated region fallthrough
CT: control target
= control target key end

     0   :  { %10 = vsyncpa [#allocation4], 0  ;;  %s6636_s0 = inlined_call_operand.hbm [shape: bf16[256,128], index: 0, kind: input, shape index: {}]   ;;  %s6637_s1 = inlined_call_operand.hbm [shape: bf16[128,512], index: 1, kind: input, shape index: {}]   ;;  %s6638_s2 = inlined_call_operand.vmem [shape: f32[1,512], index: 2, kind: input, shape index: {}]   ;;  %s6639_s3 = inlined_call_operand.hbm [shape: bf16[512,128], index: 3, kind: input, shape index: {}]   ;;  %s6640_s4 = inlined_call_operand.vmem [shape: f32[1,128], index: 4, kind: input, shape index: {}]   ;;  %s6641_s5 = inlined_call_operand.hbm [shape: f32[256,128], index: 5, kind: output, shape index: {}]  }
   0x1   :  { %12 = vsyncpa [#allocation4 + $0x1], 0 }
   0x2   :  { %13 = vsyncpa [#allocation7], 0 }
   0x3   :  { %14 = vsyncpa [#allocation5], 0 }
   0x4   :  { %16 = vsyncpa [#allocation5 + $0x1], 0  ;;  %s4104_s18 = smov 0   ;;  %s4106_s19 = smov 0  }
   0x5   :  { %s4108_s20 = smov 0   ;;  %s4110_s21 = smov 0  }
   0x6   :  { %s4112_s22 = smov 0   ;;  %s4114_s23 = smov 0  }
   0x7 LB: > { %s3230_s24 = sadd.s32 4294967295, %s4060_s23   ;;  %s3231_s25 = sadd.s32 4294967294, %s4060_s23   ;;  %s4060_s23 = sphi %s4114_s23, %s22_s23   ;;  %s4056_s22 = sphi %s4112_s22, %s6850_s22   ;;  %s4052_s21 = sphi %s4110_s21, %s6849_s21   ;;  %s4048_s20 = sphi %s4108_s20, %s6848_s20   ;;  %s4044_s19 = sphi %s4106_s19, %s6847_s19   ;;  %s4040_s18 = sphi %s4104_s18, %s6846_s18  }
   0x8   : > { %p54_p0 = scmp.ne.s32.totalorder %s4044_s19, %s4040_s18  ;;  %p4138_p1 = scmp.eq.s32.totalorder %s3230_s24, 0 }
   0x9   : > { %p4142_p2 = scmp.eq.s32.totalorder %s3230_s24, 1  ;;  %p183_p3 = scmp.eq.s32.totalorder %s3231_s25, 1 }
   0xa   : > { %s6664_s26 = scalar_select %p4138_p1, 1, 0 }
   0xb   : > { %p4148_p4 = por %p4138_p1, %p54_p0  ;;  %p3232_p5 = scmp.ge.s32.totalorder %s4060_s23, 1 }
   0xc   : > { %p4153_p6 = por %p183_p3, %p54_p0  ;;  %p190_p7 = scmp.lt.s32.totalorder %s4060_s23, 3 }
   0xd   : > { %s6666_s28 = scalar_select %p4148_p4, 1, 0 }
   0xe   : > { %s6667_s29 = scalar_select %p4153_p6, 1, 0 }
   0xf   : > { %p4158_p8 = pnand %p3232_p5, %p190_p7  ;;  %s4062_s6 = smov [#allocation6]  }
  0x10   : > { %s205_s7 = sshll.u32 %s4062_s6, 4  ;;  %s4063_s9 = smov [#allocation8]   ;;  %s4162_s7 = int_to_ptr.vmem [resolvable:$true] %s205_s7 }
  0x11   : > { %p3465_p9 = pneg %p4158_p8  ;;  %s229_s10 = sshll.u32 %s4063_s9, 4  ;;  %s4173_s10 = int_to_ptr.vmem [resolvable:$true] %s229_s10 }
  0x12   : > { %s3888_s13 = scalar_lea.hbm %s6637_s1, 4096 }
  0x13   : > { %p4169_p11 = pnand %p3465_p9, %p4138_p1  ;;  %p3889_p12 = scmp.ne.s32.totalorder %s6637_s1, %s3888_s13 }
  0x14   : > { %p3895_p5 = scmp.lt.u32.totalorder %s3888_s13, %s6637_s1 }
  0x15   : > { %p3890_p13 = pneg %p4169_p11 }
  0x17   : > { %p3891_p0 = pnand %p3890_p13, %p3889_p12 }
  0x19   : > { %p3892_p3 = pneg %p3891_p0 }
  0x1b   : > { %p3897_p7 = pnand %p3895_p5, %p3892_p3 }
  0x1d   : > { %3900 = shalt.err (!%p3897_p7)
}
  0x1e   : > { %s3901_s24 = scalar_lea.vmem %s4162_s7, 4096  ;;  %p3909_p1 = scmp.lt.s32.totalorder %s4162_s7, %s4162_s7 }
  0x1f   : > { %p3902_p9 = scmp.ne.s32.totalorder %s4162_s7, %s3901_s24  ;;  %p3910_p12 = scmp.lt.s32.totalorder %s3901_s24, %s3901_s24 }
  0x21   : > { %p3904_p10 = pnand %p3902_p9, %p3890_p13  ;;  %p3911_p0 = por %p3910_p12, %p3909_p1 }
  0x23   : > { %p3905_p6 = pneg %p3904_p10 }
  0x25   : > { %p3912_p4 = pnand %p3911_p0, %p3905_p6 }
  0x27   : > { %3915 = shalt.err (!%p3912_p4)
}
  0x28   : > { %s4064_s25 = smov 256   ;;  %s4065_s6 = smov 16  }
  0x29   : > { %3468 = dma.hbm_to_vmem [thread:$0]  (!%p4169_p11), %s6637_s1, 4096, %s4162_s7, [#allocation7], %s4064_s25, %s4064_s25, %s4065_s6  }
  0x2a   : > { %s3916_s14 = scalar_lea.hbm %s6639_s3, 4096 }
  0x2b   : > { %p3917_p1 = scmp.ne.s32.totalorder %s6639_s3, %s3916_s14  ;;  %p3923_p10 = scmp.lt.u32.totalorder %s3916_s14, %s6639_s3 }
  0x2d   : > { %p3919_p4 = pnand %p3917_p1, %p3890_p13 }
  0x2f   : > { %p3920_p6 = pneg %p3919_p4 }
  0x31   : > { %p3925_p3 = pnand %p3923_p10, %p3920_p6 }
  0x33   : > { %3928 = shalt.err (!%p3925_p3)
}
  0x34   : > { %s3929_s7 = scalar_lea.vmem %s4173_s10, 4096  ;;  %p3937_p12 = scmp.lt.s32.totalorder %s4173_s10, %s4173_s10 }
  0x35   : > { %p3930_p5 = scmp.ne.s32.totalorder %s4173_s10, %s3929_s7  ;;  %p3938_p0 = scmp.lt.s32.totalorder %s3929_s7, %s3929_s7 }
  0x37   : > { %p3932_p7 = pnand %p3930_p5, %p3890_p13  ;;  %p3939_p1 = por %p3938_p0, %p3937_p12 }
  0x39   : > { %p3933_p9 = pneg %p3932_p7 }
  0x3b   : > { %p3940_p4 = pnand %p3939_p1, %p3933_p9 }
  0x3d   : > { %3943 = shalt.err (!%p3940_p4)
}
  0x3e   : > { %s6645_s25 = smov 64   ;;  %s4067_s6 = smov 4  }
  0x3f   : > { %3471 = dma.hbm_to_vmem [thread:$0]  (!%p4169_p11), %s6639_s3, 4096, %s4173_s10, [#allocation7], %s6645_s25, %s6645_s25, %s4067_s6  }
  0x40   : > { %s34_s12 = sadd.s32 1, %s4056_s22  ;;  %s41_s13 = sadd.s32 1, %s4048_s20 }
  0x41   : > { %p36_p13 = scmp.ge.s32.totalorder %s34_s12, 2  ;;  %p48_p6 = scmp.ne.s32.totalorder %s4048_s20, %s4044_s19 }
  0x42   : > { %p49_p10 = scmp.eq.s32.totalorder %s4060_s23, 0  ;;  %p3482_p3 = scmp.lt.s32.totalorder %s4060_s23, 2 }
  0x43   : > { %s6852_s12 = smov (%p36_p13, %s34_s12), 0  ;;  %p4240_p7 = por %p4142_p2, %p48_p6 }
  0x44   : > { %p50_p5 = por %p49_p10, %p48_p6  ;;  %s38_s14 = ssub.s32 %s4056_s22, %s6852_s12 }
  0x45   : > { %s6670_s8 = scalar_select %p4240_p7, 1, 0 }
  0x46   : > { %s246_s15 = sand.u32 1, %s4048_s20   ;;  %p39_p9 = scmp.eq.s32.totalorder %s38_s14, 0 }
  0x47   : > { %s3237_s10 = sshll.u32 %s246_s15, 6  ;;  %s3323_s16 = sshll.u32 %s4056_s22, 10 }
  0x48   : > { %s4249_s17 = scalar_select %p39_p9, %s4048_s20, %s41_s13  }
  0x49   : > { %s4254_s9 = scalar_lea.hbm %s6636_s0, %s3323_s16  ;;  %s250_s27 = scalar_lea.vmem [#allocation3], %s3237_s10 }
  0x4a   : > { %s257_s11 = sshll.u32 %s250_s27, 4  ;;  %p4258_p2 = pnand %p3482_p3, %p50_p5  ;;  %s4262_s11 = int_to_ptr.vmem [resolvable:$true] %s257_s11 }
  0x4b   : > { %s4264_s13 = scalar_lea.sflag [#allocation4], %s246_s15  ;;  %s3944_s14 = scalar_lea.hbm %s4254_s9, 1024 }
  0x4c   : > { %p3945_p11 = scmp.ne.s32.totalorder %s4254_s9, %s3944_s14  ;;  %p3946_p12 = pneg %p4258_p2 }
  0x4d   : > { %s3949_s24 = scalar_lea.hbm %s6636_s0, 2048  ;;  %p3950_p4 = scmp.lt.u32.totalorder %s4254_s9, %s6636_s0 }
  0x4e   : > { %p3947_p0 = pnand %p3946_p12, %p3945_p11  ;;  %p3951_p13 = scmp.lt.u32.totalorder %s3949_s24, %s3944_s14 }
  0x4f   : > { %p3953_p10 = scmp.lt.u32.totalorder %s3944_s14, %s4254_s9 }
  0x50   : > { %p3948_p1 = pneg %p3947_p0  ;;  %p3952_p6 = por %p3951_p13, %p3950_p4 }
  0x52   : > { %p3954_p3 = por %p3953_p10, %p3952_p6 }
  0x54   : > { %p3955_p5 = pnand %p3954_p3, %p3948_p1 }
  0x56   : > { %3958 = shalt.err (!%p3955_p5)
}
  0x57   : > { %s3959_s15 = scalar_lea.vmem %s4262_s11, 1024  ;;  %s4068_s10 = smov [#allocation3]  }
  0x58   : > { %p3960_p9 = scmp.ne.s32.totalorder %s4262_s11, %s3959_s15  ;;  %s3964_s16 = sshll.u32 %s4068_s10, 4  ;;  %s3965_s16 = int_to_ptr.vmem [resolvable:$false] %s3964_s16 }
  0x59   : > { %s3966_s7 = scalar_lea.vmem %s3965_s16, 2048  ;;  %p3967_p7 = scmp.lt.s32.totalorder %s4262_s11, %s3965_s16 }
  0x5a   : > { %p3962_p11 = pnand %p3960_p9, %p3946_p12  ;;  %p3968_p4 = scmp.lt.s32.totalorder %s3966_s7, %s3959_s15 }
  0x5c   : > { %p3963_p0 = pneg %p3962_p11  ;;  %p3969_p13 = por %p3968_p4, %p3967_p7 }
  0x5e   : > { %p3970_p6 = pnand %p3969_p13, %p3963_p0 }
  0x60   : > { %3973 = shalt.err (!%p3970_p6)
}
  0x61   : > { %s6672_s14 = smov 64   ;;  %269 = sbr.rel (%p4158_p8) target bundleno = 1058 (0x422), region = 40 }
  0x62   : > { %3475 = dma.hbm_to_vmem [thread:$0]  (!%p4258_p2), %s4254_s9, 1024, %s4262_s11, %s4264_s13, %s6672_s14, %s6672_s14, %s4067_s6  }
  0x68   : > { %s4298_s24 = sand.u32 1, %s4044_s19   ;;  %p6673_p7 = scmp.ne.s32.totalorder %s6666_s28, 0 }
  0x69   : > { %s3241_s27 = sshll.u32 %s4298_s24, 6  ;;  %s272_s15 = scalar_lea.sflag [#allocation4], %s4298_s24 }
  0x6a   : > { %s4302_s10 = scalar_lea.vmem [#allocation3], %s3241_s27 }
  0x6b   : > { %4027 = dma.done.wait (%p6673_p7), %s272_s15, 1024  }
  0x6c   : > { %4029 = vsyncadd (%p6673_p7), %s272_s15, 4294966272  ;;  %p6674_p2 = scmp.ne.s32.totalorder %s6664_s26, 0 }
  0x6e   : > { %4031 = dma.done.wait (%p6674_p2), [#allocation7], 8192  }
  0x6f   : > { %4033 = vsyncadd (%p6674_p2), [#allocation7], 4294959104  ;;  %v4069_v0 = vmov 0   ;;  %v3544_v1 = vld [vmem:[#allocation6 + $0x4] ss:$16 sps:$4 sm:$0xff]   ;;  %v3604_v38 = vld [vmem:[#allocation8 + $0x48] sm:$0xff]   ;;  %v394_v55 = vlaneseq }
  0x70   : > { %654 = vmatprep.mubr.bf16.mxu0 %v4069_v0  ;;  %767 = vmatprep.mubr.bf16.mxu1 %v4069_v0  ;;  %v3546_v2 = vld [vmem:[#allocation6 + $0xc] ss:$16 sps:$4 sm:$0xff]   ;;  %v3548_v3 = vld [vmem:[#allocation6] ss:$16 sps:$4 sm:$0xff]   ;;  %v3549_v4 = vld [vmem:[#allocation6 + $0x8] ss:$16 sps:$4 sm:$0xff]  }
  0x71   : > { %622 = vmatprep.subr.bf16.mxu0 %v3544_v1  ;;  %735 = vmatprep.subr.bf16.mxu1 %v3546_v2  ;;  %v3550_v5 = vld [vmem:[#allocation6 + $0x24] ss:$16 sps:$4 sm:$0xff]   ;;  %v3552_v6 = vld [vmem:[#allocation6 + $0x2c] ss:$16 sps:$4 sm:$0xff]   ;;  %v3554_v7 = vld [vmem:[#allocation6 + $0x20] ss:$16 sps:$4 sm:$0xff]  }
  0x72   : > { %623 = vmatpush1.bf16.msra.mxu0 %v3548_v3  ;;  %736 = vmatpush1.bf16.msra.mxu1 %v3549_v4  ;;  %v3555_v8 = vld [vmem:[#allocation6 + $0x28] ss:$16 sps:$4 sm:$0xff]   ;;  %v3556_v9 = vld [vmem:[#allocation6 + $0x44] ss:$16 sps:$4 sm:$0xff]   ;;  %v3558_v10 = vld [vmem:[#allocation6 + $0x4c] ss:$16 sps:$4 sm:$0xff]  }
  0x73   : > { %624 = vmatprep.subr.bf16.mxu0 %v3550_v5  ;;  %737 = vmatprep.subr.bf16.mxu1 %v3552_v6  ;;  %v3560_v11 = vld [vmem:[#allocation6 + $0x40] ss:$16 sps:$4 sm:$0xff]   ;;  %v3561_v12 = vld [vmem:[#allocation6 + $0x48] ss:$16 sps:$4 sm:$0xff]   ;;  %v3562_v13 = vld [vmem:[#allocation6 + $0x64] ss:$16 sps:$4 sm:$0xff]  }
  0x74   : > { %v3564_v14 = vld [vmem:[#allocation6 + $0x6c] ss:$16 sps:$4 sm:$0xff]   ;;  %v3566_v15 = vld [vmem:[#allocation6 + $0x60] ss:$16 sps:$4 sm:$0xff]   ;;  %v3567_v16 = vld [vmem:[#allocation6 + $0x68] ss:$16 sps:$4 sm:$0xff]  }
  0x75   : > { %v3568_v17 = vld [vmem:[#allocation6 + $0x84] ss:$16 sps:$4 sm:$0xff]   ;;  %v3570_v18 = vld [vmem:[#allocation6 + $0x8c] ss:$16 sps:$4 sm:$0xff]   ;;  %v3572_v19 = vld [vmem:[#allocation6 + $0x80] ss:$16 sps:$4 sm:$0xff]  }
  0x76   : > { %625 = vmatpush1.bf16.msra.mxu0 %v3554_v7  ;;  %738 = vmatpush1.bf16.msra.mxu1 %v3555_v8  ;;  %v3573_v20 = vld [vmem:[#allocation6 + $0x88] ss:$16 sps:$4 sm:$0xff]   ;;  %v3574_v21 = vld [vmem:[#allocation6 + $0xa4] ss:$16 sps:$4 sm:$0xff]   ;;  %v3576_v22 = vld [vmem:[#allocation6 + $0xac] ss:$16 sps:$4 sm:$0xff]  }
  0x77   : > { %626 = vmatprep.subr.bf16.mxu0 %v3556_v9  ;;  %739 = vmatprep.subr.bf16.mxu1 %v3558_v10  ;;  %v3578_v23 = vld [vmem:[#allocation6 + $0xa0] ss:$16 sps:$4 sm:$0xff]   ;;  %v3579_v24 = vld [vmem:[#allocation6 + $0xa8] ss:$16 sps:$4 sm:$0xff]   ;;  %v3580_v25 = vld [vmem:[#allocation6 + $0xc4] ss:$16 sps:$4 sm:$0xff]  }
  0x78   : > { %v3582_v26 = vld [vmem:[#allocation6 + $0xcc] ss:$16 sps:$4 sm:$0xff]   ;;  %v3584_v27 = vld [vmem:[#allocation6 + $0xc0] ss:$16 sps:$4 sm:$0xff]   ;;  %v3585_v28 = vld [vmem:[#allocation6 + $0xc8] ss:$16 sps:$4 sm:$0xff]  }
  0x79   : > { %v3586_v29 = vld [vmem:[#allocation6 + $0xe4] ss:$16 sps:$4 sm:$0xff]   ;;  %v3588_v30 = vld [vmem:[#allocation6 + $0xec] ss:$16 sps:$4 sm:$0xff]   ;;  %v3590_v31 = vld [vmem:[#allocation6 + $0xe0] ss:$16 sps:$4 sm:$0xff]  }
  0x7a   : > { %627 = vmatpush1.bf16.msra.mxu0 %v3560_v11  ;;  %740 = vmatpush1.bf16.msra.mxu1 %v3561_v12  ;;  %v3591_v32 = vld [vmem:[#allocation6 + $0xe8] ss:$16 sps:$4 sm:$0xff]   ;;  %v3592_v33 = vld [vmem:[%s4302_s10] sm:$0xff]   ;;  %v3594_v41 = vld [vmem:[%s4302_s10 + $0x10] sm:$0xff]   ;;  %v395_v56 = vshrl.u32 %v394_v55, 7  ;;  %s3244_s30 = sshll.u32 %s4298_s24, 7 }
  0x7b   : > { %628 = vmatprep.subr.bf16.mxu0 %v3562_v13  ;;  %741 = vmatprep.subr.bf16.mxu1 %v3564_v14  ;;  %v3600_v34 = vld [vmem:[#allocation8 + $0x40] sm:$0xff]   ;;  %v3605_v39 = vld [vmem:[#allocation8 + $0xc8] sm:$0xff]   ;;  %v3595_v42 = vld [vmem:[%s4302_s10 + $0x18] sm:$0xff]   ;;  %s6547_s9 = scalar_lea.vmem [#allocation9], %s3244_s30  ;;  %s3324_s11 = sshll.u32 %s4052_s21, 11 }
  0x7c   : > { %v3601_v35 = vld [vmem:[#allocation8 + $0xc0] sm:$0xff]   ;;  %v3593_v40 = vld [vmem:[%s4302_s10 + $0x8] sm:$0xff]   ;;  %v3598_v45 = vld [vmem:[%s4302_s10 + $0x30] sm:$0xff]   ;;  %v396_v57 = vsub.s32 0, %v395_v56  ;;  %v404_v58 = vsub.s32 2, %v395_v56  ;;  %v400_v60 = vsub.s32 1, %v395_v56  ;;  %s6582_s14 = scalar_lea.hbm %s6641_s5, %s3324_s11 }
  0x7d   : > { %v3602_v36 = vld [vmem:[#allocation8] sm:$0xff]   ;;  %v3597_v44 = vld [vmem:[%s4302_s10 + $0x28] sm:$0xff]   ;;  %v3599_v46 = vld [vmem:[%s4302_s10 + $0x38] sm:$0xff]   ;;  %v408_v61 = vsub.s32 3, %v395_v56  ;;  %s3114_s13 = sshll.u32 %s6547_s9, 4  ;;  %s3101_s27 = scalar_lea.sflag [#allocation5], %s4298_s24  ;;  %s6584_s13 = int_to_ptr.vmem [resolvable:$true] %s3114_s13 }
  0x7e   : > { %629 = vmatpush1.bf16.msra.mxu0 %v3566_v15  ;;  %742 = vmatpush1.bf16.msra.mxu1 %v3567_v16  ;;  %v3603_v37 = vld [vmem:[#allocation8 + $0x80] sm:$0xff]   ;;  %v3606_v47 = vld [vmem:[#allocation8 + $0x8] sm:$0xff]   ;;  %v3608_v49 = vld [vmem:[#allocation8 + $0x50] sm:$0xff]   ;;  %s3974_s21 = scalar_lea.vmem %s6584_s13, 2048  ;;  %p6843_p12 = scmp.ne.s32.totalorder %s6670_s8, 0 }
  0x7f   : > { %630 = vmatprep.subr.bf16.mxu0 %v3568_v17  ;;  %743 = vmatprep.subr.bf16.mxu1 %v3570_v18  ;;  %v3596_v43 = vld [vmem:[%s4302_s10 + $0x20] sm:$0xff]   ;;  %v3607_v48 = vld [vmem:[#allocation8 + $0x88] sm:$0xff]   ;;  %v3609_v50 = vld [vmem:[#allocation8 + $0xd0] sm:$0xff]   ;;  %p3975_p8 = scmp.ne.s32.totalorder %s6584_s13, %s3974_s21  ;;  %s4071_s15 = smov [#allocation9]  }
  0x80   : > { %v3610_v51 = vld [vmem:[#allocation8 + $0x10] sm:$0xff]   ;;  %v3612_v53 = vld [vmem:[#allocation8 + $0x58] sm:$0xff]   ;;  %v392_v59 = vld [vmem:[%s6638_s2] sm:$0xf]  ;;  %s3978_s10 = sshll.u32 %s4071_s15, 4  ;;  %s3979_s10 = int_to_ptr.vmem [resolvable:$false] %s3978_s10 }
  0x81   : > { %v3611_v52 = vld [vmem:[#allocation8 + $0x90] sm:$0xff]   ;;  %v3613_v54 = vld [vmem:[#allocation8 + $0xd8] sm:$0xff]   ;;  %v4341_v1 = vrot.slane %v392_v59, %v404_v58  ;;  %v4343_v2 = vrot.slane %v392_v59, %v400_v60  ;;  %v4345_v3 = vrot.slane %v392_v59, %v408_v61  ;;  %p3976_p1 = pnand %p3975_p8, %p6843_p12  ;;  %s3980_s26 = scalar_lea.vmem %s3979_s10, 4096 }
  0x82   : > { %631 = vmatpush1.bf16.msra.mxu0 %v3572_v19  ;;  %744 = vmatpush1.bf16.msra.mxu1 %v3573_v20  ;;  %v3614_v62 = vld [vmem:[#allocation8 + $0x18] sm:$0xff]   ;;  %p3981_p3 = scmp.lt.s32.totalorder %s6584_s13, %s3979_s10  ;;  %p3982_p5 = scmp.lt.s32.totalorder %s3980_s26, %s3974_s21 }
  0x83   : > { %632 = vmatprep.subr.bf16.mxu0 %v3574_v21  ;;  %745 = vmatprep.subr.bf16.mxu1 %v3576_v22  ;;  %v3615_v63 = vld [vmem:[#allocation8 + $0x98] sm:$0xff]   ;;  %p3977_p10 = pneg %p3976_p1 }
  0x84   : > { %p3983_p9 = por %p3982_p5, %p3981_p3 }
  0x86   : > { %633 = vmatpush1.bf16.msra.mxu0 %v3578_v23  ;;  %746 = vmatpush1.bf16.msra.mxu1 %v3579_v24  ;;  %p3984_p11 = pnand %p3983_p9, %p3977_p10 }
  0x87   : > { %634 = vmatprep.subr.bf16.mxu0 %v3580_v25  ;;  %747 = vmatprep.subr.bf16.mxu1 %v3582_v26 }
  0x8a   : > { %635 = vmatpush1.bf16.msra.mxu0 %v3584_v27  ;;  %748 = vmatpush1.bf16.msra.mxu1 %v3585_v28 }
  0x8b   : > { %636 = vmatprep.subr.bf16.mxu0 %v3586_v29  ;;  %749 = vmatprep.subr.bf16.mxu1 %v3588_v30 }
  0x8e   : > { %637 = vmatpush1.bf16.msra.mxu0 %v3590_v31  ;;  %750 = vmatpush1.bf16.msra.mxu1 %v3591_v32 }
  0x8f   : > { %3325 = vmatprep.subr.bf16.mxu0 %v3600_v34  ;;  %3389 = vmatprep.subr.bf16.mxu1 %v3601_v35 }
  0x91   : > { %655 = vmatmul.mubr.bf16.vlgmr.msra.gmra.mrb[0].mxu0 %v3592_v33  ;;  %768 = vmatmul.mubr.bf16.vlgmr.msra.gmra.mrb[0].mxu1 %v3592_v33 }
  0x92   : > { %664 = vmatprep.mubr.bf16.mxu0 %v4069_v0  ;;  %777 = vmatprep.mubr.bf16.mxu1 %v4069_v0 }
  0x93   : > { %3326 = vmatpush3.bf16.msra.mxu0 %v3602_v36  ;;  %3390 = vmatpush3.bf16.msra.mxu1 %v3603_v37 }
  0x94   : > { %3327 = vmatprep.subr.bf16.mxu0 %v3604_v38  ;;  %3391 = vmatprep.subr.bf16.mxu1 %v3605_v39 }
  0x97   : > { %3328 = vmatpush3.bf16.msra.mxu0 %v3606_v47  ;;  %3392 = vmatpush3.bf16.msra.mxu1 %v3607_v48 }
  0x98   : > { %3329 = vmatprep.subr.bf16.mxu0 %v3608_v49  ;;  %3393 = vmatprep.subr.bf16.mxu1 %v3609_v50 }
  0x99   : > { %665 = vmatmul.mubr.bf16.gmra.mrb[4].mxu0 %v3593_v40  ;;  %778 = vmatmul.mubr.bf16.gmra.mrb[4].mxu1 %v3593_v40 }
  0x9a   : > { %674 = vmatprep.mubr.bf16.mxu0 %v4069_v0  ;;  %787 = vmatprep.mubr.bf16.mxu1 %v4069_v0 }
  0x9b   : > { %3330 = vmatpush3.bf16.msra.mxu0 %v3610_v51  ;;  %3394 = vmatpush3.bf16.msra.mxu1 %v3611_v52 }
  0x9c   : > { %3331 = vmatprep.subr.bf16.mxu0 %v3612_v53  ;;  %3395 = vmatprep.subr.bf16.mxu1 %v3613_v54 }
  0x9f   : > { %3332 = vmatpush3.bf16.msra.mxu0 %v3614_v62  ;;  %3396 = vmatpush3.bf16.msra.mxu1 %v3615_v63 }
  0xa1   : > { %675 = vmatmul.mubr.bf16.gmra.mrb[8].mxu0 %v3594_v41  ;;  %788 = vmatmul.mubr.bf16.gmra.mrb[8].mxu1 %v3594_v41 }
  0xa2   : > { %684 = vmatprep.mubr.bf16.mxu0 %v4069_v0  ;;  %797 = vmatprep.mubr.bf16.mxu1 %v4069_v0 }
  0xa9   : > { %685 = vmatmul.mubr.bf16.gmra.mrb[12].mxu0 %v3595_v42  ;;  %798 = vmatmul.mubr.bf16.gmra.mrb[12].mxu1 %v3595_v42 }
  0xaa   : > { %694 = vmatprep.mubr.bf16.mxu0 %v4069_v0  ;;  %807 = vmatprep.mubr.bf16.mxu1 %v4069_v0 }
  0xb1   : > { %695 = vmatmul.mubr.bf16.gmra.mrb[16].mxu0 %v3596_v43  ;;  %808 = vmatmul.mubr.bf16.gmra.mrb[16].mxu1 %v3596_v43 }
  0xb2   : > { %704 = vmatprep.mubr.bf16.mxu0 %v4069_v0  ;;  %817 = vmatprep.mubr.bf16.mxu1 %v4069_v0 }
  0xb9   : > { %705 = vmatmul.mubr.bf16.gmra.mrb[20].mxu0 %v3597_v44  ;;  %818 = vmatmul.mubr.bf16.gmra.mrb[20].mxu1 %v3597_v44 }
  0xba   : > { %714 = vmatprep.mubr.bf16.mxu0 %v4069_v0  ;;  %827 = vmatprep.mubr.bf16.mxu1 %v4069_v0 }
  0xc1   : > { %715 = vmatmul.mubr.bf16.gmra.mrb[24].mxu0 %v3598_v45  ;;  %828 = vmatmul.mubr.bf16.gmra.mrb[24].mxu1 %v3598_v45 }
  0xc2   : > { %724 = vmatprep.mubr.bf16.mxu0 %v4069_v0  ;;  %837 = vmatprep.mubr.bf16.mxu1 %v4069_v0  ;;  %v4339_v0 = vrot.slane %v392_v59, %v396_v57 }
  0xc9   : > { %725 = vmatmul.mubr.bf16.gmra.mrb[28].mxu0 %v3599_v46  ;;  %838 = vmatmul.mubr.bf16.gmra.mrb[28].mxu1 %v3599_v46 }
 0x164   : > { %v656_v4 = vpop.f32.mrb[0].mxu0  ;;  %v769_v5 = vpop.f32.mrb[0].mxu1 }
 0x165   : > { %v657_v6 = vadd.f32 %v656_v4, %v4339_v0  ;;  %v770_v7 = vadd.f32 %v769_v5, %v4341_v1  ;;  %v658_v8 = vpop.f32.mrb[1].mxu0  ;;  %v771_v9 = vpop.f32.mrb[1].mxu1  ;;  %v6647_v5 = vmov -1.0  }
 0x166   : > { %v4350_v10 = vadd.f32 %v658_v8, %v4343_v2  ;;  %v4353_v11 = vadd.f32 %v771_v9, %v4345_v3  ;;  %v660_v12 = vpop.f32.mrb[2].mxu0  ;;  %v773_v13 = vpop.f32.mrb[2].mxu1 }
 0x167   : > { %v912_v14 = vmul.f32 0.70710677, %v657_v6  ;;  %v4355_v15 = vmul.f32 0.70710677, %v770_v7  ;;  %v662_v21 = vpop.f32.mrb[3].mxu0  ;;  %v775_v25 = vpop.f32.mrb[3].mxu1  ;;  %v4383_v34 = vadd.f32 %v660_v12, %v4339_v0  ;;  %v4396_v40 = vadd.f32 %v773_v13, %v4341_v1 }
 0x168   : > { %v4358_v16 = vmul.f32 0.70710677, %v4350_v10  ;;  %v4367_v20 = vmul.f32 0.70710677, %v4353_v11  ;;  %v4401_v43 = vadd.f32 %v662_v21, %v4343_v2  ;;  %v4411_v48 = vmul.f32 0.5, %v657_v6 }
 0x169   : > { %v1104_v17 = vand.u32 2147483647, %v912_v14  ;;  %v4361_v18 = vand.u32 2147483647, %v4355_v15  ;;  %v4393_v39 = vmul.f32 0.70710677, %v4383_v34  ;;  %v4431_v58 = vadd.f32 %v775_v25, %v4345_v3 }
 0x16a   : > { %v4364_v19 = vand.u32 2147483647, %v4358_v16  ;;  %v4376_v30 = vand.u32 2147483647, %v4367_v20  ;;  %v4407_v46 = vmul.f32 0.70710677, %v4396_v40 }
 0x16b   : > { %v1168_v22 = vmul.f32 0.3275911, %v1104_v17  ;;  %v1170_v23 = vmul.f32 0.3275911, %v4361_v18  ;;  %v4404_v44 = vand.u32 2147483647, %v4393_v39 }
 0x16c   : > { %v1169_v24 = vmul.f32 0.3275911, %v4364_v19  ;;  %v4371_v28 = vpop.f32.mrb[4].mxu0  ;;  %v4373_v29 = vpop.f32.mrb[4].mxu1  ;;  %v1171_v37 = vmul.f32 0.3275911, %v4376_v30 }
 0x16d   : > { %v1232_v26 = vadd.f32 1.0, %v1168_v22  ;;  %v1234_v27 = vadd.f32 1.0, %v1170_v23  ;;  %v4378_v31 = vpop.f32.mrb[5].mxu0  ;;  %v4380_v32 = vpop.f32.mrb[5].mxu1  ;;  %v1936_v45 = vsub.f32 0.0, %v1104_v17  ;;  %vm976_vm0 = vcmp.ge.f32.partialorder %v912_v14, 0.0 }
 0x16e   : > { %v1233_v33 = vadd.f32 1.0, %v1169_v24  ;;  %v4385_v35 = vpop.f32.mrb[6].mxu0  ;;  %v4387_v36 = vpop.f32.mrb[6].mxu1  ;;  %v1235_v42 = vadd.f32 1.0, %v1171_v37  ;;  %v1172_v49 = vmul.f32 0.3275911, %v4404_v44 }
 0x16f   : > { %3632 = vrcp.f32 %v1232_v26  ;;  %v4390_v38 = vpop.f32.mrb[7].mxu0  ;;  %v4398_v41 = vpop.f32.mrb[7].mxu1  ;;  %v1938_v52 = vsub.f32 0.0, %v4361_v18  ;;  %v4420_v53 = vand.u32 2147483647, %v4407_v46  ;;  %v4427_v56 = vmul.f32 0.5, %v770_v7 }
 0x170   : > { %3634 = vrcp.f32 %v1234_v27  ;;  %6675 = vst [vmem:[#allocation13_spill] sm:$0xff] %v4398_v41  ;;  %v4423_v54 = vmul.f32 0.70710677, %v4401_v43  ;;  %vm978_vm1 = vcmp.ge.f32.partialorder %v4355_v15, 0.0  ;;  %v1236_v57 = vadd.f32 1.0, %v1172_v49  ;;  %v3619_v41 = vld [vmem:[#allocation8 + $0xa0] sm:$0xff]  }
 0x171   : > { %3636 = vrcp.f32 %v1233_v33  ;;  %v2000_v61 = vmul.f32 %v1936_v45, %v1104_v17  ;;  %vm977_vm2 = vcmp.ge.f32.partialorder %v4358_v16, 0.0  ;;  %v1174_v62 = vmul.f32 0.3275911, %v4420_v53 }
 0x172   : > { %3638 = vrcp.f32 %v1235_v42  ;;  %v4440_v63 = vand.u32 2147483647, %v4423_v54  ;;  %v4446_v6 = vsel %vm976_vm0, 1.0, %v6647_v5  ;;  %v4449_v7 = vmul.f32 0.5, %v4350_v10 }
 0x173   : > { %v4452_v8 = vmul.f32 0.5, %v4353_v11  ;;  %3640 = vrcp.f32 %v1236_v57  ;;  %v2002_v21 = vmul.f32 %v1938_v52, %v4361_v18  ;;  %v1238_v14 = vadd.f32 1.0, %v1174_v62 }
 0x174   : > { %v4409_v47 = vpop.f32.mrb[8].mxu0  ;;  %v4414_v50 = vpop.f32.mrb[8].mxu1  ;;  %v1173_v22 = vmul.f32 0.3275911, %v4440_v63  ;;  %v4466_v10 = vsel %vm978_vm1, 1.0, %v6647_v5  ;;  %v4472_v23 = vsel %vm977_vm2, 1.0, %v6647_v5 }
 0x175   : > { %6676 = vst [vmem:[#allocation14_spill] sm:$0xff] %v4409_v47  ;;  %6677 = vst [vmem:[#allocation15_spill] sm:$0xff] %v4414_v50  ;;  %v4416_v51 = vpop.f32.mrb[9].mxu0  ;;  %v4425_v55 = vpop.f32.mrb[9].mxu1  ;;  %v4475_v24 = vmul.f32 0.70710677, %v4431_v58  ;;  %3642 = vrcp.f32 %v1238_v14 }
 0x176   : > { %6678 = vst [vmem:[#allocation16_spill] sm:$0xff] %v4416_v51  ;;  %6679 = vst [vmem:[#allocation17_spill] sm:$0xff] %v4425_v55  ;;  %v4433_v59 = vpop.f32.mrb[10].mxu0  ;;  %v4435_v60 = vpop.f32.mrb[10].mxu1  ;;  %v2064_v18 = vmul.f32 1.442695, %v2000_v61 }
 0x177   : > { %6680 = vst [vmem:[#allocation18_spill] sm:$0xff] %v4433_v59  ;;  %6681 = vst [vmem:[#allocation19_spill] sm:$0xff] %v4435_v60  ;;  %v4454_v9 = vpop.f32.mrb[11].mxu0  ;;  %v4456_v12 = vpop.f32.mrb[11].mxu1  ;;  %v1237_v26 = vadd.f32 1.0, %v1173_v22  ;;  %v1937_v37 = vsub.f32 0.0, %v4364_v19 }
 0x178   : > { %6682 = vst [vmem:[#allocation20_spill] sm:$0xff] %v4452_v8  ;;  %6683 = vst [vmem:[#allocation21_spill] sm:$0xff] %v4454_v9  ;;  %v4483_v42 = vand.u32 2147483647, %v4475_v24  ;;  %v2068_v49 = vmul.f32 1.442695, %v2002_v21 }
 0x179   : > { %v4442_v4 = vpop.eup %3632  ;;  %6684 = vst [vmem:[#allocation22_spill] sm:$0xff] %v4456_v12  ;;  %vm979_vm3 = vcmp.ge.f32.partialorder %v4367_v20, 0.0  ;;  %v1940_v62 = vsub.f32 0.0, %v4404_v44  ;;  %3644 = vrcp.f32 %v1237_v26  ;;  %v1942_v21 = vsub.f32 0.0, %v4420_v53  ;;  %v3618_v47 = vld [vmem:[#allocation8 + $0x20] sm:$0xff]  }
 0x17a   : > { %v4458_v13 = vpop.eup %3634  ;;  %v1360_v17 = vmul.f32 1.0614054, %v4442_v4  ;;  %3646 = vpow2.f32 %v2064_v18  ;;  %v4501_v26 = vadd.f32 %v4371_v28, %v4339_v0  ;;  %vm980_vm4 = vcmp.ge.f32.partialorder %v4393_v39, 0.0 }
 0x17b   : > { %v1362_v11 = vmul.f32 1.0614054, %v4458_v13  ;;  %v4479_v33 = vpop.eup %3636  ;;  %vm982_vm5 = vcmp.ge.f32.partialorder %v4407_v46, 0.0  ;;  %vm981_vm6 = vcmp.ge.f32.partialorder %v4423_v54, 0.0  ;;  %vm983_vm7 = vcmp.ge.f32.partialorder %v4475_v24, 0.0 }
 0x17c   : > { %v1424_v25 = vadd.f32 -1.4531521, %v1360_v17  ;;  %v4477_v27 = vpop.f32.mrb[12].mxu0  ;;  %v4485_v16 = vpop.f32.mrb[12].mxu1  ;;  %v1361_v52 = vmul.f32 1.0614054, %v4479_v33  ;;  %v4653_v54 = vadd.f32 %v4385_v35, %v4339_v0 }
 0x17d   : > { %6685 = vst [vmem:[#allocation23_spill] sm:$0xff] %v4477_v27  ;;  %v1426_v15 = vadd.f32 -1.4531521, %v1362_v11  ;;  %6686 = vst [vmem:[#allocation24_spill] sm:$0xff] %v4485_v16  ;;  %v4490_v57 = vpop.eup %3638  ;;  %v1175_v17 = vmul.f32 0.3275911, %v4483_v42 }
 0x17e   : > { %v1488_v45 = vmul.f32 %v4442_v4, %v1424_v25  ;;  %v1425_v22 = vadd.f32 -1.4531521, %v1361_v52  ;;  %v1363_v11 = vmul.f32 1.0614054, %v4490_v57  ;;  %v3616_v16 = vld [vmem:[#allocation8 + $0x60] sm:$0xff]   ;;  %v4505_v52 = vpop.eup %3640  ;;  %v4667_v35 = vmul.f32 0.5, %v4501_v26 }
 0x17f   : > { %v1490_v61 = vmul.f32 %v4458_v13, %v1426_v15  ;;  %v1239_v5 = vadd.f32 1.0, %v1175_v17  ;;  %v3617_v27 = vld [vmem:[#allocation8 + $0xe0] sm:$0xff]   ;;  %v2004_v17 = vmul.f32 %v1940_v62, %v4404_v44  ;;  %3333 = vmatprep.subr.bf16.mxu0 %v3616_v16  ;;  %v1364_v28 = vmul.f32 1.0614054, %v4505_v52  ;;  %v4520_v44 = vpop.eup %3642 }
 0x180   : > { %v1552_v14 = vadd.f32 1.4214138, %v1488_v45  ;;  %v1489_v15 = vmul.f32 %v4479_v33, %v1425_v22  ;;  %v1427_v9 = vadd.f32 -1.4531521, %v1363_v11  ;;  %v4503_v45 = vpop.f32.mrb[13].mxu0  ;;  %3397 = vmatprep.subr.bf16.mxu1 %v3617_v27  ;;  %3334 = vmatpush3.bf16.msra.mxu0 %v3618_v47 }
 0x181   : > { %v1554_v25 = vadd.f32 1.4214138, %v1490_v61  ;;  %6687 = vst [vmem:[#allocation25_spill] sm:$0xff] %v4503_v45  ;;  %v2001_v61 = vmul.f32 %v1937_v37, %v4364_v19  ;;  %3648 = vrcp.f32 %v1239_v5  ;;  %v6688_v45 = vmov -1.0   ;;  %v4518_v37 = vpop.f32.mrb[13].mxu1  ;;  %3398 = vmatpush3.bf16.msra.mxu1 %v3619_v41 }
 0x182   : > { %v1616_v12 = vmul.f32 %v4442_v4, %v1552_v14  ;;  %v1553_v22 = vadd.f32 1.4214138, %v1489_v15  ;;  %v1491_v11 = vmul.f32 %v4490_v57, %v1427_v9  ;;  %3650 = vpow2.f32 %v2068_v49  ;;  %6689 = vst [vmem:[#allocation26_spill] sm:$0xff] %v4518_v37 }
 0x183   : > { %v1618_v18 = vmul.f32 %v4458_v13, %v1554_v25  ;;  %v4515_v59 = vsel %vm979_vm3, 1.0, %v6688_v45  ;;  %v2006_v19 = vmul.f32 %v1942_v21, %v4420_v53  ;;  %v1428_v27 = vadd.f32 -1.4531521, %v1364_v28 }
 0x184   : > { %v1680_v14 = vadd.f32 -0.28449672, %v1616_v12  ;;  %v1555_v12 = vadd.f32 1.4214138, %v1491_v11  ;;  %v4524_v9 = vmul.f32 0.70710677, %v4501_v26  ;;  %v1617_v49 = vmul.f32 %v4479_v33, %v1553_v22 }
 0x185   : > { %v1682_v60 = vadd.f32 -0.28449672, %v1618_v18  ;;  %v2072_v20 = vmul.f32 1.442695, %v2004_v17  ;;  %v1366_v62 = vmul.f32 1.0614054, %v4520_v44  ;;  %v1492_v15 = vmul.f32 %v4505_v52, %v1428_v27  ;;  %v4531_v18 = vpop.eup %3644 }
 0x186   : > { %v1744_v5 = vmul.f32 %v4442_v4, %v1680_v14  ;;  %v2066_v53 = vmul.f32 1.442695, %v2001_v61  ;;  %v1939_v21 = vsub.f32 0.0, %v4376_v30  ;;  %v2076_v28 = vmul.f32 1.442695, %v2006_v19  ;;  %v3647_v22 = vpop.eup %3646 }
 0x187   : > { %v1746_v16 = vmul.f32 %v4458_v13, %v1682_v60  ;;  %v1430_v11 = vadd.f32 -1.4531521, %v1366_v62  ;;  %v1619_v60 = vmul.f32 %v4490_v57, %v1555_v12  ;;  %v1556_v55 = vadd.f32 1.4214138, %v1492_v15 }
 0x188   : > { %v1808_v25 = vadd.f32 0.2548296, %v1744_v5  ;;  %v4536_v17 = vand.u32 2147483647, %v4524_v9  ;;  %v1681_v5 = vadd.f32 -0.28449672, %v1617_v49  ;;  %3652 = vpow2.f32 %v2072_v20 }
 0x189   : > { %v1810_v14 = vadd.f32 0.2548296, %v1746_v16  ;;  %v1494_v61 = vmul.f32 %v4520_v44, %v1430_v11  ;;  %v1365_v27 = vmul.f32 1.0614054, %v4531_v18  ;;  %v2003_v51 = vmul.f32 %v1939_v21, %v4376_v30 }
 0x18a   : > { %v1872_v37 = vmul.f32 %v4442_v4, %v1808_v25  ;;  %v4542_v16 = vmul.f32 0.5, %v4383_v34  ;;  %v1620_v4 = vmul.f32 %v4505_v52, %v1556_v55  ;;  %3654 = vpow2.f32 %v2076_v28 }
 0x18b   : > { %v4546_v19 = vpop.eup %3648  ;;  %v1874_v12 = vmul.f32 %v4458_v13, %v1810_v14  ;;  %v1558_v62 = vadd.f32 1.4214138, %v1494_v61  ;;  %v1429_v49 = vadd.f32 -1.4531521, %v1365_v27  ;;  %v1683_v25 = vadd.f32 -0.28449672, %v1619_v60 }
 0x18c   : > { %v2192_v20 = vmul.f32 %v3647_v22, %v1872_v37  ;;  %v1684_v15 = vadd.f32 -0.28449672, %v1620_v4  ;;  %v1176_v11 = vmul.f32 0.3275911, %v4536_v17  ;;  %v3651_v30 = vpop.eup %3650  ;;  %v1745_v34 = vmul.f32 %v4479_v33, %v1681_v5  ;;  %v4554_v13 = vpop.f32.mrb[14].mxu0 }
 0x18d   : > { %v1622_v21 = vmul.f32 %v4520_v44, %v1558_v62  ;;  %v1493_v50 = vmul.f32 %v4531_v18, %v1429_v49  ;;  %v1367_v55 = vmul.f32 1.0614054, %v4546_v19  ;;  %6690 = vst [vmem:[#allocation27_spill] sm:$0xff] %v4554_v13  ;;  %3656 = vpow2.f32 %v2066_v53  ;;  %v4564_v13 = vpop.f32.mrb[14].mxu1  ;;  %v4591_v46 = vpop.f32.mrb[15].mxu0 }
 0x18e   : > { %v2070_v14 = vmul.f32 1.442695, %v2003_v51  ;;  %v1748_v37 = vmul.f32 %v4505_v52, %v1684_v15  ;;  %v1941_v28 = vsub.f32 0.0, %v4440_v63  ;;  %v2194_v60 = vmul.f32 %v3651_v30, %v1874_v12 }
 0x18f   : > { %v1686_v22 = vadd.f32 -0.28449672, %v1622_v21  ;;  %v1557_v61 = vadd.f32 1.4214138, %v1493_v50  ;;  %v1431_v5 = vadd.f32 -1.4531521, %v1367_v55  ;;  %v1747_v53 = vmul.f32 %v4490_v57, %v1683_v25 }
 0x190   : > { %v2256_v27 = vsub.f32 1.0, %v2192_v20  ;;  %v1812_v4 = vadd.f32 0.2548296, %v1748_v37  ;;  %v4559_v62 = vmul.f32 0.5, %v4396_v40  ;;  %v1240_v49 = vadd.f32 1.0, %v1176_v11 }
 0x191   : > { %v1809_v8 = vadd.f32 0.2548296, %v1745_v34  ;;  %v1750_v51 = vmul.f32 %v4520_v44, %v1686_v22  ;;  %v1495_v15 = vmul.f32 %v4546_v19, %v1431_v5  ;;  %3658 = vpow2.f32 %v2070_v14 }
 0x192   : > { %v1876_v50 = vmul.f32 %v4505_v52, %v1812_v4  ;;  %v1621_v41 = vmul.f32 %v4531_v18, %v1557_v61  ;;  %v2005_v47 = vmul.f32 %v1941_v28, %v4440_v63  ;;  %v3653_v12 = vpop.eup %3652  ;;  %v2258_v40 = vsub.f32 1.0, %v2194_v60 }
 0x193   : > { %v1814_v20 = vadd.f32 0.2548296, %v1750_v51  ;;  %v1559_v11 = vadd.f32 1.4214138, %v1495_v15  ;;  %v1943_v30 = vsub.f32 0.0, %v4483_v42  ;;  %v2320_v25 = vmul.f32 %v2256_v27, %v4446_v6 }
 0x194   : > { %v2196_v34 = vmul.f32 %v3653_v12, %v1876_v50  ;;  %3660 = vrcp.f32 %v1240_v49  ;;  %v4573_v21 = vadd.f32 %v4373_v29, %v4341_v1  ;;  %v3655_v55 = vpop.eup %3654  ;;  %v1873_v52 = vmul.f32 %v4479_v33, %v1809_v8 }
 0x195   : > { %v1811_v14 = vadd.f32 0.2548296, %v1747_v53  ;;  %v1044_v63 = vsel %vm980_vm4, 1.0, %v6688_v45  ;;  %v1878_v37 = vmul.f32 %v4520_v44, %v1814_v20  ;;  %v1685_v6 = vadd.f32 -0.28449672, %v1621_v41 }
 0x196   : > { %v2260_v28 = vsub.f32 1.0, %v2196_v34  ;;  %v1623_v60 = vmul.f32 %v4546_v19, %v1559_v11  ;;  %v2322_v22 = vmul.f32 %v2258_v40, %v4466_v10  ;;  %v2074_v61 = vmul.f32 1.442695, %v2005_v47 }
 0x197   : > { %v2198_v29 = vmul.f32 %v3655_v55, %v1878_v37  ;;  %v2007_v5 = vmul.f32 %v1943_v30, %v4483_v42  ;;  %v3657_v8 = vpop.eup %3656  ;;  %v2384_v33 = vadd.f32 1.0, %v2320_v25  ;;  %v4585_v39 = vmul.f32 0.70710677, %v4573_v21  ;;  %v4609_v30 = vpop.f32.mrb[15].mxu1 }
 0x198   : > { %v2324_v27 = vmul.f32 %v2260_v28, %v1044_v63  ;;  %v4589_v44 = vadd.f32 %v4378_v31, %v4343_v2  ;;  %v2193_v4 = vmul.f32 %v3657_v8, %v1873_v52  ;;  %v1875_v49 = vmul.f32 %v4490_v57, %v1811_v14 }
 0x199   : > { %v1046_v10 = vsel %vm982_vm5, 1.0, %v6688_v45  ;;  %v2262_v53 = vsub.f32 1.0, %v2198_v29  ;;  %v1749_v42 = vmul.f32 %v4531_v18, %v1685_v6  ;;  %v1687_v15 = vadd.f32 -0.28449672, %v1623_v60 }
 0x19a   : > { %v2388_v51 = vadd.f32 1.0, %v2324_v27  ;;  %v4597_v50 = vand.u32 2147483647, %v4585_v39  ;;  %v2386_v41 = vadd.f32 1.0, %v2322_v22  ;;  %3662 = vpow2.f32 %v2074_v61 }
 0x19b   : > { %v2326_v47 = vmul.f32 %v2262_v53, %v1046_v10  ;;  %v2078_v31 = vmul.f32 1.442695, %v2007_v5  ;;  %v3659_v12 = vpop.eup %3658  ;;  %v4600_v40 = vmul.f32 %v2384_v33, %v4411_v48  ;;  %v4607_v11 = vmul.f32 0.70710677, %v4589_v44 }
 0x19c   : > { %v4603_v57 = vmul.f32 %v2388_v51, %v4542_v16  ;;  %v1178_v20 = vmul.f32 0.3275911, %v4597_v50  ;;  %v2257_v25 = vsub.f32 1.0, %v2193_v4  ;;  %v2195_v34 = vmul.f32 %v3659_v12, %v1875_v49 }
 0x19d   : > { %6691 = vst [vmem:[#allocation28_spill] sm:$0xff] %v4600_v40  ;;  %v2390_v55 = vadd.f32 1.0, %v2326_v47  ;;  %v1813_v14 = vadd.f32 0.2548296, %v1749_v42  ;;  %v1751_v16 = vmul.f32 %v4546_v19, %v1687_v15  ;;  %v4618_v37 = vmul.f32 %v2386_v41, %v4427_v56  ;;  %v3623_v40 = vld [vmem:[#allocation8 + $0xa8] sm:$0xff]  }
 0x19e   : > { %6692 = vst [vmem:[#allocation29_spill] sm:$0xff] %v4603_v57  ;;  %v4612_v52 = vpop.eup %3660  ;;  %v1242_v63 = vadd.f32 1.0, %v1178_v20  ;;  %3664 = vpow2.f32 %v2078_v31  ;;  %v4625_v60 = vmul.f32 0.5, %v4401_v43  ;;  %v4628_v22 = vand.u32 2147483647, %v4607_v11  ;;  %v4670_v31 = vpop.f32.mrb[16].mxu0 }
 0x19f   : > { %6693 = vst [vmem:[#allocation30_spill] sm:$0xff] %v4618_v37  ;;  %v4621_v28 = vmul.f32 %v2390_v55, %v4559_v62  ;;  %v1368_v6 = vmul.f32 1.0614054, %v4612_v52  ;;  %v4632_v29 = vadd.f32 %v4380_v32, %v4345_v3  ;;  %v2321_v56 = vmul.f32 %v2257_v25, %v4472_v23 }
 0x1a0   : > { %3666 = vrcp.f32 %v1242_v63  ;;  %v2259_v61 = vsub.f32 1.0, %v2195_v34  ;;  %v1045_v43 = vsel %vm981_vm6, 1.0, %v6688_v45  ;;  %v1877_v8 = vmul.f32 %v4531_v18, %v1813_v14 }
 0x1a1   : > { %6694 = vst [vmem:[#allocation31_spill] sm:$0xff] %v4621_v28  ;;  %v1432_v5 = vadd.f32 -1.4531521, %v1368_v6  ;;  %v1815_v33 = vadd.f32 0.2548296, %v1751_v16  ;;  %v4643_v4 = vmul.f32 0.5, %v4431_v58  ;;  %v4657_v18 = vadd.f32 %v4387_v36, %v4341_v1 }
 0x1a2   : > { %v1177_v27 = vmul.f32 0.3275911, %v4628_v22  ;;  %v4648_v23 = vmul.f32 0.70710677, %v4632_v29  ;;  %vm984_vm8 = vcmp.ge.f32.partialorder %v4524_v9, 0.0  ;;  %v2385_v10 = vadd.f32 1.0, %v2321_v56 }
 0x1a3   : > { %v1496_v32 = vmul.f32 %v4612_v52, %v1432_v5  ;;  %v2323_v24 = vmul.f32 %v2259_v61, %v4515_v59  ;;  %v1944_v53 = vsub.f32 0.0, %v4536_v17  ;;  %v1047_v15 = vsel %vm983_vm7, 1.0, %v6688_v45  ;;  %v3622_v28 = vld [vmem:[#allocation8 + $0x28] sm:$0xff]  }
 0x1a4   : > { %v1241_v49 = vadd.f32 1.0, %v1177_v27  ;;  %v3663_v58 = vpop.eup %3662  ;;  %v4662_v51 = vand.u32 2147483647, %v4648_v23  ;;  %v1879_v41 = vmul.f32 %v4546_v19, %v1815_v33  ;;  %v4675_v59 = vsel %vm984_vm8, 1.0, %v6688_v45 }
 0x1a5   : > { %v2197_v42 = vmul.f32 %v3663_v58, %v1877_v8  ;;  %v1560_v36 = vadd.f32 1.4214138, %v1496_v32  ;;  %v1946_v12 = vsub.f32 0.0, %v4597_v50  ;;  %v4679_v20 = vmul.f32 0.70710677, %v4653_v54 }
 0x1a6   : > { %3668 = vrcp.f32 %v1241_v49  ;;  %v1179_v47 = vmul.f32 0.3275911, %v4662_v51  ;;  %v4682_v19 = vmul.f32 0.70710677, %v4657_v18  ;;  %v4685_v25 = vmul.f32 %v2385_v10, %v4449_v7  ;;  %v6696_v49 = vld [vmem:[#allocation20_spill] sm:$0xff] }
 0x1a7   : > { %v2387_v34 = vadd.f32 1.0, %v2323_v24  ;;  %v2008_v55 = vmul.f32 %v1944_v53, %v4536_v17  ;;  %v2261_v9 = vsub.f32 1.0, %v2197_v42  ;;  %v4691_v6 = vand.u32 2147483647, %v4679_v20  ;;  %v4702_v17 = vpop.f32.mrb[16].mxu1 }
 0x1a8   : > { %v3665_v26 = vpop.eup %3664  ;;  %6695 = vst [vmem:[#allocation32_spill] sm:$0xff] %v4685_v25  ;;  %v1243_v14 = vadd.f32 1.0, %v1179_v47  ;;  %v4694_v56 = vand.u32 2147483647, %v4682_v19  ;;  %v1624_v61 = vmul.f32 %v4612_v52, %v1560_v36  ;;  %v4700_v7 = vadd.f32 %v4390_v38, %v4343_v2 }
 0x1a9   : > { %v2199_v63 = vmul.f32 %v3665_v26, %v1879_v41  ;;  %v4705_v8 = vmul.f32 0.5, %v4573_v21  ;;  %v2010_v33 = vmul.f32 %v1946_v12, %v4597_v50  ;;  %v4709_v27 = vmul.f32 0.5, %v4589_v44 }
 0x1aa   : > { %v4688_v16 = vpop.eup %3666  ;;  %3670 = vrcp.f32 %v1243_v14  ;;  %v1180_v32 = vmul.f32 0.3275911, %v4691_v6  ;;  %v4713_v58 = vmul.f32 %v2387_v34, %v6696_v49  ;;  %v2080_v10 = vmul.f32 1.442695, %v2008_v55  ;;  %v6698_v55 = vld [vmem:[#allocation13_spill] sm:$0xff] }
 0x1ab   : > { %v1370_v5 = vmul.f32 1.0614054, %v4688_v16  ;;  %v1182_v38 = vmul.f32 0.3275911, %v4694_v56  ;;  %v2325_v53 = vmul.f32 %v2261_v9, %v1045_v43  ;;  %v2263_v42 = vsub.f32 1.0, %v2199_v63  ;;  %v3620_v9 = vld [vmem:[#allocation8 + $0x68] sm:$0xff]  }
 0x1ac   : > { %6697 = vst [vmem:[#allocation20_spill] sm:$0xff] %v4713_v58  ;;  %vm986_vm9 = vcmp.ge.f32.partialorder %v4585_v39, 0.0  ;;  %v1244_v21 = vadd.f32 1.0, %v1180_v32  ;;  %v1688_v41 = vadd.f32 -0.28449672, %v1624_v61  ;;  %vm985_vm10 = vcmp.ge.f32.partialorder %v4607_v11, 0.0  ;;  %3335 = vmatprep.subr.bf16.mxu0 %v3620_v9 }
 0x1ad   : > { %v1434_v24 = vadd.f32 -1.4531521, %v1370_v5  ;;  %v1246_v36 = vadd.f32 1.0, %v1182_v38  ;;  %v4719_v44 = vmul.f32 0.70710677, %v4700_v7  ;;  %v1945_v26 = vsub.f32 0.0, %v4628_v22  ;;  %3336 = vmatpush3.bf16.msra.mxu0 %v3622_v28 }
 0x1ae   : > { %v2084_v12 = vmul.f32 1.442695, %v2010_v33  ;;  %3672 = vrcp.f32 %v1244_v21  ;;  %v1947_v34 = vsub.f32 0.0, %v4662_v51  ;;  %v4729_v14 = vadd.f32 %v6698_v55, %v4345_v3  ;;  %v3621_v63 = vld [vmem:[#allocation8 + $0xe8] sm:$0xff]   ;;  %v4739_v32 = vpop.f32.mrb[17].mxu0 }
 0x1af   : > { %v1498_v50 = vmul.f32 %v4688_v16, %v1434_v24  ;;  %3674 = vrcp.f32 %v1246_v36  ;;  %v4734_v61 = vsel %vm986_vm9, 1.0, %v6688_v45  ;;  %v4737_v33 = vand.u32 2147483647, %v4719_v44  ;;  %3399 = vmatprep.subr.bf16.mxu1 %v3621_v63 }
 0x1b0   : > { %v4721_v47 = vpop.eup %3668  ;;  %3676 = vpow2.f32 %v2080_v10  ;;  %v2389_v49 = vadd.f32 1.0, %v2325_v53  ;;  %v2327_v24 = vmul.f32 %v2263_v42, %v1047_v15  ;;  %v1752_v38 = vmul.f32 %v4612_v52, %v1688_v41  ;;  %3400 = vmatpush3.bf16.msra.mxu1 %v3623_v40 }
 0x1b1   : > { %v1369_v43 = vmul.f32 1.0614054, %v4721_v47  ;;  %v1562_v5 = vadd.f32 1.4214138, %v1498_v50  ;;  %3678 = vpow2.f32 %v2084_v12  ;;  %v4745_v39 = vsel %vm985_vm10, 1.0, %v6688_v45 }
 0x1b2   : > { %v2009_v10 = vmul.f32 %v1945_v26, %v4628_v22  ;;  %v1181_v50 = vmul.f32 0.3275911, %v4737_v33  ;;  %v4753_v15 = vmul.f32 0.5, %v4632_v29  ;;  %v2011_v42 = vmul.f32 %v1947_v34, %v4662_v51  ;;  %v6700_v51 = vld [vmem:[#allocation14_spill] sm:$0xff] }
 0x1b3   : > { %v1433_v21 = vadd.f32 -1.4531521, %v1369_v43  ;;  %v4757_v41 = vmul.f32 0.70710677, %v4729_v14  ;;  %v1626_v11 = vmul.f32 %v4688_v16, %v1562_v5  ;;  %vm987_vm11 = vcmp.ge.f32.partialorder %v4648_v23, 0.0 }
 0x1b4   : > { %v4749_v36 = vpop.eup %3670  ;;  %v1245_v12 = vadd.f32 1.0, %v1181_v50  ;;  %v4763_v26 = vmul.f32 %v2389_v49, %v4625_v60  ;;  %v2391_v43 = vadd.f32 1.0, %v2327_v24  ;;  %v1816_v55 = vadd.f32 0.2548296, %v1752_v38 }
 0x1b5   : > { %v1497_v53 = vmul.f32 %v4721_v47, %v1433_v21  ;;  %v1371_v22 = vmul.f32 1.0614054, %v4749_v36  ;;  %v2082_v29 = vmul.f32 1.442695, %v2009_v10  ;;  %v4767_v34 = vadd.f32 %v6700_v51, %v4339_v0  ;;  %v4769_v21 = vpop.f32.mrb[17].mxu1 }
 0x1b6   : > { %6699 = vst [vmem:[#allocation13_spill] sm:$0xff] %v4763_v26  ;;  %3680 = vrcp.f32 %v1245_v12  ;;  %v4772_v23 = vsel %vm987_vm11, 1.0, %v6688_v45  ;;  %v2086_v5 = vmul.f32 1.442695, %v2011_v42  ;;  %v4775_v50 = vmul.f32 0.5, %v4653_v54 }
 0x1b7   : > { %v1561_v9 = vadd.f32 1.4214138, %v1497_v53  ;;  %v1435_v63 = vadd.f32 -1.4531521, %v1371_v22  ;;  %v4778_v60 = vand.u32 2147483647, %v4757_v41  ;;  %v1880_v12 = vmul.f32 %v4612_v52, %v1816_v55 }
 0x1b8   : > { %v4780_v49 = vpop.eup %3672  ;;  %v1690_v24 = vadd.f32 -0.28449672, %v1626_v11  ;;  %v1948_v53 = vsub.f32 0.0, %v4691_v6  ;;  %v1950_v54 = vsub.f32 0.0, %v4694_v56  ;;  %v4792_v48 = vmul.f32 %v2391_v43, %v4643_v4 }
 0x1b9   : > { %v1625_v38 = vmul.f32 %v4721_v47, %v1561_v9  ;;  %v1499_v10 = vmul.f32 %v4749_v36, %v1435_v63  ;;  %v4785_v22 = vpop.eup %3674  ;;  %v1372_v42 = vmul.f32 1.0614054, %v4780_v49  ;;  %v1183_v51 = vmul.f32 0.3275911, %v4778_v60 }
 0x1ba   : > { %v3677_v62 = vpop.eup %3676  ;;  %6701 = vst [vmem:[#allocation14_spill] sm:$0xff] %v4792_v48  ;;  %v1374_v9 = vmul.f32 1.0614054, %v4785_v22  ;;  %v4796_v63 = vmul.f32 0.70710677, %v4767_v34  ;;  %3682 = vpow2.f32 %v2082_v29  ;;  %v4799_v52 = vmul.f32 0.5, %v4657_v18 }
 0x1bb   : > { %v1563_v11 = vadd.f32 1.4214138, %v1499_v10  ;;  %v1436_v37 = vadd.f32 -1.4531521, %v1372_v42  ;;  %v1247_v55 = vadd.f32 1.0, %v1183_v51  ;;  %v3679_v57 = vpop.eup %3678  ;;  %v1754_v58 = vmul.f32 %v4688_v16, %v1690_v24 }
 0x1bc   : > { %v1689_v26 = vadd.f32 -0.28449672, %v1625_v38  ;;  %vm988_vm12 = vcmp.ge.f32.partialorder %v4679_v20, 0.0  ;;  %v1438_v4 = vadd.f32 -1.4531521, %v1374_v9  ;;  %v2200_v43 = vmul.f32 %v3677_v62, %v1880_v12  ;;  %v4815_v38 = vpop.f32.mrb[18].mxu0 }
 0x1bd   : > { %v1500_v10 = vmul.f32 %v4780_v49, %v1436_v37  ;;  %vm990_vm13 = vcmp.ge.f32.partialorder %v4682_v19, 0.0  ;;  %3684 = vrcp.f32 %v1247_v55  ;;  %v2012_v18 = vmul.f32 %v1948_v53, %v4691_v6  ;;  %6702 = vst [vmem:[#allocation33_spill] sm:$0xff] %v4815_v38 }
 0x1be   : > { %v1502_v29 = vmul.f32 %v4785_v22, %v1438_v4  ;;  %v2014_v42 = vmul.f32 %v1950_v54, %v4694_v56  ;;  %v4809_v24 = vand.u32 2147483647, %v4796_v63  ;;  %v1627_v20 = vmul.f32 %v4749_v36, %v1563_v11 }
 0x1bf   : > { %3686 = vpow2.f32 %v2086_v5  ;;  %v4813_v62 = vsel %vm988_vm12, 1.0, %v6688_v45  ;;  %v1564_v37 = vadd.f32 1.4214138, %v1500_v10  ;;  %v1818_v40 = vadd.f32 0.2548296, %v1754_v58 }
 0x1c0   : > { %v4817_v28 = vpop.eup %3680  ;;  %v1753_v6 = vmul.f32 %v4721_v47, %v1689_v26  ;;  %v1566_v53 = vadd.f32 1.4214138, %v1502_v29  ;;  %v1184_v56 = vmul.f32 0.3275911, %v4809_v24  ;;  %v2264_v12 = vsub.f32 1.0, %v2200_v43  ;;  %v6703_v26 = vld [vmem:[#allocation15_spill] sm:$0xff] }
 0x1c1   : > { %v1628_v54 = vmul.f32 %v4780_v49, %v1564_v37  ;;  %v1373_v51 = vmul.f32 1.0614054, %v4817_v28  ;;  %v1949_v5 = vsub.f32 0.0, %v4737_v33  ;;  %v2088_v11 = vmul.f32 1.442695, %v2012_v18 }
 0x1c2   : > { %v1630_v9 = vmul.f32 %v4785_v22, %v1566_v53  ;;  %v2092_v55 = vmul.f32 1.442695, %v2014_v42  ;;  %v1248_v4 = vadd.f32 1.0, %v1184_v56  ;;  %v1691_v10 = vadd.f32 -0.28449672, %v1627_v20  ;;  %v4834_v53 = vpop.f32.mrb[18].mxu1 }
 0x1c3   : > { %vm989_vm14 = vcmp.ge.f32.partialorder %v4719_v44, 0.0  ;;  %v1437_v58 = vadd.f32 -1.4531521, %v1373_v51  ;;  %v4828_v29 = vadd.f32 %v6703_v26, %v4341_v1  ;;  %v1882_v43 = vmul.f32 %v4688_v16, %v1818_v40  ;;  %6704 = vst [vmem:[#allocation15_spill] sm:$0xff] %v4834_v53 }
 0x1c4   : > { %v1817_v37 = vadd.f32 0.2548296, %v1753_v6  ;;  %v1692_v48 = vadd.f32 -0.28449672, %v1628_v54  ;;  %3688 = vrcp.f32 %v1248_v4  ;;  %v3683_v25 = vpop.eup %3682  ;;  %v2328_v18 = vmul.f32 %v2264_v12, %v4675_v59 }
 0x1c5   : > { %v1694_v38 = vadd.f32 -0.28449672, %v1630_v9  ;;  %v1501_v42 = vmul.f32 %v4817_v28, %v1437_v58  ;;  %v2013_v20 = vmul.f32 %v1949_v5, %v4737_v33  ;;  %3690 = vpow2.f32 %v2088_v11 }
 0x1c6   : > { %v4839_v56 = vsel %vm990_vm13, 1.0, %v6688_v45  ;;  %v4842_v16 = vmul.f32 0.5, %v4700_v7  ;;  %v4847_v59 = vsel %vm989_vm14, 1.0, %v6688_v45  ;;  %v1755_v33 = vmul.f32 %v4749_v36, %v1691_v10 }
 0x1c7   : > { %v4849_v40 = vpop.eup %3684  ;;  %v1565_v6 = vadd.f32 1.4214138, %v1501_v42  ;;  %vm991_vm15 = vcmp.ge.f32.partialorder %v4757_v41, 0.0  ;;  %v4854_v12 = vmul.f32 0.70710677, %v4828_v29  ;;  %v2202_v19 = vmul.f32 %v3679_v57, %v1882_v43  ;;  %v4877_v43 = vpop.f32.mrb[19].mxu0 }
 0x1c8   : > { %v1881_v54 = vmul.f32 %v4721_v47, %v1817_v37  ;;  %v1756_v7 = vmul.f32 %v4780_v49, %v1692_v48  ;;  %v1375_v51 = vmul.f32 1.0614054, %v4849_v40  ;;  %v2392_v5 = vadd.f32 1.0, %v2328_v18 }
 0x1c9   : > { %v3687_v44 = vpop.eup %3686  ;;  %v1758_v11 = vmul.f32 %v4785_v22, %v1694_v38  ;;  %3692 = vpow2.f32 %v2092_v55  ;;  %v2090_v9 = vmul.f32 1.442695, %v2013_v20  ;;  %v1629_v4 = vmul.f32 %v4817_v28, %v1565_v6  ;;  %v6705_v38 = vld [vmem:[#allocation16_spill] sm:$0xff] }
 0x1ca   : > { %v4862_v10 = vmul.f32 0.5, %v4729_v14  ;;  %v1439_v58 = vadd.f32 -1.4531521, %v1375_v51  ;;  %v1951_v57 = vsub.f32 0.0, %v4778_v60  ;;  %v1819_v26 = vadd.f32 0.2548296, %v1755_v33 }
 0x1cb   : > { %v4868_v48 = vsel %vm991_vm15, 1.0, %v6688_v45  ;;  %v4871_v47 = vand.u32 2147483647, %v4854_v12  ;;  %v4875_v55 = vadd.f32 %v6705_v38, %v4343_v2  ;;  %6706 = vst [vmem:[#allocation16_spill] sm:$0xff] %v4877_v43  ;;  %v2266_v14 = vsub.f32 1.0, %v2202_v19 }
 0x1cc   : > { %v2201_v37 = vmul.f32 %v3683_v25, %v1881_v54  ;;  %v1820_v18 = vadd.f32 0.2548296, %v1756_v7  ;;  %v1503_v42 = vmul.f32 %v4849_v40, %v1439_v58  ;;  %v4881_v20 = vmul.f32 %v2392_v5, %v4667_v35 }
 0x1cd   : > { %v1822_v41 = vadd.f32 0.2548296, %v1758_v11  ;;  %3694 = vpow2.f32 %v2090_v9  ;;  %v1186_v33 = vmul.f32 0.3275911, %v4871_v47  ;;  %v1693_v51 = vadd.f32 -0.28449672, %v1629_v4 }
 0x1ce   : > { %6707 = vst [vmem:[#allocation34_spill] sm:$0xff] %v4881_v20  ;;  %v4884_v6 = vpop.eup %3688  ;;  %v1567_v53 = vadd.f32 1.4214138, %v1503_v42  ;;  %v2015_v38 = vmul.f32 %v1951_v57, %v4778_v60  ;;  %v1952_v43 = vsub.f32 0.0, %v4809_v24  ;;  %v1883_v25 = vmul.f32 %v4749_v36, %v1819_v26  ;;  %v4898_v36 = vpop.f32.mrb[19].mxu1 }
 0x1cf   : > { %v1376_v19 = vmul.f32 1.0614054, %v4884_v6  ;;  %v1250_v54 = vadd.f32 1.0, %v1186_v33  ;;  %v4891_v35 = vmul.f32 0.70710677, %v4875_v55  ;;  %v3691_v7 = vpop.eup %3690  ;;  %v2330_v5 = vmul.f32 %v2266_v14, %v4734_v61  ;;  %v6708_v61 = vld [vmem:[#allocation17_spill] sm:$0xff] }
 0x1d0   : > { %v2265_v11 = vsub.f32 1.0, %v2201_v37  ;;  %v1884_v9 = vmul.f32 %v4780_v49, %v1820_v18  ;;  %vm992_vm0 = vcmp.ge.f32.partialorder %v4796_v63, 0.0  ;;  %v1886_v60 = vmul.f32 %v4785_v22, %v1822_v41  ;;  %v6709_v63 = vld [vmem:[#allocation18_spill] sm:$0xff] }
 0x1d1   : > { %v1631_v4 = vmul.f32 %v4849_v40, %v1567_v53  ;;  %v1440_v58 = vadd.f32 -1.4531521, %v1376_v19  ;;  %3696 = vrcp.f32 %v1250_v54  ;;  %v1757_v57 = vmul.f32 %v4817_v28, %v1693_v51 }
 0x1d2   : > { %v2094_v26 = vmul.f32 1.442695, %v2015_v38  ;;  %v2016_v42 = vmul.f32 %v1952_v43, %v4809_v24  ;;  %v4904_v14 = vadd.f32 %v6708_v61, %v4345_v3  ;;  %v2203_v37 = vmul.f32 %v3687_v44, %v1883_v25 }
 0x1d3   : > { %v3693_v49 = vpop.eup %3692  ;;  %v4907_v18 = vmul.f32 0.5, %v4767_v34  ;;  %v1504_v22 = vmul.f32 %v4884_v6, %v1440_v58  ;;  %v4911_v53 = vand.u32 2147483647, %v4891_v35  ;;  %v2394_v41 = vadd.f32 1.0, %v2330_v5 }
 0x1d4   : > { %v2329_v33 = vmul.f32 %v2265_v11, %v4745_v39  ;;  %v2204_v51 = vmul.f32 %v3691_v7, %v1884_v9  ;;  %v4917_v24 = vsel %vm992_vm0, 1.0, %v6688_v45  ;;  %v2206_v43 = vmul.f32 %v3693_v49, %v1886_v60 }
 0x1d5   : > { %v1695_v38 = vadd.f32 -0.28449672, %v1631_v4  ;;  %v1568_v44 = vadd.f32 1.4214138, %v1504_v22  ;;  %v1185_v34 = vmul.f32 0.3275911, %v4911_v53  ;;  %3698 = vpow2.f32 %v2094_v26 }
 0x1d6   : > { %v1821_v25 = vadd.f32 0.2548296, %v1757_v57  ;;  %v2096_v19 = vmul.f32 1.442695, %v2016_v42  ;;  %v4921_v54 = vmul.f32 0.70710677, %v4904_v14  ;;  %v4926_v11 = vadd.f32 %v6709_v63, %v4339_v0 }
 0x1d7   : > { %v3695_v5 = vpop.eup %3694  ;;  %v2267_v58 = vsub.f32 1.0, %v2203_v37  ;;  %v1632_v39 = vmul.f32 %v4884_v6, %v1568_v44  ;;  %v1249_v7 = vadd.f32 1.0, %v1185_v34  ;;  %v4929_v9 = vmul.f32 %v2394_v41, %v4705_v8  ;;  %v4954_v44 = vpop.f32.mrb[20].mxu0 }
 0x1d8   : > { %v2268_v60 = vsub.f32 1.0, %v2204_v51  ;;  %v4932_v4 = vmul.f32 0.5, %v4828_v29  ;;  %v4935_v57 = vand.u32 2147483647, %v4921_v54  ;;  %v2393_v26 = vadd.f32 1.0, %v2329_v33  ;;  %6712 = vst [vmem:[#allocation18_spill] sm:$0xff] %v4954_v44 }
 0x1d9   : > { %6710 = vst [vmem:[#allocation17_spill] sm:$0xff] %v4929_v9  ;;  %v2270_v42 = vsub.f32 1.0, %v2206_v43  ;;  %v1759_v61 = vmul.f32 %v4849_v40, %v1695_v38  ;;  %3700 = vrcp.f32 %v1249_v7  ;;  %v1885_v49 = vmul.f32 %v4817_v28, %v1821_v25  ;;  %v6711_v38 = vld [vmem:[#allocation19_spill] sm:$0xff] }
 0x1da   : > { %3702 = vpow2.f32 %v2096_v19  ;;  %vm994_vm1 = vcmp.ge.f32.partialorder %v4854_v12, 0.0  ;;  %v1187_v8 = vmul.f32 0.3275911, %v4935_v57  ;;  %v2331_v29 = vmul.f32 %v2267_v58, %v4772_v23 }
 0x1db   : > { %v4941_v37 = vpop.eup %3696  ;;  %v1696_v22 = vadd.f32 -0.28449672, %v1632_v39  ;;  %v1954_v41 = vsub.f32 0.0, %v4871_v47  ;;  %v4946_v33 = vmul.f32 0.70710677, %v4926_v11  ;;  %v2332_v51 = vmul.f32 %v2268_v60, %v4813_v62 }
 0x1dc   : > { %v1378_v43 = vmul.f32 1.0614054, %v4941_v37  ;;  %v1251_v28 = vadd.f32 1.0, %v1187_v8  ;;  %v4952_v12 = vadd.f32 %v6711_v38, %v4341_v1  ;;  %v2334_v34 = vmul.f32 %v2270_v42, %v4839_v56  ;;  %v4969_v42 = vpop.f32.mrb[20].mxu1 }
 0x1dd   : > { %v1823_v23 = vadd.f32 0.2548296, %v1759_v61  ;;  %v4958_v25 = vsel %vm994_vm1, 1.0, %v6688_v45  ;;  %v4961_v19 = vand.u32 2147483647, %v4946_v33  ;;  %v2205_v58 = vmul.f32 %v3695_v5, %v1885_v49  ;;  %6713 = vst [vmem:[#allocation19_spill] sm:$0xff] %v4969_v42 }
 0x1de   : > { %v1442_v62 = vadd.f32 -1.4531521, %v1378_v43  ;;  %v4964_v39 = vmul.f32 0.5, %v4875_v55  ;;  %3704 = vrcp.f32 %v1251_v28  ;;  %v2395_v7 = vadd.f32 1.0, %v2331_v29 }
 0x1df   : > { %v1760_v63 = vmul.f32 %v4884_v6, %v1696_v22  ;;  %v2018_v60 = vmul.f32 %v1954_v41, %v4871_v47  ;;  %v1188_v56 = vmul.f32 0.3275911, %v4961_v19  ;;  %v3699_v61 = vpop.eup %3698  ;;  %v2396_v8 = vadd.f32 1.0, %v2332_v51  ;;  %v6714_v22 = vld [vmem:[#allocation21_spill] sm:$0xff] }
 0x1e0   : > { %v1506_v38 = vmul.f32 %v4941_v37, %v1442_v62  ;;  %vm993_vm2 = vcmp.ge.f32.partialorder %v4891_v35, 0.0  ;;  %v4974_v5 = vmul.f32 0.70710677, %v4952_v12  ;;  %v2398_v55 = vadd.f32 1.0, %v2334_v34  ;;  %v3624_v62 = vld [vmem:[#allocation8 + $0x70] sm:$0xff]   ;;  %v5009_v35 = vpop.f32.mrb[21].mxu0 }
 0x1e1   : > { %v1887_v49 = vmul.f32 %v4849_v40, %v1823_v23  ;;  %v1252_v29 = vadd.f32 1.0, %v1188_v56  ;;  %v4979_v47 = vadd.f32 %v6714_v22, %v4343_v2  ;;  %v4982_v41 = vmul.f32 %v2393_v26, %v4709_v27  ;;  %v3625_v56 = vld [vmem:[#allocation8 + $0xf0] sm:$0xff]   ;;  %3337 = vmatprep.subr.bf16.mxu0 %v3624_v62  ;;  %6719 = vst [vmem:[#allocation38_spill] sm:$0xff] %v5009_v35 }
 0x1e2   : > { %v2269_v43 = vsub.f32 1.0, %v2205_v58  ;;  %v1570_v51 = vadd.f32 1.4214138, %v1506_v38  ;;  %v4985_v28 = vand.u32 2147483647, %v4974_v5  ;;  %v4990_v34 = vmul.f32 %v2395_v7, %v4753_v15  ;;  %3401 = vmatprep.subr.bf16.mxu1 %v3625_v56 }
 0x1e3   : > { %6715 = vst [vmem:[#allocation21_spill] sm:$0xff] %v4982_v41  ;;  %v4987_v9 = vpop.eup %3700  ;;  %v1824_v40 = vadd.f32 0.2548296, %v1760_v63  ;;  %v2100_v23 = vmul.f32 1.442695, %v2018_v60  ;;  %3706 = vrcp.f32 %v1252_v29  ;;  %v4995_v27 = vsel %vm993_vm2, 1.0, %v6688_v45 }
 0x1e4   : > { %6716 = vst [vmem:[#allocation35_spill] sm:$0xff] %v4990_v34  ;;  %v3703_v22 = vpop.eup %3702  ;;  %v1377_v26 = vmul.f32 1.0614054, %v4987_v9  ;;  %v1953_v58 = vsub.f32 0.0, %v4911_v53  ;;  %v1190_v38 = vmul.f32 0.3275911, %v4985_v28  ;;  %v5001_v15 = vmul.f32 %v2396_v8, %v4775_v50 }
 0x1e5   : > { %v5004_v7 = vmul.f32 %v2398_v55, %v4799_v52  ;;  %v2207_v63 = vmul.f32 %v3699_v61, %v1887_v49  ;;  %v5007_v60 = vmul.f32 0.70710677, %v4979_v47  ;;  %v2333_v29 = vmul.f32 %v2269_v43, %v4847_v59  ;;  %v6720_v52 = vld [vmem:[#allocation22_spill] sm:$0xff] }
 0x1e6   : > { %6717 = vst [vmem:[#allocation36_spill] sm:$0xff] %v5001_v15  ;;  %v1634_v20 = vmul.f32 %v4941_v37, %v1570_v51  ;;  %v1441_v34 = vadd.f32 -1.4531521, %v1377_v26  ;;  %v1254_v41 = vadd.f32 1.0, %v1190_v38  ;;  %v1888_v62 = vmul.f32 %v4884_v6, %v1824_v40 }
 0x1e7   : > { %6718 = vst [vmem:[#allocation37_spill] sm:$0xff] %v5004_v7  ;;  %3708 = vpow2.f32 %v2100_v23  ;;  %v5015_v50 = vand.u32 2147483647, %v5007_v60  ;;  %v5019_v61 = vadd.f32 %v6720_v52, %v4345_v3  ;;  %v2017_v59 = vmul.f32 %v1953_v58, %v4911_v53  ;;  %v3626_v7 = vld [vmem:[#allocation8 + $0x30] sm:$0xff]  }
 0x1e8   : > { %v5021_v8 = vpop.eup %3704  ;;  %v1505_v55 = vmul.f32 %v4987_v9, %v1441_v34  ;;  %v1955_v49 = vsub.f32 0.0, %v4935_v57  ;;  %3710 = vrcp.f32 %v1254_v41  ;;  %v2271_v43 = vsub.f32 1.0, %v2207_v63  ;;  %3338 = vmatpush3.bf16.msra.mxu0 %v3626_v7 }
 0x1e9   : > { %v5027_v6 = vmul.f32 0.5, %v4904_v14  ;;  %v1379_v51 = vmul.f32 1.0614054, %v5021_v8  ;;  %v1189_v40 = vmul.f32 0.3275911, %v5015_v50  ;;  %v2397_v23 = vadd.f32 1.0, %v2333_v29 }
 0x1ea   : > { %v1698_v56 = vadd.f32 -0.28449672, %v1634_v20  ;;  %v1569_v26 = vadd.f32 1.4214138, %v1505_v55  ;;  %vm995_vm3 = vcmp.ge.f32.partialorder %v4921_v54, 0.0  ;;  %v2208_v38 = vmul.f32 %v3703_v22, %v1888_v62  ;;  %v3627_v29 = vld [vmem:[#allocation8 + $0xb0] sm:$0xff]  }
 0x1eb   : > { %v1443_v34 = vadd.f32 -1.4531521, %v1379_v51  ;;  %v1253_v52 = vadd.f32 1.0, %v1189_v40  ;;  %v5033_v53 = vmul.f32 0.70710677, %v5019_v61  ;;  %v2019_v14 = vmul.f32 %v1955_v49, %v4935_v57  ;;  %v5040_v20 = vpop.f32.mrb[21].mxu1  ;;  %3402 = vmatpush3.bf16.msra.mxu1 %v3627_v29 }
 0x1ec   : > { %v1633_v41 = vmul.f32 %v4987_v9, %v1569_v26  ;;  %v2098_v58 = vmul.f32 1.442695, %v2017_v59  ;;  %v5038_v63 = vmul.f32 0.5, %v4926_v11  ;;  %6721 = vst [vmem:[#allocation22_spill] sm:$0xff] %v5040_v20  ;;  %v2335_v22 = vmul.f32 %v2271_v43, %v4868_v48  ;;  %v6722_v49 = vld [vmem:[#allocation23_spill] sm:$0xff] }
 0x1ed   : > { %v5042_v55 = vpop.eup %3706  ;;  %v1507_v62 = vmul.f32 %v5021_v8, %v1443_v34  ;;  %3712 = vrcp.f32 %v1253_v52  ;;  %v5047_v51 = vand.u32 2147483647, %v5033_v53  ;;  %v5052_v57 = vsel %vm995_vm3, 1.0, %v6688_v45 }
 0x1ee   : > { %v1380_v11 = vmul.f32 1.0614054, %v5042_v55  ;;  %v1956_v59 = vsub.f32 0.0, %v4961_v19  ;;  %v5058_v40 = vadd.f32 %v6722_v49, %v4339_v0  ;;  %v5061_v48 = vmul.f32 %v2397_v23, %v4842_v16 }
 0x1ef   : > { %v2272_v43 = vsub.f32 1.0, %v2208_v38  ;;  %v1762_v26 = vmul.f32 %v4941_v37, %v1698_v56  ;;  %v1191_v54 = vmul.f32 0.3275911, %v5047_v51  ;;  %v1697_v34 = vadd.f32 -0.28449672, %v1633_v41 }
 0x1f0   : > { %6723 = vst [vmem:[#allocation23_spill] sm:$0xff] %v5061_v48  ;;  %3714 = vpow2.f32 %v2098_v58  ;;  %v1571_v52 = vadd.f32 1.4214138, %v1507_v62  ;;  %v1444_v15 = vadd.f32 -1.4531521, %v1380_v11  ;;  %v2399_v35 = vadd.f32 1.0, %v2335_v22 }
 0x1f1   : > { %v3709_v20 = vpop.eup %3708  ;;  %v2102_v42 = vmul.f32 1.442695, %v2019_v14  ;;  %vm996_vm4 = vcmp.ge.f32.partialorder %v4946_v33, 0.0  ;;  %v1255_v49 = vadd.f32 1.0, %v1191_v54  ;;  %v2020_v23 = vmul.f32 %v1956_v59, %v4961_v19  ;;  %v5087_v11 = vpop.f32.mrb[22].mxu0 }
 0x1f2   : > { %v5066_v7 = vpop.eup %3710  ;;  %v1508_v16 = vmul.f32 %v5042_v55, %v1444_v15  ;;  %v1958_v56 = vsub.f32 0.0, %v4985_v28  ;;  %v5072_v38 = vmul.f32 0.70710677, %v5058_v40  ;;  %v2336_v41 = vmul.f32 %v2272_v43, %v4917_v24  ;;  %6724 = vst [vmem:[#allocation39_spill] sm:$0xff] %v5087_v11 }
 0x1f3   : > { %v1826_v58 = vadd.f32 0.2548296, %v1762_v26  ;;  %v1382_v29 = vmul.f32 1.0614054, %v5066_v7  ;;  %3716 = vrcp.f32 %v1255_v49  ;;  %v1761_v14 = vmul.f32 %v4987_v9, %v1697_v34 }
 0x1f4   : > { %v1635_v22 = vmul.f32 %v5021_v8, %v1571_v52  ;;  %v5079_v62 = vmul.f32 0.5, %v4952_v12  ;;  %vm998_vm5 = vcmp.ge.f32.partialorder %v4974_v5, 0.0  ;;  %3718 = vpow2.f32 %v2102_v42 }
 0x1f5   : > { %v5085_v19 = vsel %vm996_vm4, 1.0, %v6688_v45  ;;  %v1572_v24 = vadd.f32 1.4214138, %v1508_v16  ;;  %v1446_v15 = vadd.f32 -1.4531521, %v1382_v29  ;;  %v5090_v59 = vmul.f32 %v2399_v35, %v4862_v10  ;;  %v6726_v35 = vld [vmem:[#allocation24_spill] sm:$0xff] }
 0x1f6   : > { %v2104_v43 = vmul.f32 1.442695, %v2020_v23  ;;  %v2022_v26 = vmul.f32 %v1958_v56, %v4985_v28  ;;  %v5094_v12 = vand.u32 2147483647, %v5072_v38  ;;  %v2400_v42 = vadd.f32 1.0, %v2336_v41 }
 0x1f7   : > { %6725 = vst [vmem:[#allocation40_spill] sm:$0xff] %v5090_v59  ;;  %v5096_v5 = vpop.eup %3712  ;;  %v1890_v33 = vmul.f32 %v4941_v37, %v1826_v58  ;;  %v5100_v54 = vsel %vm998_vm5, 1.0, %v6688_v45  ;;  %v1510_v34 = vmul.f32 %v5066_v7, %v1446_v15  ;;  %v1825_v52 = vadd.f32 0.2548296, %v1761_v14  ;;  %v5112_v14 = vpop.f32.mrb[22].mxu1 }
 0x1f8   : > { %v1699_v49 = vadd.f32 -0.28449672, %v1635_v22  ;;  %v1381_v10 = vmul.f32 1.0614054, %v5096_v5  ;;  %v5106_v28 = vadd.f32 %v6726_v35, %v4341_v1  ;;  %v1636_v16 = vmul.f32 %v5042_v55, %v1572_v24  ;;  %6727 = vst [vmem:[#allocation24_spill] sm:$0xff] %v5112_v14 }
 0x1f9   : > { %v1574_v23 = vadd.f32 1.4214138, %v1510_v34  ;;  %v1957_v56 = vsub.f32 0.0, %v5015_v50  ;;  %v1192_v37 = vmul.f32 0.3275911, %v5094_v12  ;;  %3720 = vpow2.f32 %v2104_v43 }
 0x1fa   : > { %v3715_v41 = vpop.eup %3714  ;;  %v2108_v58 = vmul.f32 1.442695, %v2022_v26  ;;  %vm997_vm6 = vcmp.ge.f32.partialorder %v5007_v60, 0.0  ;;  %v1445_v29 = vadd.f32 -1.4531521, %v1381_v10  ;;  %v2210_v22 = vmul.f32 %v3709_v20, %v1890_v33  ;;  %v6728_v20 = vld [vmem:[#allocation25_spill] sm:$0xff] }
 0x1fb   : > { %v1638_v15 = vmul.f32 %v5066_v7, %v1574_v23  ;;  %v1959_v35 = vsub.f32 0.0, %v5047_v51  ;;  %v1256_v59 = vadd.f32 1.0, %v1192_v37  ;;  %v1889_v24 = vmul.f32 %v4987_v9, %v1825_v52 }
 0x1fc   : > { %v1763_v34 = vmul.f32 %v5021_v8, %v1699_v49  ;;  %v1509_v48 = vmul.f32 %v5096_v5, %v1445_v29  ;;  %v5120_v43 = vmul.f32 0.70710677, %v5106_v28  ;;  %v1700_v10 = vadd.f32 -0.28449672, %v1636_v16 }
 0x1fd   : > { %v5122_v26 = vpop.eup %3716  ;;  %v2021_v14 = vmul.f32 %v1957_v56, %v5015_v50  ;;  %3722 = vrcp.f32 %v1256_v59  ;;  %v5127_v33 = vadd.f32 %v6728_v20, %v4343_v2  ;;  %v5130_v23 = vmul.f32 %v2400_v42, %v4907_v18 }
 0x1fe   : > { %v5133_v9 = vmul.f32 0.5, %v4979_v47  ;;  %v1573_v52 = vadd.f32 1.4214138, %v1509_v48  ;;  %v1383_v49 = vmul.f32 1.0614054, %v5122_v26  ;;  %v3719_v37 = vpop.eup %3718  ;;  %v2274_v29 = vsub.f32 1.0, %v2210_v22 }
 0x1ff   : > { %6729 = vst [vmem:[#allocation25_spill] sm:$0xff] %v5130_v23  ;;  %v1702_v11 = vadd.f32 -0.28449672, %v1638_v15  ;;  %v5139_v50 = vsel %vm997_vm6, 1.0, %v6688_v45  ;;  %v2023_v59 = vmul.f32 %v1959_v35, %v5047_v51  ;;  %v2209_v16 = vmul.f32 %v3715_v41, %v1889_v24  ;;  %v5155_v35 = vpop.f32.mrb[23].mxu0 }
 0x200   : > { %v1827_v56 = vadd.f32 0.2548296, %v1763_v34  ;;  %v1447_v18 = vadd.f32 -1.4531521, %v1383_v49  ;;  %v5143_v42 = vand.u32 2147483647, %v5120_v43  ;;  %v1764_v47 = vmul.f32 %v5042_v55, %v1700_v10 }
 0x201   : > { %3724 = vpow2.f32 %v2108_v58  ;;  %v2106_v48 = vmul.f32 1.442695, %v2021_v14  ;;  %v5147_v22 = vmul.f32 0.70710677, %v5127_v33  ;;  %v1637_v15 = vmul.f32 %v5096_v5, %v1573_v52  ;;  %6730 = vst [vmem:[#allocation41_spill] sm:$0xff] %v5155_v35 }
 0x202   : > { %v5151_v60 = vmul.f32 0.5, %v5019_v61  ;;  %v1511_v51 = vmul.f32 %v5122_v26, %v1447_v18  ;;  %v1194_v41 = vmul.f32 0.3275911, %v5143_v42  ;;  %v2338_v24 = vmul.f32 %v2274_v29, %v4958_v25 }
 0x203   : > { %v1766_v34 = vmul.f32 %v5066_v7, %v1702_v11  ;;  %vm999_vm7 = vcmp.ge.f32.partialorder %v5033_v53, 0.0  ;;  %v2110_v58 = vmul.f32 1.442695, %v2023_v59  ;;  %v3721_v14 = vpop.eup %3720  ;;  %v2273_v10 = vsub.f32 1.0, %v2209_v16 }
 0x204   : > { %v1891_v20 = vmul.f32 %v5021_v8, %v1827_v56  ;;  %v1575_v52 = vadd.f32 1.4214138, %v1511_v51  ;;  %v1258_v61 = vadd.f32 1.0, %v1194_v41  ;;  %v1828_v49 = vadd.f32 0.2548296, %v1764_v47 }
 0x205   : > { %3726 = vpow2.f32 %v2106_v48  ;;  %v1960_v18 = vsub.f32 0.0, %v5094_v12  ;;  %v5163_v23 = vand.u32 2147483647, %v5147_v22  ;;  %v1701_v35 = vadd.f32 -0.28449672, %v1637_v15  ;;  %v5178_v15 = vpop.f32.mrb[23].mxu1 }
 0x206   : > { %v5166_v25 = vsel %vm999_vm7, 1.0, %v6688_v45  ;;  %v1639_v53 = vmul.f32 %v5122_v26, %v1575_v52  ;;  %3728 = vrcp.f32 %v1258_v61  ;;  %v2402_v29 = vadd.f32 1.0, %v2338_v24  ;;  %6731 = vst [vmem:[#allocation42_spill] sm:$0xff] %v5178_v15  ;;  %v6732_v61 = vld [vmem:[#allocation26_spill] sm:$0xff] }
 0x207   : > { %v5169_v11 = vpop.eup %3722  ;;  %v1830_v8 = vadd.f32 0.2548296, %v1766_v34  ;;  %v5172_v59 = vmul.f32 0.5, %v5058_v40  ;;  %v1193_v16 = vmul.f32 0.3275911, %v5163_v23  ;;  %v2337_v56 = vmul.f32 %v2273_v10, %v4995_v27 }
 0x208   : > { %v2211_v47 = vmul.f32 %v3719_v37, %v1891_v20  ;;  %vm1000_vm8 = vcmp.ge.f32.partialorder %v5072_v38, 0.0  ;;  %v1384_v48 = vmul.f32 1.0614054, %v5169_v11  ;;  %v1892_v51 = vmul.f32 %v5042_v55, %v1828_v49  ;;  %v6733_v55 = vld [vmem:[#allocation27_spill] sm:$0xff] }
 0x209   : > { %3730 = vpow2.f32 %v2110_v58  ;;  %v2024_v41 = vmul.f32 %v1960_v18, %v5094_v12  ;;  %v1257_v24 = vadd.f32 1.0, %v1193_v16  ;;  %v1765_v40 = vmul.f32 %v5096_v5, %v1701_v35 }
 0x20a   : > { %v1703_v34 = vadd.f32 -0.28449672, %v1639_v53  ;;  %v1448_v52 = vadd.f32 -1.4531521, %v1384_v48  ;;  %v5185_v27 = vadd.f32 %v6732_v61, %v4345_v3  ;;  %v1894_v38 = vmul.f32 %v5066_v7, %v1830_v8 }
 0x20b   : > { %v3725_v37 = vpop.eup %3724  ;;  %v5189_v10 = vsel %vm1000_vm8, 1.0, %v6688_v45  ;;  %3732 = vrcp.f32 %v1257_v24  ;;  %v5193_v58 = vadd.f32 %v6733_v55, %v4339_v0  ;;  %v5196_v12 = vmul.f32 %v2402_v29, %v4932_v4 }
 0x20c   : > { %v2401_v35 = vadd.f32 1.0, %v2337_v56  ;;  %v2275_v20 = vsub.f32 1.0, %v2211_v47  ;;  %v1512_v49 = vmul.f32 %v5169_v11, %v1448_v52  ;;  %v2212_v18 = vmul.f32 %v3721_v14, %v1892_v51 }
 0x20d   : > { %6734 = vst [vmem:[#allocation26_spill] sm:$0xff] %v5196_v12  ;;  %v2112_v53 = vmul.f32 1.442695, %v2024_v41  ;;  %v5200_v16 = vmul.f32 0.5, %v5106_v28  ;;  %v5203_v7 = vmul.f32 0.70710677, %v5185_v27  ;;  %v1767_v48 = vmul.f32 %v5122_v26, %v1703_v34 }
 0x20e   : > { %v1829_v8 = vadd.f32 0.2548296, %v1765_v40  ;;  %v1576_v24 = vadd.f32 1.4214138, %v1512_v49  ;;  %v1962_v61 = vsub.f32 0.0, %v5143_v42  ;;  %v2214_v29 = vmul.f32 %v3725_v37, %v1894_v38 }
 0x20f   : > { %v3727_v4 = vpop.eup %3726  ;;  %vm1002_vm9 = vcmp.ge.f32.partialorder %v5120_v43, 0.0  ;;  %v5209_v56 = vand.u32 2147483647, %v5203_v7  ;;  %v5212_v14 = vmul.f32 0.70710677, %v5193_v58  ;;  %v5217_v47 = vmul.f32 %v2401_v35, %v4964_v39 }
 0x210   : > { %v5214_v28 = vpop.eup %3728  ;;  %v2339_v51 = vmul.f32 %v2275_v20, %v5052_v57  ;;  %v1640_v41 = vmul.f32 %v5169_v11, %v1576_v24  ;;  %v1961_v40 = vsub.f32 0.0, %v5163_v23  ;;  %3734 = vpow2.f32 %v2112_v53  ;;  %v5230_v57 = vpop.f32.mrb[24].mxu0 }
 0x211   : > { %6735 = vst [vmem:[#allocation27_spill] sm:$0xff] %v5217_v47  ;;  %v1386_v34 = vmul.f32 1.0614054, %v5214_v28  ;;  %v1195_v52 = vmul.f32 0.3275911, %v5209_v56  ;;  %v5226_v37 = vadd.f32 %v4564_v13, %v4341_v1  ;;  %v2276_v38 = vsub.f32 1.0, %v2212_v18 }
 0x212   : > { %v1893_v55 = vmul.f32 %v5096_v5, %v1829_v8  ;;  %v1831_v39 = vadd.f32 0.2548296, %v1767_v48  ;;  %v2026_v35 = vmul.f32 %v1962_v61, %v5143_v42  ;;  %6736 = vst [vmem:[#allocation43_spill] sm:$0xff] %v5230_v57  ;;  %v2278_v49 = vsub.f32 1.0, %v2214_v29  ;;  %v3628_v18 = vld [vmem:[#allocation8 + $0x78] sm:$0xff]  }
 0x213   : > { %v3731_v20 = vpop.eup %3730  ;;  %v1450_v24 = vadd.f32 -1.4531521, %v1386_v34  ;;  %v1259_v53 = vadd.f32 1.0, %v1195_v52  ;;  %v5233_v12 = vand.u32 2147483647, %v5212_v14  ;;  %v2403_v47 = vadd.f32 1.0, %v2339_v51  ;;  %3339 = vmatprep.subr.bf16.mxu0 %v3628_v18 }
 0x214   : > { %v1704_v15 = vadd.f32 -0.28449672, %v1640_v41  ;;  %v5238_v13 = vsel %vm1002_vm9, 1.0, %v6688_v45  ;;  %v2025_v5 = vmul.f32 %v1961_v40, %v5163_v23  ;;  %v3629_v42 = vld [vmem:[#allocation8 + $0xf8] sm:$0xff]   ;;  %v5246_v29 = vmul.f32 0.70710677, %v5226_v37 }
 0x215   : > { %v5241_v8 = vpop.eup %3732  ;;  %v1514_v48 = vmul.f32 %v5214_v28, %v1450_v24  ;;  %3736 = vrcp.f32 %v1259_v53  ;;  %v1196_v61 = vmul.f32 0.3275911, %v5233_v12  ;;  %v5248_v51 = vpop.f32.mrb[24].mxu1  ;;  %v2213_v41 = vmul.f32 %v3727_v4, %v1893_v55  ;;  %3403 = vmatprep.subr.bf16.mxu1 %v3629_v42 }
 0x216   : > { %v1895_v43 = vmul.f32 %v5122_v26, %v1831_v39  ;;  %vm1001_vm10 = vcmp.ge.f32.partialorder %v5147_v22, 0.0  ;;  %v1385_v23 = vmul.f32 1.0614054, %v5241_v8  ;;  %v2340_v40 = vmul.f32 %v2276_v38, %v5085_v19  ;;  %v3630_v22 = vld [vmem:[#allocation8 + $0x38] sm:$0xff]  }
 0x217   : > { %v2342_v34 = vmul.f32 %v2278_v49, %v5100_v54  ;;  %v2116_v52 = vmul.f32 1.442695, %v2026_v35  ;;  %v1260_v24 = vadd.f32 1.0, %v1196_v61  ;;  %v1768_v53 = vmul.f32 %v5169_v11, %v1704_v15  ;;  %v3631_v61 = vld [vmem:[#allocation8 + $0xb8] sm:$0xff]   ;;  %3340 = vmatpush3.bf16.msra.mxu0 %v3630_v22 }
 0x218   : > { %v1578_v57 = vadd.f32 1.4214138, %v1514_v48  ;;  %v1449_v44 = vadd.f32 -1.4531521, %v1385_v23  ;;  %v5258_v4 = vadd.f32 %v4591_v46, %v4343_v2  ;;  %v5261_v26 = vmul.f32 0.5, %v5127_v33  ;;  %3404 = vmatpush3.bf16.msra.mxu1 %v3631_v61 }
 0x219   : > { %v2114_v55 = vmul.f32 1.442695, %v2025_v5  ;;  %3738 = vrcp.f32 %v1260_v24  ;;  %v5264_v39 = vand.u32 2147483647, %v5246_v29  ;;  %v5267_v19 = vmul.f32 %v2403_v47, %v5027_v6  ;;  %v5276_v5 = vpop.f32.mrb[25].mxu0 }
 0x21a   : > { %v2277_v54 = vsub.f32 1.0, %v2213_v41  ;;  %v2215_v38 = vmul.f32 %v3731_v20, %v1895_v43  ;;  %v1513_v15 = vmul.f32 %v5241_v8, %v1449_v44  ;;  %v3735_v35 = vpop.eup %3734  ;;  %v2404_v49 = vadd.f32 1.0, %v2340_v40 }
 0x21b   : > { %6737 = vst [vmem:[#allocation44_spill] sm:$0xff] %v5267_v19  ;;  %v2406_v18 = vadd.f32 1.0, %v2342_v34  ;;  %v5273_v46 = vsel %vm1001_vm10, 1.0, %v6688_v45  ;;  %v1198_v33 = vmul.f32 0.3275911, %v5264_v39  ;;  %v1642_v6 = vmul.f32 %v5214_v28, %v1578_v57 }
 0x21c   : > { %v1832_v42 = vadd.f32 0.2548296, %v1768_v53  ;;  %3740 = vpow2.f32 %v2116_v52  ;;  %v5280_v47 = vmul.f32 0.70710677, %v5258_v4  ;;  %v1577_v44 = vadd.f32 1.4214138, %v1513_v15 }
 0x21d   : > { %3742 = vpow2.f32 %v2114_v55  ;;  %v1262_v20 = vadd.f32 1.0, %v1198_v33  ;;  %v5284_v48 = vadd.f32 %v4609_v30, %v4345_v3  ;;  %v2341_v41 = vmul.f32 %v2277_v54, %v5139_v50 }
 0x21e   : > { %v2279_v43 = vsub.f32 1.0, %v2215_v38  ;;  %v1963_v23 = vsub.f32 0.0, %v5209_v56  ;;  %v5289_v57 = vand.u32 2147483647, %v5280_v47  ;;  %v5294_v34 = vmul.f32 %v2404_v49, %v5038_v63  ;;  %v5315_v49 = vpop.f32.mrb[25].mxu1 }
 0x21f   : > { %v5291_v40 = vpop.eup %3736  ;;  %v5297_v52 = vmul.f32 %v2406_v18, %v5079_v62  ;;  %v5300_v30 = vmul.f32 0.5, %v5185_v27  ;;  %3744 = vrcp.f32 %v1262_v20  ;;  %v1706_v50 = vadd.f32 -0.28449672, %v1642_v6 }
 0x220   : > { %6738 = vst [vmem:[#allocation45_spill] sm:$0xff] %v5294_v34  ;;  %vm1003_vm11 = vcmp.ge.f32.partialorder %v5203_v7, 0.0  ;;  %v1387_v24 = vmul.f32 1.0614054, %v5291_v40  ;;  %v5305_v53 = vmul.f32 0.5, %v5193_v58  ;;  %v1896_v63 = vmul.f32 %v5169_v11, %v1832_v42 }
 0x221   : > { %6739 = vst [vmem:[#allocation46_spill] sm:$0xff] %v5297_v52  ;;  %v1641_v55 = vmul.f32 %v5241_v8, %v1577_v44  ;;  %v1197_v62 = vmul.f32 0.3275911, %v5289_v57  ;;  %v5311_v27 = vmul.f32 0.70710677, %v5284_v48  ;;  %v2405_v54 = vadd.f32 1.0, %v2341_v41 }
 0x222   : > { %v2343_v38 = vmul.f32 %v2279_v43, %v5166_v25  ;;  %v1451_v15 = vadd.f32 -1.4531521, %v1387_v24  ;;  %v2027_v7 = vmul.f32 %v1963_v23, %v5209_v56  ;;  %v5320_v58 = vsel %vm1003_vm11, 1.0, %v6688_v45 }
 0x223   : > { %v5317_v18 = vpop.eup %3738  ;;  %vm1004_vm12 = vcmp.ge.f32.partialorder %v5212_v14, 0.0  ;;  %v1261_v11 = vadd.f32 1.0, %v1197_v62  ;;  %v5324_v33 = vand.u32 2147483647, %v5311_v27  ;;  %v1770_v42 = vmul.f32 %v5214_v28, %v1706_v50 }
 0x224   : > { %v1515_v25 = vmul.f32 %v5291_v40, %v1451_v15  ;;  %v1388_v6 = vmul.f32 1.0614054, %v5317_v18  ;;  %v1964_v56 = vsub.f32 0.0, %v5233_v12  ;;  %v2216_v44 = vmul.f32 %v3735_v35, %v1896_v63 }
 0x225   : > { %v1705_v20 = vadd.f32 -0.28449672, %v1641_v55  ;;  %3746 = vrcp.f32 %v1261_v11  ;;  %v1199_v22 = vmul.f32 0.3275911, %v5324_v33  ;;  %v5332_v41 = vmul.f32 %v2405_v54, %v5133_v9 }
 0x226   : > { %v3741_v61 = vpop.eup %3740  ;;  %v2407_v43 = vadd.f32 1.0, %v2343_v38  ;;  %v2118_v23 = vmul.f32 1.442695, %v2027_v7  ;;  %v1452_v24 = vadd.f32 -1.4531521, %v1388_v6  ;;  %v5339_v15 = vsel %vm1004_vm12, 1.0, %v6688_v45 }
 0x227   : > { %6740 = vst [vmem:[#allocation47_spill] sm:$0xff] %v5332_v41  ;;  %v5334_v62 = vpop.eup %3742  ;;  %v1579_v50 = vadd.f32 1.4214138, %v1515_v25  ;;  %v1263_v35 = vadd.f32 1.0, %v1199_v22  ;;  %v5343_v63 = vadd.f32 %v4670_v31, %v4339_v0  ;;  %v1834_v55 = vadd.f32 0.2548296, %v1770_v42 }
 0x228   : > { %v1516_v9 = vmul.f32 %v5317_v18, %v1452_v24  ;;  %v2028_v54 = vmul.f32 %v1964_v56, %v5233_v12  ;;  %v1966_v38 = vsub.f32 0.0, %v5264_v39  ;;  %v2280_v11 = vsub.f32 1.0, %v2216_v44  ;;  %v5372_v22 = vpop.f32.mrb[26].mxu0 }
 0x229   : > { %v5348_v7 = vpop.eup %3744  ;;  %v1769_v25 = vmul.f32 %v5241_v8, %v1705_v20  ;;  %vm1006_vm13 = vcmp.ge.f32.partialorder %v5246_v29, 0.0  ;;  %3748 = vrcp.f32 %v1263_v35  ;;  %v5353_v14 = vmul.f32 %v2407_v43, %v5151_v60  ;;  %v5424_v41 = vpop.f32.mrb[27].mxu0 }
 0x22a   : > { %3750 = vpow2.f32 %v2118_v23  ;;  %v5356_v31 = vmul.f32 0.5, %v5226_v37  ;;  %v5360_v12 = vadd.f32 %v4702_v17, %v4341_v1  ;;  %v1643_v42 = vmul.f32 %v5291_v40, %v1579_v50 }
 0x22b   : > { %6741 = vst [vmem:[#allocation48_spill] sm:$0xff] %v5353_v14  ;;  %v1580_v6 = vadd.f32 1.4214138, %v1516_v9  ;;  %v1390_v56 = vmul.f32 1.0614054, %v5348_v7  ;;  %v1898_v29 = vmul.f32 %v5214_v28, %v1834_v55  ;;  %v5369_v20 = vsel %vm1006_vm13, 1.0, %v6688_v45 }
 0x22c   : > { %v5365_v44 = vmul.f32 0.70710677, %v5343_v63  ;;  %v2120_v60 = vmul.f32 1.442695, %v2028_v54  ;;  %v2030_v37 = vmul.f32 %v1966_v38, %v5264_v39  ;;  %v2344_v17 = vmul.f32 %v2280_v11, %v5189_v10 }
 0x22d   : > { %v1833_v43 = vadd.f32 0.2548296, %v1769_v25  ;;  %v1454_v23 = vadd.f32 -1.4531521, %v1390_v56  ;;  %v5379_v50 = vmul.f32 0.5, %v5258_v4  ;;  %vm1005_vm14 = vcmp.ge.f32.partialorder %v5280_v47, 0.0 }
 0x22e   : > { %v5376_v24 = vand.u32 2147483647, %v5365_v44  ;;  %v5383_v28 = vmul.f32 0.5, %v5284_v48  ;;  %v5386_v35 = vmul.f32 0.70710677, %v5360_v12  ;;  %v1644_v10 = vmul.f32 %v5317_v18, %v1580_v6  ;;  %v5395_v48 = vpop.f32.mrb[26].mxu1 }
 0x22f   : > { %v5388_v39 = vpop.eup %3746  ;;  %v1707_v55 = vadd.f32 -0.28449672, %v1643_v42  ;;  %v1518_v9 = vmul.f32 %v5348_v7, %v1454_v23  ;;  %v2218_v38 = vmul.f32 %v3741_v61, %v1898_v29  ;;  %v2124_v4 = vmul.f32 1.442695, %v2030_v37 }
 0x230   : > { %v1200_v54 = vmul.f32 0.3275911, %v5376_v24  ;;  %v1389_v11 = vmul.f32 1.0614054, %v5388_v39  ;;  %v1965_v47 = vsub.f32 0.0, %v5289_v57  ;;  %v2408_v25 = vadd.f32 1.0, %v2344_v17 }
 0x231   : > { %v1897_v56 = vmul.f32 %v5241_v8, %v1833_v43  ;;  %v5399_v52 = vsel %vm1005_vm14, 1.0, %v6688_v45  ;;  %3752 = vpow2.f32 %v2120_v60  ;;  %v1582_v6 = vadd.f32 1.4214138, %v1518_v9 }
 0x232   : > { %v1264_v42 = vadd.f32 1.0, %v1200_v54  ;;  %v1453_v23 = vadd.f32 -1.4531521, %v1389_v11  ;;  %v5402_v34 = vand.u32 2147483647, %v5386_v35  ;;  %v1771_v29 = vmul.f32 %v5291_v40, %v1707_v55 }
 0x233   : > { %v5404_v61 = vpop.eup %3748  ;;  %v1708_v37 = vadd.f32 -0.28449672, %v1644_v10  ;;  %v1967_v14 = vsub.f32 0.0, %v5324_v33  ;;  %v2282_v8 = vsub.f32 1.0, %v2218_v38  ;;  %v2029_v54 = vmul.f32 %v1965_v47, %v5289_v57 }
 0x234   : > { %3754 = vrcp.f32 %v1264_v42  ;;  %v3751_v17 = vpop.eup %3750  ;;  %v1517_v43 = vmul.f32 %v5388_v39, %v1453_v23  ;;  %v1391_v60 = vmul.f32 1.0614054, %v5404_v61  ;;  %v2217_v9 = vmul.f32 %v5334_v62, %v1897_v56 }
 0x235   : > { %3756 = vpow2.f32 %v2124_v4  ;;  %v1202_v11 = vmul.f32 0.3275911, %v5402_v34  ;;  %v5415_v55 = vadd.f32 %v4739_v32, %v4343_v2  ;;  %v1646_v10 = vmul.f32 %v5348_v7, %v1582_v6 }
 0x236   : > { %v1581_v42 = vadd.f32 1.4214138, %v1517_v43  ;;  %vm1007_vm15 = vcmp.ge.f32.partialorder %v5311_v27, 0.0  ;;  %v1455_v38 = vadd.f32 -1.4531521, %v1391_v60  ;;  %v1772_v57 = vmul.f32 %v5317_v18, %v1708_v37 }
 0x237   : > { %v1835_v23 = vadd.f32 0.2548296, %v1771_v29  ;;  %v2031_v47 = vmul.f32 %v1967_v14, %v5324_v33  ;;  %v1266_v19 = vadd.f32 1.0, %v1202_v11  ;;  %v2346_v62 = vmul.f32 %v2282_v8, %v5238_v13 }
 0x238   : > { %v1645_v4 = vmul.f32 %v5388_v39, %v1581_v42  ;;  %v2122_v56 = vmul.f32 1.442695, %v2029_v54  ;;  %v1519_v32 = vmul.f32 %v5404_v61, %v1455_v38  ;;  %v5427_v6 = vmul.f32 %v2408_v25, %v5172_v59 }
 0x239   : > { %v2281_v43 = vsub.f32 1.0, %v2217_v9  ;;  %3758 = vrcp.f32 %v1266_v19  ;;  %v5430_v29 = vmul.f32 0.70710677, %v5415_v55  ;;  %v1710_v37 = vadd.f32 -0.28449672, %v1646_v10 }
 0x23a   : > { %6742 = vst [vmem:[#allocation49_spill] sm:$0xff] %v5427_v6  ;;  %v5435_v13 = vsel %vm1007_vm15, 1.0, %v6688_v45  ;;  %v1583_v33 = vadd.f32 1.4214138, %v1519_v32  ;;  %v1968_v14 = vsub.f32 0.0, %v5376_v24  ;;  %v1899_v8 = vmul.f32 %v5291_v40, %v1835_v23  ;;  %v5456_v23 = vpop.f32.mrb[27].mxu1 }
 0x23b   : > { %v1836_v54 = vadd.f32 0.2548296, %v1772_v57  ;;  %v2126_v60 = vmul.f32 1.442695, %v2031_v47  ;;  %v5440_v59 = vand.u32 2147483647, %v5430_v29  ;;  %v3753_v19 = vpop.eup %3752  ;;  %3760 = vpow2.f32 %v2122_v56 }
 0x23c   : > { %v2410_v25 = vadd.f32 1.0, %v2346_v62  ;;  %v1709_v9 = vadd.f32 -0.28449672, %v1645_v4  ;;  %v5443_v11 = vmul.f32 0.5, %v5343_v63  ;;  %v2345_v10 = vmul.f32 %v2281_v43, %v5273_v46 }
 0x23d   : > { %v5449_v42 = vmul.f32 0.5, %v5360_v12  ;;  %v1201_v40 = vmul.f32 0.3275911, %v5440_v59  ;;  %v5454_v38 = vadd.f32 %v4769_v21, %v4345_v3  ;;  %v1774_v57 = vmul.f32 %v5348_v7, %v1710_v37 }
 0x23e   : > { %v5445_v27 = vpop.eup %3754  ;;  %v1647_v63 = vmul.f32 %v5404_v61, %v1583_v33  ;;  %v2032_v62 = vmul.f32 %v1968_v14, %v5376_v24  ;;  %v2219_v4 = vmul.f32 %v3751_v17, %v1899_v8  ;;  %v1900_v12 = vmul.f32 %v5317_v18, %v1836_v54 }
 0x23f   : > { %v1392_v47 = vmul.f32 1.0614054, %v5445_v27  ;;  %v3757_v46 = vpop.eup %3756  ;;  %3762 = vpow2.f32 %v2126_v60  ;;  %v1265_v56 = vadd.f32 1.0, %v1201_v40  ;;  %v1773_v32 = vmul.f32 %v5388_v39, %v1709_v9  ;;  %v6744_v40 = vld [vmem:[#allocation33_spill] sm:$0xff] }
 0x240   : > { %v1970_v43 = vsub.f32 0.0, %v5402_v34  ;;  %v5466_v6 = vmul.f32 0.70710677, %v5454_v38  ;;  %v5469_v37 = vmul.f32 %v2410_v25, %v5200_v16  ;;  %v2409_v33 = vadd.f32 1.0, %v2345_v10 }
 0x241   : > { %v1456_v21 = vadd.f32 -1.4531521, %v1392_v47  ;;  %vm1008_vm0 = vcmp.ge.f32.partialorder %v5365_v44, 0.0  ;;  %3764 = vrcp.f32 %v1265_v56  ;;  %v1838_v24 = vadd.f32 0.2548296, %v1774_v57 }
 0x242   : > { %6743 = vst [vmem:[#allocation50_spill] sm:$0xff] %v5469_v37  ;;  %v1711_v17 = vadd.f32 -0.28449672, %v1647_v63  ;;  %v2128_v14 = vmul.f32 1.442695, %v2032_v62  ;;  %v2283_v54 = vsub.f32 1.0, %v2219_v4  ;;  %v2220_v60 = vmul.f32 %v3753_v19, %v1900_v12 }
 0x243   : > { %v1520_v18 = vmul.f32 %v5445_v27, %v1456_v21  ;;  %v5473_v8 = vpop.eup %3758  ;;  %v5476_v9 = vand.u32 2147483647, %v5466_v6  ;;  %v5480_v16 = vadd.f32 %v6744_v40, %v4339_v0  ;;  %v1837_v25 = vadd.f32 0.2548296, %v1773_v32 }
 0x244   : > { %v1394_v47 = vmul.f32 1.0614054, %v5473_v8  ;;  %v2034_v57 = vmul.f32 %v1970_v43, %v5402_v34  ;;  %v5485_v63 = vmul.f32 %v2409_v33, %v5261_v26  ;;  %v5490_v19 = vsel %vm1008_vm0, 1.0, %v6688_v45 }
 0x245   : > { %v1584_v10 = vadd.f32 1.4214138, %v1520_v18  ;;  %vm1010_vm1 = vcmp.ge.f32.partialorder %v5386_v35, 0.0  ;;  %v1203_v62 = vmul.f32 0.3275911, %v5476_v9  ;;  %v3761_v4 = vpop.eup %3760  ;;  %v1902_v12 = vmul.f32 %v5348_v7, %v1838_v24  ;;  %v6746_v24 = vld [vmem:[#allocation15_spill] sm:$0xff] }
 0x246   : > { %6745 = vst [vmem:[#allocation33_spill] sm:$0xff] %v5485_v63  ;;  %v1775_v56 = vmul.f32 %v5404_v61, %v1711_v17  ;;  %3766 = vpow2.f32 %v2128_v14  ;;  %v1458_v32 = vadd.f32 -1.4531521, %v1394_v47  ;;  %v2347_v34 = vmul.f32 %v2283_v54, %v5320_v58 }
 0x247   : > { %v2284_v26 = vsub.f32 1.0, %v2220_v60  ;;  %v1267_v21 = vadd.f32 1.0, %v1203_v62  ;;  %v5498_v43 = vmul.f32 0.70710677, %v5480_v16  ;;  %v1901_v44 = vmul.f32 %v5388_v39, %v1837_v25 }
 0x248   : > { %v1648_v33 = vmul.f32 %v5445_v27, %v1584_v10  ;;  %v1522_v18 = vmul.f32 %v5473_v8, %v1458_v32  ;;  %v2132_v40 = vmul.f32 1.442695, %v2034_v57  ;;  %v5506_v7 = vsel %vm1010_vm1, 1.0, %v6688_v45 }
 0x249   : > { %v3763_v37 = vpop.eup %3762  ;;  %3768 = vrcp.f32 %v1267_v21  ;;  %v5509_v58 = vand.u32 2147483647, %v5498_v43  ;;  %v5513_v17 = vadd.f32 %v6746_v24, %v4341_v1  ;;  %v2222_v39 = vmul.f32 %v3757_v46, %v1902_v12 }
 0x24a   : > { %v1839_v14 = vadd.f32 0.2548296, %v1775_v56  ;;  %v1586_v54 = vadd.f32 1.4214138, %v1522_v18  ;;  %v1969_v60 = vsub.f32 0.0, %v5440_v59  ;;  %v2411_v10 = vadd.f32 1.0, %v2347_v34 }
 0x24b   : > { %v5516_v25 = vpop.eup %3764  ;;  %v2348_v35 = vmul.f32 %v2284_v26, %v5339_v15  ;;  %v5520_v47 = vmul.f32 0.5, %v5415_v55  ;;  %v1204_v57 = vmul.f32 0.3275911, %v5509_v58  ;;  %v2221_v62 = vmul.f32 %v3761_v4, %v1901_v44  ;;  %v5531_v18 = vpop.f32.mrb[28].mxu0 }
 0x24c   : > { %v1712_v32 = vadd.f32 -0.28449672, %v1648_v33  ;;  %3770 = vpow2.f32 %v2132_v40  ;;  %v1393_v21 = vmul.f32 1.0614054, %v5516_v25  ;;  %v1650_v46 = vmul.f32 %v5473_v8, %v1586_v54  ;;  %v5533_v4 = vpop.f32.mrb[28].mxu1 }
 0x24d   : > { %vm1009_vm2 = vcmp.ge.f32.partialorder %v5430_v29, 0.0  ;;  %v1268_v12 = vadd.f32 1.0, %v1204_v57  ;;  %v5527_v56 = vmul.f32 0.70710677, %v5513_v17  ;;  %v2286_v34 = vsub.f32 1.0, %v2222_v39  ;;  %6747 = vst [vmem:[#allocation15_spill] sm:$0xff] %v5533_v4 }
 0x24e   : > { %v1903_v15 = vmul.f32 %v5404_v61, %v1839_v14  ;;  %v1457_v55 = vadd.f32 -1.4531521, %v1393_v21  ;;  %v2033_v26 = vmul.f32 %v1969_v60, %v5440_v59  ;;  %v5536_v44 = vmul.f32 %v2411_v10, %v5300_v30  ;;  %v6749_v10 = vld [vmem:[#allocation16_spill] sm:$0xff] }
 0x24f   : > { %v2412_v33 = vadd.f32 1.0, %v2348_v35  ;;  %3772 = vrcp.f32 %v1268_v12  ;;  %v5539_v40 = vand.u32 2147483647, %v5527_v56  ;;  %v2285_v54 = vsub.f32 1.0, %v2221_v62 }
 0x250   : > { %6748 = vst [vmem:[#allocation51_spill] sm:$0xff] %v5536_v44  ;;  %v3767_v24 = vpop.eup %3766  ;;  %v1776_v39 = vmul.f32 %v5445_v27, %v1712_v32  ;;  %v1521_v61 = vmul.f32 %v5516_v25, %v1457_v55  ;;  %v1971_v59 = vsub.f32 0.0, %v5476_v9  ;;  %v1714_v14 = vadd.f32 -0.28449672, %v1650_v46  ;;  %v5564_v44 = vpop.f32.mrb[29].mxu0 }
 0x251   : > { %v5547_v60 = vsel %vm1009_vm2, 1.0, %v6688_v45  ;;  %v1206_v30 = vmul.f32 0.3275911, %v5539_v40  ;;  %v5552_v35 = vadd.f32 %v6749_v10, %v4343_v2  ;;  %v2350_v57 = vmul.f32 %v2286_v34, %v5369_v20  ;;  %6751 = vst [vmem:[#allocation52_spill] sm:$0xff] %v5564_v44 }
 0x252   : > { %v2223_v62 = vmul.f32 %v3763_v37, %v1903_v15  ;;  %v2130_v32 = vmul.f32 1.442695, %v2033_v26  ;;  %vm1011_vm3 = vcmp.ge.f32.partialorder %v5466_v6, 0.0  ;;  %v5559_v46 = vmul.f32 %v2412_v33, %v5305_v53 }
 0x253   : > { %v5556_v21 = vpop.eup %3768  ;;  %v1585_v29 = vadd.f32 1.4214138, %v1521_v61  ;;  %v1270_v12 = vadd.f32 1.0, %v1206_v30  ;;  %v5562_v55 = vmul.f32 0.70710677, %v5552_v35  ;;  %v2349_v10 = vmul.f32 %v2285_v54, %v5399_v52 }
 0x254   : > { %6750 = vst [vmem:[#allocation16_spill] sm:$0xff] %v5559_v46  ;;  %v1840_v63 = vadd.f32 0.2548296, %v1776_v39  ;;  %v1395_v20 = vmul.f32 1.0614054, %v5556_v21  ;;  %v2035_v37 = vmul.f32 %v1971_v59, %v5476_v9  ;;  %v1778_v34 = vmul.f32 %v5473_v8, %v1714_v14 }
 0x255   : > { %3774 = vrcp.f32 %v1270_v12  ;;  %v5571_v53 = vand.u32 2147483647, %v5562_v55  ;;  %v5575_v15 = vadd.f32 %v4898_v36, %v4345_v3  ;;  %v2414_v33 = vadd.f32 1.0, %v2350_v57 }
 0x256   : > { %v3771_v26 = vpop.eup %3770  ;;  %v2287_v61 = vsub.f32 1.0, %v2223_v62  ;;  %v5578_v52 = vmul.f32 0.5, %v5454_v38  ;;  %v1459_v54 = vadd.f32 -1.4531521, %v1395_v20  ;;  %v1649_v39 = vmul.f32 %v5516_v25, %v1585_v29 }
 0x257   : > { %3776 = vpow2.f32 %v2130_v32  ;;  %v1972_v9 = vsub.f32 0.0, %v5509_v58  ;;  %v1205_v59 = vmul.f32 0.3275911, %v5571_v53  ;;  %v1904_v14 = vmul.f32 %v5445_v27, %v1840_v63 }
 0x258   : > { %v5587_v36 = vsel %vm1011_vm3, 1.0, %v6688_v45  ;;  %v1523_v30 = vmul.f32 %v5556_v21, %v1459_v54  ;;  %v2134_v57 = vmul.f32 1.442695, %v2035_v37  ;;  %v2413_v62 = vadd.f32 1.0, %v2349_v10  ;;  %v5604_v10 = vpop.f32.mrb[29].mxu1 }
 0x259   : > { %v5590_v38 = vpop.eup %3772  ;;  %v1842_v12 = vadd.f32 0.2548296, %v1778_v34  ;;  %v1269_v29 = vadd.f32 1.0, %v1205_v59  ;;  %v5593_v32 = vmul.f32 0.70710677, %v5575_v15  ;;  %v5596_v20 = vmul.f32 %v2414_v33, %v5356_v31  ;;  %6753 = vst [vmem:[#allocation54_spill] sm:$0xff] %v5604_v10 }
 0x25a   : > { %v2351_v27 = vmul.f32 %v2287_v61, %v5435_v13  ;;  %v1587_v63 = vadd.f32 1.4214138, %v1523_v30  ;;  %v1396_v6 = vmul.f32 1.0614054, %v5590_v38  ;;  %v1713_v46 = vadd.f32 -0.28449672, %v1649_v39 }
 0x25b   : > { %6752 = vst [vmem:[#allocation53_spill] sm:$0xff] %v5596_v20  ;;  %v2036_v54 = vmul.f32 %v1972_v9, %v5509_v58  ;;  %3778 = vrcp.f32 %v1269_v29  ;;  %v5602_v37 = vand.u32 2147483647, %v5593_v32  ;;  %v2224_v34 = vmul.f32 %v3767_v24, %v1904_v14 }
 0x25c   : > { %v5607_v59 = vmul.f32 0.5, %v5480_v16  ;;  %vm1012_vm4 = vcmp.ge.f32.partialorder %v5498_v43, 0.0  ;;  %v1460_v31 = vadd.f32 -1.4531521, %v1396_v6  ;;  %v5611_v13 = vmul.f32 %v2413_v62, %v5379_v50  ;;  %v6755_v50 = vld [vmem:[#allocation18_spill] sm:$0xff] }
 0x25d   : > { %v1906_v33 = vmul.f32 %v5473_v8, %v1842_v12  ;;  %3780 = vpow2.f32 %v2134_v57  ;;  %v1207_v58 = vmul.f32 0.3275911, %v5602_v37  ;;  %v2415_v61 = vadd.f32 1.0, %v2351_v27 }
 0x25e   : > { %6754 = vst [vmem:[#allocation55_spill] sm:$0xff] %v5611_v13  ;;  %v1651_v39 = vmul.f32 %v5556_v21, %v1587_v63  ;;  %v1524_v9 = vmul.f32 %v5590_v38, %v1460_v31  ;;  %v1974_v24 = vsub.f32 0.0, %v5539_v40  ;;  %v1777_v14 = vmul.f32 %v5516_v25, %v1713_v46 }
 0x25f   : > { %v5618_v16 = vpop.eup %3774  ;;  %v2136_v30 = vmul.f32 1.442695, %v2036_v54  ;;  %v1271_v29 = vadd.f32 1.0, %v1207_v58  ;;  %v5623_v62 = vadd.f32 %v6755_v50, %v4339_v0  ;;  %v2288_v8 = vsub.f32 1.0, %v2224_v34  ;;  %v6756_v54 = vld [vmem:[#allocation19_spill] sm:$0xff]  ;;  %v5638_v58 = vpop.f32.mrb[30].mxu0 }
 0x260   : > { %v5628_v57 = vsel %vm1012_vm4, 1.0, %v6688_v45  ;;  %v1588_v12 = vadd.f32 1.4214138, %v1524_v9  ;;  %v1398_v27 = vmul.f32 1.0614054, %v5618_v16  ;;  %v2226_v6 = vmul.f32 %v3771_v26, %v1906_v33  ;;  %6757 = vst [vmem:[#allocation18_spill] sm:$0xff] %v5638_v58 }
 0x261   : > { %v3777_v63 = vpop.eup %3776  ;;  %3782 = vrcp.f32 %v1271_v29  ;;  %v5632_v46 = vmul.f32 0.70710677, %v5623_v62  ;;  %v5636_v31 = vadd.f32 %v6756_v54, %v4341_v1  ;;  %v1715_v34 = vadd.f32 -0.28449672, %v1651_v39 }
 0x262   : > { %vm1014_vm5 = vcmp.ge.f32.partialorder %v5527_v56, 0.0  ;;  %v1462_v43 = vadd.f32 -1.4531521, %v1398_v27  ;;  %v2038_v9 = vmul.f32 %v1974_v24, %v5539_v40  ;;  %v5643_v50 = vmul.f32 %v2415_v61, %v5383_v28 }
 0x263   : > { %v1841_v26 = vadd.f32 0.2548296, %v1777_v14  ;;  %v5646_v33 = vmul.f32 0.5, %v5513_v17  ;;  %v5649_v29 = vand.u32 2147483647, %v5632_v46  ;;  %v2352_v54 = vmul.f32 %v2288_v8, %v5490_v19  ;;  %v5665_v8 = vpop.f32.mrb[30].mxu1 }
 0x264   : > { %6758 = vst [vmem:[#allocation19_spill] sm:$0xff] %v5643_v50  ;;  %v1652_v20 = vmul.f32 %v5590_v38, %v1588_v12  ;;  %v1526_v39 = vmul.f32 %v5618_v16, %v1462_v43  ;;  %v1973_v56 = vsub.f32 0.0, %v5571_v53  ;;  %v2290_v40 = vsub.f32 1.0, %v2226_v6  ;;  %6759 = vst [vmem:[#allocation56_spill] sm:$0xff] %v5665_v8 }
 0x265   : > { %v5655_v27 = vpop.eup %3778  ;;  %v5658_v28 = vsel %vm1014_vm5, 1.0, %v6688_v45  ;;  %v1208_v17 = vmul.f32 0.3275911, %v5649_v29  ;;  %v5662_v61 = vmul.f32 0.70710677, %v5636_v31  ;;  %v1779_v24 = vmul.f32 %v5556_v21, %v1715_v34 }
 0x266   : > { %3784 = vpow2.f32 %v2136_v30  ;;  %v1590_v19 = vadd.f32 1.4214138, %v1526_v39  ;;  %v2140_v14 = vmul.f32 1.442695, %v2038_v9  ;;  %v1905_v43 = vmul.f32 %v5516_v25, %v1841_v26 }
 0x267   : > { %v3781_v12 = vpop.eup %3780  ;;  %v5669_v6 = vmul.f32 0.5, %v5552_v35  ;;  %v1397_v50 = vmul.f32 1.0614054, %v5655_v27  ;;  %v1272_v13 = vadd.f32 1.0, %v1208_v17  ;;  %v2416_v58 = vadd.f32 1.0, %v2352_v54 }
 0x268   : > { %v1716_v10 = vadd.f32 -0.28449672, %v1652_v20  ;;  %vm1013_vm6 = vcmp.ge.f32.partialorder %v5562_v55, 0.0  ;;  %v2037_v34 = vmul.f32 %v1973_v56, %v5571_v53  ;;  %v2354_v30 = vmul.f32 %v2290_v40, %v5506_v7  ;;  %v6760_v7 = vld [vmem:[#allocation38_spill] sm:$0xff] }
 0x269   : > { %v1461_v9 = vadd.f32 -1.4531521, %v1397_v50  ;;  %3786 = vrcp.f32 %v1272_v13  ;;  %v5676_v39 = vand.u32 2147483647, %v5662_v61  ;;  %v1843_v25 = vadd.f32 0.2548296, %v1779_v24 }
 0x26a   : > { %v1654_v35 = vmul.f32 %v5618_v16, %v1590_v19  ;;  %3788 = vpow2.f32 %v2140_v14  ;;  %v1975_v26 = vsub.f32 0.0, %v5602_v37  ;;  %v2225_v20 = vmul.f32 %v3777_v63, %v1905_v43 }
 0x26b   : > { %v5680_v17 = vpop.eup %3782  ;;  %v1525_v54 = vmul.f32 %v5655_v27, %v1461_v9  ;;  %v1210_v53 = vmul.f32 0.3275911, %v5676_v39  ;;  %v5686_v50 = vadd.f32 %v6760_v7, %v4343_v2  ;;  %v1780_v13 = vmul.f32 %v5590_v38, %v1716_v10  ;;  %v5698_v10 = vpop.f32.mrb[31].mxu0 }
 0x26c   : > { %v5692_v56 = vsel %vm1013_vm6, 1.0, %v6688_v45  ;;  %v2138_v40 = vmul.f32 1.442695, %v2037_v34  ;;  %v1399_v24 = vmul.f32 1.0614054, %v5680_v17  ;;  %v2418_v19 = vadd.f32 1.0, %v2354_v30 }
 0x26d   : > { %v1589_v63 = vadd.f32 1.4214138, %v1525_v54  ;;  %vm1015_vm7 = vcmp.ge.f32.partialorder %v5593_v32, 0.0  ;;  %v1274_v14 = vadd.f32 1.0, %v1210_v53  ;;  %v1907_v43 = vmul.f32 %v5556_v21, %v1843_v25  ;;  %6761 = vst [vmem:[#allocation38_spill] sm:$0xff] %v5698_v10 }
 0x26e   : > { %v1718_v9 = vadd.f32 -0.28449672, %v1654_v35  ;;  %v1463_v7 = vadd.f32 -1.4531521, %v1399_v24  ;;  %v2039_v8 = vmul.f32 %v1975_v26, %v5602_v37  ;;  %v2289_v44 = vsub.f32 1.0, %v2225_v20  ;;  %v6763_v26 = vld [vmem:[#allocation22_spill] sm:$0xff] }
 0x26f   : > { %v1653_v55 = vmul.f32 %v5655_v27, %v1589_v63  ;;  %3790 = vrcp.f32 %v1274_v14  ;;  %v5702_v34 = vmul.f32 0.70710677, %v5686_v50  ;;  %v5705_v54 = vmul.f32 %v2416_v58, %v5443_v11 }
 0x270   : > { %v3785_v30 = vpop.eup %3784  ;;  %v1844_v53 = vadd.f32 0.2548296, %v1780_v13  ;;  %v5708_v21 = vmul.f32 0.5, %v5575_v15  ;;  %v1527_v25 = vmul.f32 %v5680_v17, %v1463_v7  ;;  %3792 = vpow2.f32 %v2138_v40 }
 0x271   : > { %6762 = vst [vmem:[#allocation57_spill] sm:$0xff] %v5705_v54  ;;  %v5714_v37 = vsel %vm1015_vm7, 1.0, %v6688_v45  ;;  %v5717_v35 = vand.u32 2147483647, %v5702_v34  ;;  %v5721_v20 = vadd.f32 %v6763_v26, %v4345_v3  ;;  %v5724_v11 = vmul.f32 %v2418_v19, %v5449_v42  ;;  %v5737_v19 = vpop.f32.mrb[31].mxu1 }
 0x272   : > { %v2227_v15 = vmul.f32 %v3781_v12, %v1907_v43  ;;  %v1782_v58 = vmul.f32 %v5618_v16, %v1718_v9  ;;  %v1591_v13 = vadd.f32 1.4214138, %v1527_v25  ;;  %v2353_v32 = vmul.f32 %v2289_v44, %v5547_v60  ;;  %6765 = vst [vmem:[#allocation58_spill] sm:$0xff] %v5737_v19  ;;  %v6766_v25 = vld [vmem:[#allocation39_spill] sm:$0xff] }
 0x273   : > { %6764 = vst [vmem:[#allocation22_spill] sm:$0xff] %v5724_v11  ;;  %v5727_v40 = vpop.eup %3786  ;;  %v1717_v24 = vadd.f32 -0.28449672, %v1653_v55  ;;  %v2142_v63 = vmul.f32 1.442695, %v2039_v8  ;;  %v1908_v54 = vmul.f32 %v5590_v38, %v1844_v53  ;;  %v5733_v26 = vmul.f32 0.5, %v5623_v62 }
 0x274   : > { %v1209_v14 = vmul.f32 0.3275911, %v5717_v35  ;;  %v3789_v7 = vpop.eup %3788  ;;  %v1400_v42 = vmul.f32 1.0614054, %v5727_v40  ;;  %v1976_v12 = vsub.f32 0.0, %v5649_v29  ;;  %v1655_v43 = vmul.f32 %v5680_v17, %v1591_v13 }
 0x275   : > { %vm1016_vm8 = vcmp.ge.f32.partialorder %v5632_v46, 0.0  ;;  %v5742_v60 = vmul.f32 0.70710677, %v5721_v20  ;;  %v2291_v8 = vsub.f32 1.0, %v2227_v15  ;;  %v1846_v9 = vadd.f32 0.2548296, %v1782_v58 }
 0x276   : > { %v1273_v44 = vadd.f32 1.0, %v1209_v14  ;;  %v1464_v38 = vadd.f32 -1.4531521, %v1400_v42  ;;  %v5745_v62 = vmul.f32 0.5, %v5636_v31  ;;  %v2417_v55 = vadd.f32 1.0, %v2353_v32 }
 0x277   : > { %v1781_v53 = vmul.f32 %v5655_v27, %v1717_v24  ;;  %v5750_v11 = vadd.f32 %v6766_v25, %v4339_v0  ;;  %v2228_v13 = vmul.f32 %v3785_v30, %v1908_v54  ;;  %v5753_v46 = vsel %vm1016_vm8, 1.0, %v6688_v45 }
 0x278   : > { %3794 = vrcp.f32 %v1273_v44  ;;  %v1528_v14 = vmul.f32 %v5727_v40, %v1464_v38  ;;  %v2040_v15 = vmul.f32 %v1976_v12, %v5649_v29  ;;  %v1719_v31 = vadd.f32 -0.28449672, %v1655_v43 }
 0x279   : > { %v5757_v58 = vpop.eup %3790  ;;  %vm1018_vm9 = vcmp.ge.f32.partialorder %v5662_v61, 0.0  ;;  %v1978_v32 = vsub.f32 0.0, %v5676_v39  ;;  %v5762_v24 = vand.u32 2147483647, %v5742_v60  ;;  %v2355_v42 = vmul.f32 %v2291_v8, %v5587_v36 }
 0x27a   : > { %v1910_v30 = vmul.f32 %v5618_v16, %v1846_v9  ;;  %v1592_v54 = vadd.f32 1.4214138, %v1528_v14  ;;  %v1402_v44 = vmul.f32 1.0614054, %v5757_v58  ;;  %v3793_v38 = vpop.eup %3792  ;;  %v1845_v25 = vadd.f32 0.2548296, %v1781_v53 }
 0x27b   : > { %3796 = vpow2.f32 %v2142_v63  ;;  %v1211_v29 = vmul.f32 0.3275911, %v5762_v24  ;;  %v5769_v12 = vmul.f32 0.70710677, %v5750_v11  ;;  %v5772_v61 = vmul.f32 %v2417_v55, %v5520_v47 }
 0x27c   : > { %v2292_v43 = vsub.f32 1.0, %v2228_v13  ;;  %v5775_v19 = vsel %vm1018_vm9, 1.0, %v6688_v45  ;;  %v1466_v36 = vadd.f32 -1.4531521, %v1402_v44  ;;  %v1783_v16 = vmul.f32 %v5680_v17, %v1719_v31  ;;  %v6768_v13 = vld [vmem:[#allocation24_spill] sm:$0xff] }
 0x27d   : > { %6767 = vst [vmem:[#allocation39_spill] sm:$0xff] %v5772_v61  ;;  %v2144_v8 = vmul.f32 1.442695, %v2040_v15  ;;  %v2042_v9 = vmul.f32 %v1978_v32, %v5676_v39  ;;  %v1275_v53 = vadd.f32 1.0, %v1211_v29  ;;  %v2419_v63 = vadd.f32 1.0, %v2355_v42 }
 0x27e   : > { %v2230_v14 = vmul.f32 %v3789_v7, %v1910_v30  ;;  %v1656_v10 = vmul.f32 %v5727_v40, %v1592_v54  ;;  %v1530_v4 = vmul.f32 %v5757_v58, %v1466_v36  ;;  %v1909_v47 = vmul.f32 %v5655_v27, %v1845_v25 }
 0x27f   : > { %3798 = vrcp.f32 %v1275_v53  ;;  %v5783_v55 = vand.u32 2147483647, %v5769_v12  ;;  %v5787_v44 = vadd.f32 %v6768_v13, %v4341_v1  ;;  %v2356_v15 = vmul.f32 %v2292_v43, %v5628_v57 }
 0x280   : > { %v1594_v39 = vadd.f32 1.4214138, %v1530_v4  ;;  %v5791_v31 = vmul.f32 0.5, %v5686_v50  ;;  %v1977_v7 = vsub.f32 0.0, %v5717_v35  ;;  %v1847_v42 = vadd.f32 0.2548296, %v1783_v16 }
 0x281   : > { %3800 = vpow2.f32 %v2144_v8  ;;  %v2148_v27 = vmul.f32 1.442695, %v2042_v9  ;;  %v1212_v30 = vmul.f32 0.3275911, %v5783_v55  ;;  %v5798_v54 = vmul.f32 %v2419_v63, %v5578_v52 }
 0x282   : > { %v5794_v32 = vpop.eup %3794  ;;  %v2294_v25 = vsub.f32 1.0, %v2230_v14  ;;  %v1720_v29 = vadd.f32 -0.28449672, %v1656_v10  ;;  %v2229_v4 = vmul.f32 %v3793_v38, %v1909_v47  ;;  %vm1017_vm10 = vcmp.ge.f32.partialorder %v5702_v34, 0.0  ;;  %v6770_v38 = vld [vmem:[#allocation41_spill] sm:$0xff] }
 0x283   : > { %6769 = vst [vmem:[#allocation24_spill] sm:$0xff] %v5798_v54  ;;  %v1401_v57 = vmul.f32 1.0614054, %v5794_v32  ;;  %v1276_v50 = vadd.f32 1.0, %v1212_v30  ;;  %v5803_v43 = vmul.f32 0.70710677, %v5787_v44  ;;  %v1658_v16 = vmul.f32 %v5757_v58, %v1594_v39 }
 0x284   : > { %v2420_v36 = vadd.f32 1.0, %v2356_v15  ;;  %v2041_v9 = vmul.f32 %v1977_v7, %v5717_v35  ;;  %v1911_v52 = vmul.f32 %v5680_v17, %v1847_v42  ;;  %v5813_v63 = vadd.f32 %v6770_v38, %v4343_v2 }
 0x285   : > { %v1465_v8 = vadd.f32 -1.4531521, %v1401_v57  ;;  %v3797_v53 = vpop.eup %3796  ;;  %3802 = vrcp.f32 %v1276_v50  ;;  %v5809_v10 = vand.u32 2147483647, %v5803_v43  ;;  %v2358_v14 = vmul.f32 %v2294_v25, %v5658_v28 }
 0x286   : > { %v1784_v47 = vmul.f32 %v5727_v40, %v1720_v29  ;;  %3804 = vpow2.f32 %v2148_v27  ;;  %v2293_v15 = vsub.f32 1.0, %v2229_v4  ;;  %v5821_v17 = vsel %vm1017_vm10, 1.0, %v6688_v45 }
 0x287   : > { %v1529_v13 = vmul.f32 %v5794_v32, %v1465_v8  ;;  %v5824_v35 = vmul.f32 0.5, %v5721_v20  ;;  %v1214_v39 = vmul.f32 0.3275911, %v5809_v10  ;;  %v5828_v7 = vmul.f32 %v2420_v36, %v5607_v59  ;;  %v6772_v8 = vld [vmem:[#allocation42_spill] sm:$0xff] }
 0x288   : > { %v1722_v28 = vadd.f32 -0.28449672, %v1658_v16  ;;  %v2146_v42 = vmul.f32 1.442695, %v2041_v9  ;;  %vm1019_vm11 = vcmp.ge.f32.partialorder %v5742_v60, 0.0  ;;  %v2231_v30 = vmul.f32 %v3797_v53, %v1911_v52 }
 0x289   : > { %6771 = vst [vmem:[#allocation41_spill] sm:$0xff] %v5828_v7  ;;  %v5831_v27 = vpop.eup %3798  ;;  %v1593_v25 = vadd.f32 1.4214138, %v1529_v13  ;;  %v1278_v29 = vadd.f32 1.0, %v1214_v39  ;;  %v5834_v34 = vmul.f32 0.70710677, %v5813_v63  ;;  %v2357_v36 = vmul.f32 %v2293_v15, %v5692_v56 }
 0x28a   : > { %v2422_v57 = vadd.f32 1.0, %v2358_v14  ;;  %v1848_v20 = vadd.f32 0.2548296, %v1784_v47  ;;  %v1403_v4 = vmul.f32 1.0614054, %v5831_v27  ;;  %v1979_v50 = vsub.f32 0.0, %v5762_v24 }
 0x28b   : > { %v3801_v59 = vpop.eup %3800  ;;  %3806 = vrcp.f32 %v1278_v29  ;;  %v5840_v16 = vand.u32 2147483647, %v5834_v34  ;;  %v5844_v9 = vadd.f32 %v6772_v8, %v4345_v3  ;;  %v1786_v53 = vmul.f32 %v5757_v58, %v1722_v28 }
 0x28c   : > { %3808 = vpow2.f32 %v2146_v42  ;;  %v5850_v52 = vsel %vm1019_vm11, 1.0, %v6688_v45  ;;  %v1467_v38 = vadd.f32 -1.4531521, %v1403_v4  ;;  %v2295_v14 = vsub.f32 1.0, %v2231_v30 }
 0x28d   : > { %v1657_v56 = vmul.f32 %v5794_v32, %v1593_v25  ;;  %v5854_v47 = vmul.f32 0.5, %v5750_v11  ;;  %v1213_v13 = vmul.f32 0.3275911, %v5840_v16  ;;  %v1912_v15 = vmul.f32 %v5727_v40, %v1848_v20 }
 0x28e   : > { %v1531_v39 = vmul.f32 %v5831_v27, %v1467_v38  ;;  %v2043_v28 = vmul.f32 %v1979_v50, %v5762_v24  ;;  %vm1020_vm12 = vcmp.ge.f32.partialorder %v5769_v12, 0.0  ;;  %v2421_v42 = vadd.f32 1.0, %v2357_v36 }
 0x28f   : > { %v5861_v60 = vpop.eup %3802  ;;  %v1980_v30 = vsub.f32 0.0, %v5783_v55  ;;  %v1277_v29 = vadd.f32 1.0, %v1213_v13  ;;  %v5865_v25 = vmul.f32 0.70710677, %v5844_v9  ;;  %v5868_v4 = vmul.f32 %v2422_v57, %v5646_v33 }
 0x290   : > { %v3805_v11 = vpop.eup %3804  ;;  %v1850_v40 = vadd.f32 0.2548296, %v1786_v53  ;;  %v1595_v20 = vadd.f32 1.4214138, %v1531_v39  ;;  %v1404_v8 = vmul.f32 1.0614054, %v5861_v60  ;;  %v2359_v24 = vmul.f32 %v2295_v14, %v5714_v37 }
 0x291   : > { %v1721_v50 = vadd.f32 -0.28449672, %v1657_v56  ;;  %3810 = vrcp.f32 %v1277_v29  ;;  %v5873_v36 = vand.u32 2147483647, %v5865_v25  ;;  %v2232_v38 = vmul.f32 %v3801_v59, %v1912_v15 }
 0x292   : > { %v1659_v13 = vmul.f32 %v5831_v27, %v1595_v20  ;;  %v1468_v7 = vadd.f32 -1.4531521, %v1404_v8  ;;  %v1982_v54 = vsub.f32 0.0, %v5809_v10  ;;  %v2150_v61 = vmul.f32 1.442695, %v2043_v28 }
 0x293   : > { %v5880_v33 = vsel %vm1020_vm12, 1.0, %v6688_v45  ;;  %v2044_v57 = vmul.f32 %v1980_v30, %v5783_v55  ;;  %v1215_v37 = vmul.f32 0.3275911, %v5873_v36  ;;  %v5885_v53 = vmul.f32 %v2421_v42, %v5669_v6  ;;  %v6773_v55 = vld [vmem:[#allocation43_spill] sm:$0xff] }
 0x294   : > { %v1914_v59 = vmul.f32 %v5757_v58, %v1850_v40  ;;  %v1532_v14 = vmul.f32 %v5861_v60, %v1468_v7  ;;  %v5890_v56 = vmul.f32 0.5, %v5787_v44  ;;  %v2423_v39 = vadd.f32 1.0, %v2359_v24 }
 0x295   : > { %v5892_v15 = vpop.eup %3806  ;;  %v1785_v12 = vmul.f32 %v5794_v32, %v1721_v50  ;;  %v1279_v28 = vadd.f32 1.0, %v1215_v37  ;;  %v5897_v30 = vadd.f32 %v6773_v55, %v4339_v0  ;;  %v2296_v6 = vsub.f32 1.0, %v2232_v38 }
 0x296   : > { %v3809_v29 = vpop.eup %3808  ;;  %v1723_v42 = vadd.f32 -0.28449672, %v1659_v13  ;;  %v1406_v58 = vmul.f32 1.0614054, %v5892_v15  ;;  %v2046_v7 = vmul.f32 %v1982_v54, %v5809_v10  ;;  %v2152_v40 = vmul.f32 1.442695, %v2044_v57 }
 0x297   : > { %3812 = vrcp.f32 %v1279_v28  ;;  %v5902_v44 = vmul.f32 0.70710677, %v5897_v30  ;;  %v5906_v20 = vadd.f32 %v5248_v51, %v4341_v1  ;;  %v2234_v8 = vmul.f32 %v3805_v11, %v1914_v59 }
 0x298   : > { %v1596_v24 = vadd.f32 1.4214138, %v1532_v14  ;;  %vm1022_vm13 = vcmp.ge.f32.partialorder %v5803_v43, 0.0  ;;  %v1470_v50 = vadd.f32 -1.4531521, %v1406_v58  ;;  %v5910_v38 = vmul.f32 %v2423_v39, %v5708_v21 }
 0x299   : > { %v1849_v13 = vadd.f32 0.2548296, %v1785_v12  ;;  %3814 = vpow2.f32 %v2150_v61  ;;  %v5913_v54 = vand.u32 2147483647, %v5902_v44  ;;  %v2360_v10 = vmul.f32 %v2296_v6, %v5753_v46 }
 0x29a   : > { %v1787_v57 = vmul.f32 %v5831_v27, %v1723_v42  ;;  %v1534_v51 = vmul.f32 %v5892_v15, %v1470_v50  ;;  %v2156_v37 = vmul.f32 1.442695, %v2046_v7  ;;  %3816 = vpow2.f32 %v2152_v40 }
 0x29b   : > { %v5918_v11 = vpop.eup %3810  ;;  %v5921_v43 = vsel %vm1022_vm13, 1.0, %v6688_v45  ;;  %v1216_v21 = vmul.f32 0.3275911, %v5913_v54  ;;  %v5925_v61 = vmul.f32 0.70710677, %v5906_v20  ;;  %v2298_v59 = vsub.f32 1.0, %v2234_v8 }
 0x29c   : > { %v1660_v14 = vmul.f32 %v5861_v60, %v1596_v24  ;;  %v1598_v46 = vadd.f32 1.4214138, %v1534_v51  ;;  %v1981_v39 = vsub.f32 0.0, %v5840_v16  ;;  %v1913_v12 = vmul.f32 %v5794_v32, %v1849_v13 }
 0x29d   : > { %v5931_v28 = vmul.f32 0.5, %v5813_v63  ;;  %v1405_v55 = vmul.f32 1.0614054, %v5918_v11  ;;  %v1280_v6 = vadd.f32 1.0, %v1216_v21  ;;  %v2424_v42 = vadd.f32 1.0, %v2360_v10 }
 0x29e   : > { %v1851_v58 = vadd.f32 0.2548296, %v1787_v57  ;;  %3818 = vpow2.f32 %v2156_v37  ;;  %vm1021_vm14 = vcmp.ge.f32.partialorder %v5834_v34, 0.0  ;;  %v1662_v7 = vmul.f32 %v5892_v15, %v1598_v46 }
 0x29f   : > { %v1469_v40 = vadd.f32 -1.4531521, %v1405_v55  ;;  %3820 = vrcp.f32 %v1280_v6  ;;  %v5937_v8 = vand.u32 2147483647, %v5925_v61  ;;  %v2362_v32 = vmul.f32 %v2298_v59, %v5775_v19 }
 0x2a0   : > { %v1724_v24 = vadd.f32 -0.28449672, %v1660_v14  ;;  %v2045_v63 = vmul.f32 %v1981_v39, %v5840_v16  ;;  %v1983_v50 = vsub.f32 0.0, %v5873_v36  ;;  %v2233_v10 = vmul.f32 %v3809_v29, %v1913_v12 }
 0x2a1   : > { %v5942_v13 = vpop.eup %3812  ;;  %v1533_v57 = vmul.f32 %v5918_v11, %v1469_v40  ;;  %v1218_v34 = vmul.f32 0.3275911, %v5937_v8  ;;  %v5948_v51 = vadd.f32 %v5276_v5, %v4343_v2  ;;  %v5951_v37 = vmul.f32 %v2424_v42, %v5733_v26 }
 0x2a2   : > { %v5954_v19 = vsel %vm1021_vm14, 1.0, %v6688_v45  ;;  %vm1023_vm15 = vcmp.ge.f32.partialorder %v5865_v25, 0.0  ;;  %v1407_v16 = vmul.f32 1.0614054, %v5942_v13  ;;  %v1915_v29 = vmul.f32 %v5831_v27, %v1851_v58 }
 0x2a3   : > { %6774 = vst [vmem:[#allocation42_spill] sm:$0xff] %v5951_v37  ;;  %v3815_v21 = vpop.eup %3814  ;;  %v1726_v59 = vadd.f32 -0.28449672, %v1662_v7  ;;  %v1597_v14 = vadd.f32 1.4214138, %v1533_v57  ;;  %v1282_v46 = vadd.f32 1.0, %v1218_v34  ;;  %v1788_v39 = vmul.f32 %v5861_v60, %v1724_v24 }
 0x2a4   : > { %v2154_v5 = vmul.f32 1.442695, %v2045_v63  ;;  %v1471_v12 = vadd.f32 -1.4531521, %v1407_v16  ;;  %v2047_v26 = vmul.f32 %v1983_v50, %v5873_v36  ;;  %v3817_v55 = vpop.eup %3816  ;;  %v2426_v6 = vadd.f32 1.0, %v2362_v32 }
 0x2a5   : > { %v2297_v42 = vsub.f32 1.0, %v2233_v10  ;;  %3822 = vrcp.f32 %v1282_v46  ;;  %v5962_v40 = vmul.f32 0.70710677, %v5948_v51  ;;  %v1661_v37 = vmul.f32 %v5918_v11, %v1597_v14 }
 0x2a6   : > { %v5966_v27 = vmul.f32 0.5, %v5844_v9  ;;  %v5971_v58 = vsel %vm1023_vm15, 1.0, %v6688_v45  ;;  %v1535_v7 = vmul.f32 %v5942_v13, %v1471_v12  ;;  %v2235_v36 = vmul.f32 %v3815_v21, %v1915_v29 }
 0x2a7   : > { %v1790_v32 = vmul.f32 %v5892_v15, %v1726_v59  ;;  %v5976_v24 = vand.u32 2147483647, %v5962_v40  ;;  %v5980_v63 = vadd.f32 %v5315_v49, %v4345_v3  ;;  %v1852_v9 = vadd.f32 0.2548296, %v1788_v39 }
 0x2a8   : > { %v3819_v50 = vpop.eup %3818  ;;  %3824 = vpow2.f32 %v2154_v5  ;;  %v1599_v10 = vadd.f32 1.4214138, %v1535_v7  ;;  %v2158_v57 = vmul.f32 1.442695, %v2047_v26  ;;  %v5985_v34 = vmul.f32 %v2426_v6, %v5745_v62 }
 0x2a9   : > { %v5982_v25 = vpop.eup %3820  ;;  %v2361_v16 = vmul.f32 %v2297_v42, %v5821_v17  ;;  %v5989_v21 = vmul.f32 0.5, %v5897_v30  ;;  %v1217_v29 = vmul.f32 0.3275911, %v5976_v24  ;;  %v1725_v59 = vadd.f32 -0.28449672, %v1661_v37 }
 0x2aa   : > { %6775 = vst [vmem:[#allocation43_spill] sm:$0xff] %v5985_v34  ;;  %v1663_v49 = vmul.f32 %v5942_v13, %v1599_v10  ;;  %v1408_v14 = vmul.f32 1.0614054, %v5982_v25  ;;  %v1984_v46 = vsub.f32 0.0, %v5913_v54  ;;  %v2299_v39 = vsub.f32 1.0, %v2235_v36 }
 0x2ab   : > { %v1854_v5 = vadd.f32 0.2548296, %v1790_v32  ;;  %v1281_v12 = vadd.f32 1.0, %v1217_v29  ;;  %v5996_v62 = vmul.f32 0.70710677, %v5980_v63  ;;  %v1916_v17 = vmul.f32 %v5861_v60, %v1852_v9 }
 0x2ac   : > { %3826 = vpow2.f32 %v2158_v57  ;;  %v1472_v30 = vadd.f32 -1.4531521, %v1408_v14  ;;  %v1986_v26 = vsub.f32 0.0, %v5937_v8  ;;  %v2425_v6 = vadd.f32 1.0, %v2361_v16 }
 0x2ad   : > { %vm1024_vm0 = vcmp.ge.f32.partialorder %v5902_v44, 0.0  ;;  %3828 = vrcp.f32 %v1281_v12  ;;  %v6003_v37 = vadd.f32 %v5372_v22, %v4339_v0  ;;  %v1789_v42 = vmul.f32 %v5918_v11, %v1725_v59 }
 0x2ae   : > { %v1727_v7 = vadd.f32 -0.28449672, %v1663_v49  ;;  %v1536_v36 = vmul.f32 %v5982_v25, %v1472_v30  ;;  %v2048_v32 = vmul.f32 %v1984_v46, %v5913_v54  ;;  %v2363_v9 = vmul.f32 %v2299_v39, %v5850_v52 }
 0x2af   : > { %v6008_v60 = vpop.eup %3822  ;;  %v1918_v10 = vmul.f32 %v5892_v15, %v1854_v5  ;;  %v6013_v57 = vmul.f32 0.5, %v5906_v20  ;;  %v6016_v16 = vand.u32 2147483647, %v5996_v62  ;;  %v2236_v22 = vmul.f32 %v3817_v55, %v1916_v17 }
 0x2b0   : > { %v1600_v29 = vadd.f32 1.4214138, %v1536_v36  ;;  %v1410_v59 = vmul.f32 1.0614054, %v6008_v60  ;;  %v2050_v49 = vmul.f32 %v1986_v26, %v5937_v8  ;;  %v6021_v54 = vmul.f32 %v2425_v6, %v5791_v31 }
 0x2b1   : > { %v6026_v52 = vsel %vm1024_vm0, 1.0, %v6688_v45  ;;  %v1219_v15 = vmul.f32 0.3275911, %v6016_v16  ;;  %v6030_v20 = vmul.f32 0.70710677, %v6003_v37  ;;  %v1791_v46 = vmul.f32 %v5942_v13, %v1727_v7 }
 0x2b2   : > { %v3825_v14 = vpop.eup %3824  ;;  %v1853_v55 = vadd.f32 0.2548296, %v1789_v42  ;;  %v2160_v39 = vmul.f32 1.442695, %v2048_v32  ;;  %v1474_v5 = vadd.f32 -1.4531521, %v1410_v59  ;;  %v2238_v12 = vmul.f32 %v3819_v50, %v1918_v10 }
 0x2b3   : > { %v2427_v8 = vadd.f32 1.0, %v2363_v9  ;;  %vm1026_vm1 = vcmp.ge.f32.partialorder %v5925_v61, 0.0  ;;  %v1283_v31 = vadd.f32 1.0, %v1219_v15  ;;  %v2300_v17 = vsub.f32 1.0, %v2236_v22 }
 0x2b4   : > { %v1664_v44 = vmul.f32 %v5982_v25, %v1600_v29  ;;  %v1538_v30 = vmul.f32 %v6008_v60, %v1474_v5  ;;  %v2164_v26 = vmul.f32 1.442695, %v2050_v49  ;;  %v1985_v6 = vsub.f32 0.0, %v5976_v24 }
 0x2b5   : > { %3830 = vrcp.f32 %v1283_v31  ;;  %v6038_v42 = vand.u32 2147483647, %v6030_v20  ;;  %v6042_v7 = vadd.f32 %v5395_v48, %v4341_v1  ;;  %v1917_v61 = vmul.f32 %v5918_v11, %v1853_v55 }
 0x2b6   : > { %v3827_v50 = vpop.eup %3826  ;;  %v1855_v36 = vadd.f32 0.2548296, %v1791_v46  ;;  %3832 = vpow2.f32 %v2160_v39  ;;  %v6046_v32 = vsel %vm1026_vm1, 1.0, %v6688_v45  ;;  %v6051_v10 = vmul.f32 %v2427_v8, %v5824_v35 }
 0x2b7   : > { %v6048_v9 = vpop.eup %3828  ;;  %v2302_v22 = vsub.f32 1.0, %v2238_v12  ;;  %v6054_v29 = vmul.f32 0.5, %v5948_v51  ;;  %v1220_v48 = vmul.f32 0.3275911, %v6038_v42  ;;  %v2364_v59 = vmul.f32 %v2300_v17, %v5880_v33 }
 0x2b8   : > { %v1728_v49 = vadd.f32 -0.28449672, %v1664_v44  ;;  %v1602_v11 = vadd.f32 1.4214138, %v1538_v30  ;;  %v1409_v15 = vmul.f32 1.0614054, %v6048_v9  ;;  %3834 = vpow2.f32 %v2164_v26 }
 0x2b9   : > { %v2049_v55 = vmul.f32 %v1985_v6, %v5976_v24  ;;  %v1284_v46 = vadd.f32 1.0, %v1220_v48  ;;  %v6061_v39 = vmul.f32 0.70710677, %v6042_v7  ;;  %v2237_v35 = vmul.f32 %v3825_v14, %v1917_v61 }
 0x2ba   : > { %v1919_v5 = vmul.f32 %v5942_v13, %v1855_v36  ;;  %vm1025_vm2 = vcmp.ge.f32.partialorder %v5962_v40, 0.0  ;;  %v1473_v51 = vadd.f32 -1.4531521, %v1409_v15  ;;  %v2366_v8 = vmul.f32 %v2302_v22, %v5921_v43 }
 0x2bb   : > { %3836 = vrcp.f32 %v1284_v46  ;;  %v6067_v33 = vand.u32 2147483647, %v6061_v39  ;;  %v6071_v12 = vadd.f32 %v5424_v41, %v4343_v2  ;;  %v2428_v24 = vadd.f32 1.0, %v2364_v59 }
 0x2bc   : > { %v1792_v31 = vmul.f32 %v5982_v25, %v1728_v49  ;;  %v1666_v14 = vmul.f32 %v6008_v60, %v1602_v11  ;;  %v1537_v13 = vmul.f32 %v6048_v9, %v1473_v51  ;;  %v6077_v40 = vsel %vm1025_vm2, 1.0, %v6688_v45 }
 0x2bd   : > { %v2162_v17 = vmul.f32 1.442695, %v2049_v55  ;;  %v6080_v43 = vmul.f32 0.5, %v5980_v63  ;;  %v1222_v44 = vmul.f32 0.3275911, %v6067_v33  ;;  %v2301_v30 = vsub.f32 1.0, %v2237_v35 }
 0x2be   : > { %v2239_v26 = vmul.f32 %v3827_v50, %v1919_v5  ;;  %v1601_v41 = vadd.f32 1.4214138, %v1537_v13  ;;  %vm1027_vm3 = vcmp.ge.f32.partialorder %v5996_v62, 0.0  ;;  %v2430_v61 = vadd.f32 1.0, %v2366_v8 }
 0x2bf   : > { %v6084_v6 = vpop.eup %3830  ;;  %v1987_v36 = vsub.f32 0.0, %v6016_v16  ;;  %v1286_v22 = vadd.f32 1.0, %v1222_v44  ;;  %v6088_v48 = vmul.f32 0.70710677, %v6071_v12  ;;  %v6091_v63 = vmul.f32 %v2428_v24, %v5854_v47 }
 0x2c0   : > { %v3833_v59 = vpop.eup %3832  ;;  %v1856_v49 = vadd.f32 0.2548296, %v1792_v31  ;;  %v1730_v11 = vadd.f32 -0.28449672, %v1666_v14  ;;  %v1411_v50 = vmul.f32 1.0614054, %v6084_v6  ;;  %v1665_v15 = vmul.f32 %v6048_v9, %v1601_v41 }
 0x2c1   : > { %3838 = vrcp.f32 %v1286_v22  ;;  %v6096_v55 = vand.u32 2147483647, %v6088_v48  ;;  %v6100_v46 = vadd.f32 %v5456_v23, %v4345_v3  ;;  %v2365_v35 = vmul.f32 %v2301_v30, %v5954_v19 }
 0x2c2   : > { %v2303_v5 = vsub.f32 1.0, %v2239_v26  ;;  %v6106_v47 = vsel %vm1027_vm3, 1.0, %v6688_v45  ;;  %v1475_v51 = vadd.f32 -1.4531521, %v1411_v50  ;;  %v6108_v8 = vpop.eup %3834  ;;  %3840 = vpow2.f32 %v2162_v17 }
 0x2c3   : > { %v6111_v24 = vmul.f32 0.5, %v6003_v37  ;;  %v1988_v31 = vsub.f32 0.0, %v6038_v42  ;;  %v1221_v23 = vmul.f32 0.3275911, %v6096_v55  ;;  %v1920_v14 = vmul.f32 %v5982_v25, %v1856_v49 }
 0x2c4   : > { %v1539_v19 = vmul.f32 %v6084_v6, %v1475_v51  ;;  %v2051_v13 = vmul.f32 %v1987_v36, %v6016_v16  ;;  %vm1028_vm4 = vcmp.ge.f32.partialorder %v6030_v20, 0.0  ;;  %v1794_v44 = vmul.f32 %v6008_v60, %v1730_v11 }
 0x2c5   : > { %v6119_v62 = vpop.eup %3836  ;;  %v1729_v17 = vadd.f32 -0.28449672, %v1665_v15  ;;  %v1285_v30 = vadd.f32 1.0, %v1221_v23  ;;  %v6123_v37 = vmul.f32 0.70710677, %v6100_v46  ;;  %v2429_v26 = vadd.f32 1.0, %v2365_v35 }
 0x2c6   : > { %v2367_v41 = vmul.f32 %v2303_v5, %v5971_v58  ;;  %v1603_v22 = vadd.f32 1.4214138, %v1539_v19  ;;  %v1412_v25 = vmul.f32 1.0614054, %v6119_v62  ;;  %v6128_v49 = vmul.f32 %v2430_v61, %v5890_v56  ;;  %v6777_v19 = vld [vmem:[#allocation32_spill] sm:$0xff] }
 0x2c7   : > { %v2052_v16 = vmul.f32 %v1988_v31, %v6038_v42  ;;  %3842 = vrcp.f32 %v1285_v30  ;;  %v6132_v36 = vand.u32 2147483647, %v6123_v37  ;;  %v2240_v11 = vmul.f32 %v3833_v59, %v1920_v14 }
 0x2c8   : > { %6776 = vst [vmem:[#allocation59_spill] sm:$0xff] %v6128_v49  ;;  %v2166_v50 = vmul.f32 1.442695, %v2051_v13  ;;  %v6137_v15 = vsel %vm1028_vm4, 1.0, %v6688_v45  ;;  %v1476_v58 = vadd.f32 -1.4531521, %v1412_v25  ;;  %v1793_v5 = vmul.f32 %v6048_v9, %v1729_v17 }
 0x2c9   : > { %v1858_v35 = vadd.f32 0.2548296, %v1794_v44  ;;  %v6141_v56 = vmul.f32 0.5, %v6042_v7  ;;  %v1223_v42 = vmul.f32 0.3275911, %v6132_v36  ;;  %v6145_v61 = vmul.f32 %v2429_v26, %v5931_v28  ;;  %v6778_v13 = vld [vmem:[#allocation13_spill] sm:$0xff] }
 0x2ca   : > { %v2431_v51 = vadd.f32 1.0, %v2367_v41  ;;  %v1667_v59 = vmul.f32 %v6084_v6, %v1603_v22  ;;  %v1540_v31 = vmul.f32 %v6119_v62, %v1476_v58  ;;  %v2168_v23 = vmul.f32 1.442695, %v2052_v16  ;;  %v6779_v17 = vld [vmem:[#allocation20_spill] sm:$0xff]  ;;  %v6780_v7 = vld [vmem:[#allocation14_spill] sm:$0xff] }
 0x2cb   : > { %v6149_v20 = vpop.eup %3838  ;;  %v1287_v14 = vadd.f32 1.0, %v1223_v42  ;;  %v2529_v44 = vpack.c.bf16 %v6778_v13, %v6777_v19  ;;  %v2531_v30 = vpack.c.bf16 %v6780_v7, %v6779_v17  ;;  %v2304_v25 = vsub.f32 1.0, %v2240_v11  ;;  %v6783_v17 = vld [vmem:[#allocation29_spill] sm:$0xff]  ;;  %v6784_v7 = vld [vmem:[#allocation28_spill] sm:$0xff] }
 0x2cc   : > { %v1604_v49 = vadd.f32 1.4214138, %v1540_v31  ;;  %v1414_v28 = vmul.f32 1.0614054, %v6149_v20  ;;  %v1990_v26 = vsub.f32 0.0, %v6067_v33  ;;  %v3841_v41 = vpop.eup %3840  ;;  %v1922_v22 = vmul.f32 %v6008_v60, %v1858_v35  ;;  %v6781_v31 = vld [vmem:[#allocation15_spill] sm:$0xff] }
 0x2cd   : > { %v1857_v58 = vadd.f32 0.2548296, %v1793_v5  ;;  %3844 = vrcp.f32 %v1287_v14  ;;  %2848 = vmatprep.mubr.bf16.mxu0 %v2529_v44  ;;  %2945 = vmatprep.mubr.bf16.mxu1 %v2531_v30  ;;  %v6160_v16 = vadd.f32 %v5531_v18, %v4339_v0  ;;  %v1731_v42 = vadd.f32 -0.28449672, %v1667_v59  ;;  %v6786_v60 = vld [vmem:[#allocation31_spill] sm:$0xff]  ;;  %v6787_v35 = vld [vmem:[#allocation30_spill] sm:$0xff] }
 0x2ce   : > { %v1668_v19 = vmul.f32 %v6119_v62, %v1604_v49  ;;  %v1478_v11 = vadd.f32 -1.4531521, %v1414_v28  ;;  %v6165_v13 = vadd.f32 %v6781_v31, %v4341_v1  ;;  %v6785_v34 = vpack.c.bf16 %v6783_v17, %v6784_v7 }
 0x2cf   : > { %v6788_v5 = vpack.c.bf16 %v6786_v60, %v6787_v35  ;;  %v6174_v14 = vmul.f32 %v2431_v51, %v5966_v27  ;;  %3846 = vpow2.f32 %v2166_v50  ;;  %vm1030_vm5 = vcmp.ge.f32.partialorder %v6061_v39, 0.0 }
 0x2d0   : > { %6782 = vst [vmem:[#allocation32_spill] sm:$0xff] %v6165_v13  ;;  %2849 = vmatmul.mubr.bf16.vlgmr.msra.gmra.mrb[32].mxu0 %v6785_v34  ;;  %v6178_v18 = vmul.f32 0.70710677, %v6160_v16  ;;  %v2368_v49 = vmul.f32 %v2304_v25, %v6026_v52  ;;  %3848 = vpow2.f32 %v2168_v23  ;;  %v1542_v59 = vmul.f32 %v6149_v20, %v1478_v11 }
 0x2d1   : > { %2946 = vmatmul.mubr.bf16.vlgmr.msra.gmra.mrb[32].mxu1 %v6788_v5  ;;  %v2054_v34 = vmul.f32 %v1990_v26, %v6067_v33  ;;  %v6183_v44 = vpop.eup %3842  ;;  %v2242_v30 = vmul.f32 %v6108_v8, %v1922_v22  ;;  %v1921_v27 = vmul.f32 %v6048_v9, %v1857_v58  ;;  %v1989_v50 = vsub.f32 0.0, %v6096_v55 }
 0x2d2   : > { %v6189_v39 = vand.u32 2147483647, %v6178_v18  ;;  %v1795_v51 = vmul.f32 %v6084_v6, %v1731_v42  ;;  %v1732_v28 = vadd.f32 -0.28449672, %v1668_v19  ;;  %v1606_v52 = vadd.f32 1.4214138, %v1542_v59 }
 0x2d3   : > { %v6193_v23 = vmul.f32 0.70710677, %v6165_v13  ;;  %v6196_v33 = vsel %vm1030_vm5, 1.0, %v6688_v45  ;;  %v6199_v25 = vmul.f32 0.5, %v6071_v12  ;;  %v1413_v9 = vmul.f32 1.0614054, %v6183_v44 }
 0x2d4   : > { %v1224_v8 = vmul.f32 0.3275911, %v6189_v39  ;;  %v2432_v26 = vadd.f32 1.0, %v2368_v49  ;;  %v1670_v22 = vmul.f32 %v6149_v20, %v1606_v52  ;;  %v2172_v58 = vmul.f32 1.442695, %v2054_v34 }
 0x2d5   : > { %vm1029_vm6 = vcmp.ge.f32.partialorder %v6088_v48, 0.0  ;;  %v2306_v42 = vsub.f32 1.0, %v2242_v30  ;;  %v1477_v19 = vadd.f32 -1.4531521, %v1413_v9  ;;  %v2053_v11 = vmul.f32 %v1989_v50, %v6096_v55  ;;  %v6789_v48 = vld [vmem:[#allocation52_spill] sm:$0xff] }
 0x2d6   : > { %v1288_v31 = vadd.f32 1.0, %v1224_v8  ;;  %v2241_v17 = vmul.f32 %v3841_v41, %v1921_v27  ;;  %v1859_v7 = vadd.f32 0.2548296, %v1795_v51  ;;  %v1796_v12 = vmul.f32 %v6119_v62, %v1732_v28 }
 0x2d7   : > { %v6208_v60 = vand.u32 2147483647, %v6193_v23  ;;  %v6210_v35 = vpop.eup %3844  ;;  %v1734_v5 = vadd.f32 -0.28449672, %v1670_v22  ;;  %v1541_v49 = vmul.f32 %v6183_v44, %v1477_v19  ;;  %v6215_v59 = vadd.f32 %v6789_v48, %v4343_v2 }
 0x2d8   : > { %3850 = vrcp.f32 %v1288_v31  ;;  %v6218_v55 = vsel %vm1029_vm6, 1.0, %v6688_v45  ;;  %v1415_v41 = vmul.f32 1.0614054, %v6210_v35  ;;  %v1991_v34 = vsub.f32 0.0, %v6132_v36 }
 0x2d9   : > { %3852 = vpow2.f32 %v2172_v58  ;;  %v3847_v30 = vpop.eup %3846  ;;  %v2370_v27 = vmul.f32 %v2306_v42, %v6046_v32  ;;  %v1605_v50 = vadd.f32 1.4214138, %v1541_v49  ;;  %v2170_v51 = vmul.f32 1.442695, %v2053_v11 }
 0x2da   : > { %v1226_v28 = vmul.f32 0.3275911, %v6208_v60  ;;  %v3849_v52 = vpop.eup %3848  ;;  %v2305_v9 = vsub.f32 1.0, %v2241_v17  ;;  %v1923_v8 = vmul.f32 %v6084_v6, %v1859_v7  ;;  %v1860_v22 = vadd.f32 0.2548296, %v1796_v12  ;;  %v6790_v17 = vld [vmem:[#allocation54_spill] sm:$0xff] }
 0x2db   : > { %v1479_v58 = vadd.f32 -1.4531521, %v1415_v41  ;;  %v1798_v19 = vmul.f32 %v6149_v20, %v1734_v5  ;;  %v1669_v31 = vmul.f32 %v6183_v44, %v1605_v50  ;;  %v6228_v13 = vmul.f32 0.70710677, %v6215_v59 }
 0x2dc   : > { %v1290_v48 = vadd.f32 1.0, %v1226_v28  ;;  %v6231_v32 = vmul.f32 %v2432_v26, %v5989_v21  ;;  %v2055_v11 = vmul.f32 %v1991_v34, %v6132_v36  ;;  %v6237_v6 = vadd.f32 %v6790_v17, %v4345_v3 }
 0x2dd   : > { %v1543_v42 = vmul.f32 %v6210_v35, %v1479_v58  ;;  %v2434_v7 = vadd.f32 1.0, %v2370_v27  ;;  %v1733_v12 = vadd.f32 -0.28449672, %v1669_v31  ;;  %vm1031_vm7 = vcmp.ge.f32.partialorder %v6123_v37, 0.0 }
 0x2de   : > { %6791 = vst [vmem:[#allocation13_spill] sm:$0xff] %v6237_v6  ;;  %3854 = vrcp.f32 %v1290_v48  ;;  %v2369_v5 = vmul.f32 %v2305_v9, %v6077_v40  ;;  %v2243_v49 = vmul.f32 %v3847_v30, %v1923_v8  ;;  %v6242_v41 = vmul.f32 0.5, %v6100_v46 }
 0x2df   : > { %v1607_v21 = vadd.f32 1.4214138, %v1543_v42  ;;  %v1924_v26 = vmul.f32 %v6119_v62, %v1860_v22  ;;  %v1862_v50 = vadd.f32 0.2548296, %v1798_v19  ;;  %3856 = vpow2.f32 %v2170_v51 }
 0x2e0   : > { %v6246_v36 = vand.u32 2147483647, %v6228_v13  ;;  %v1797_v34 = vmul.f32 %v6183_v44, %v1733_v12  ;;  %v6250_v27 = vsel %vm1031_vm7, 1.0, %v6688_v45  ;;  %v2174_v37 = vmul.f32 1.442695, %v2055_v11 }
 0x2e1   : > { %v6253_v40 = vmul.f32 0.70710677, %v6237_v6  ;;  %v6258_v46 = vmul.f32 %v2434_v7, %v6013_v57  ;;  %v1671_v62 = vmul.f32 %v6210_v35, %v1607_v21  ;;  %v1992_v51 = vsub.f32 0.0, %v6189_v39  ;;  %v6792_v57 = vld [vmem:[#allocation18_spill] sm:$0xff] }
 0x2e2   : > { %v6255_v30 = vpop.eup %3850  ;;  %v1225_v28 = vmul.f32 0.3275911, %v6246_v36  ;;  %v2433_v8 = vadd.f32 1.0, %v2369_v5  ;;  %v2307_v22 = vsub.f32 1.0, %v2243_v49  ;;  %v6264_v58 = vmul.f32 0.5, %v6160_v16 }
 0x2e3   : > { %v3853_v9 = vpop.eup %3852  ;;  %v1416_v19 = vmul.f32 1.0614054, %v6255_v30  ;;  %v2244_v31 = vmul.f32 %v3849_v52, %v1924_v26  ;;  %v1926_v48 = vmul.f32 %v6149_v20, %v1862_v50  ;;  %v6270_v11 = vadd.f32 %v6792_v57, %v4339_v0 }
 0x2e4   : > { %v1289_v42 = vadd.f32 1.0, %v1225_v28  ;;  %v1861_v17 = vadd.f32 0.2548296, %v1797_v34  ;;  %3858 = vpow2.f32 %v2174_v37  ;;  %v6273_v12 = vand.u32 2147483647, %v6253_v40 }
 0x2e5   : > { %v1480_v7 = vadd.f32 -1.4531521, %v1416_v19  ;;  %v1735_v5 = vadd.f32 -0.28449672, %v1671_v62  ;;  %vm1032_vm8 = vcmp.ge.f32.partialorder %v6178_v18, 0.0  ;;  %v2056_v16 = vmul.f32 %v1992_v51, %v6189_v39 }
 0x2e6   : > { %3860 = vrcp.f32 %v1289_v42  ;;  %v6278_v52 = vmul.f32 %v2433_v8, %v6054_v29  ;;  %v1994_v0 = vsub.f32 0.0, %v6208_v60  ;;  %v1227_v49 = vmul.f32 0.3275911, %v6273_v12 }
 0x2e7   : > { %v1544_v20 = vmul.f32 %v6255_v30, %v1480_v7  ;;  %v2371_v26 = vmul.f32 %v2307_v22, %v6106_v47  ;;  %v2308_v50 = vsub.f32 1.0, %v2244_v31  ;;  %v2246_v34 = vmul.f32 %v3853_v9, %v1926_v48 }
 0x2e8   : > { %v6283_v21 = vpop.eup %3854  ;;  %v6287_v37 = vmul.f32 0.70710677, %v6270_v11  ;;  %v1925_v39 = vmul.f32 %v6183_v44, %v1861_v17  ;;  %v1291_v51 = vadd.f32 1.0, %v1227_v49  ;;  %v1799_v8 = vmul.f32 %v6210_v35, %v1735_v5  ;;  %v6793_v49 = vld [vmem:[#allocation56_spill] sm:$0xff] }
 0x2e9   : > { %v1608_v62 = vadd.f32 1.4214138, %v1544_v20  ;;  %v1418_v29 = vmul.f32 1.0614054, %v6283_v21  ;;  %v3857_v28 = vpop.eup %3856  ;;  %v6295_v19 = vsel %vm1032_vm8, 1.0, %v6688_v45  ;;  %v2058_v44 = vmul.f32 %v1994_v0, %v6208_v60 }
 0x2ea   : > { %v2176_v47 = vmul.f32 1.442695, %v2056_v16  ;;  %v6298_v9 = vand.u32 2147483647, %v6287_v37  ;;  %3862 = vrcp.f32 %v1291_v51  ;;  %v2372_v48 = vmul.f32 %v2308_v50, %v6137_v15 }
 0x2eb   : > { %v1672_v22 = vmul.f32 %v6255_v30, %v1608_v62  ;;  %v1482_v31 = vadd.f32 -1.4531521, %v1418_v29  ;;  %v2310_v42 = vsub.f32 1.0, %v2246_v34  ;;  %vm1034_vm9 = vcmp.ge.f32.partialorder %v6193_v23, 0.0 }
 0x2ec   : > { %v1228_v57 = vmul.f32 0.3275911, %v6298_v9  ;;  %v2435_v18 = vadd.f32 1.0, %v2371_v26  ;;  %v2245_v17 = vmul.f32 %v3857_v28, %v1925_v39  ;;  %v1863_v16 = vadd.f32 0.2548296, %v1799_v8 }
 0x2ed   : > { %v1736_v7 = vadd.f32 -0.28449672, %v1672_v22  ;;  %v1546_v5 = vmul.f32 %v6283_v21, %v1482_v31  ;;  %3864 = vpow2.f32 %v2176_v47  ;;  %v6308_v62 = vadd.f32 %v6793_v49, %v4341_v1  ;;  %v6794_v47 = vld [vmem:[#allocation38_spill] sm:$0xff] }
 0x2ee   : > { %v1292_v20 = vadd.f32 1.0, %v1228_v57  ;;  %v3859_v60 = vpop.eup %3858  ;;  %v2180_v50 = vmul.f32 1.442695, %v2058_v44  ;;  %v1993_v34 = vsub.f32 0.0, %v6246_v36  ;;  %v2436_v26 = vadd.f32 1.0, %v2372_v48 }
 0x2ef   : > { %v1800_v15 = vmul.f32 %v6255_v30, %v1736_v7  ;;  %v1610_v0 = vadd.f32 1.4214138, %v1546_v5  ;;  %v2374_v39 = vmul.f32 %v2310_v42, %v6196_v33  ;;  %v6316_v51 = vmul.f32 0.70710677, %v6308_v62 }
 0x2f0   : > { %v6312_v29 = vpop.eup %3860  ;;  %3866 = vrcp.f32 %v1292_v20  ;;  %v2309_v28 = vsub.f32 1.0, %v2245_v17  ;;  %v6322_v22 = vadd.f32 %v6794_v47, %v4343_v2  ;;  %v6325_v31 = vmul.f32 %v2435_v18, %v6080_v43 }
 0x2f1   : > { %v1674_v1 = vmul.f32 %v6283_v21, %v1610_v0  ;;  %v1417_v8 = vmul.f32 1.0614054, %v6312_v29  ;;  %v1927_v44 = vmul.f32 %v6210_v35, %v1863_v16  ;;  %v6331_v33 = vsel %vm1034_vm9, 1.0, %v6688_v45 }
 0x2f2   : > { %6795 = vst [vmem:[#allocation20_spill] sm:$0xff] %v6322_v22  ;;  %v1166_v48 = vand.u32 2147483647, %v6316_v51  ;;  %v1864_v42 = vadd.f32 0.2548296, %v1800_v15  ;;  %3868 = vpow2.f32 %v2180_v50  ;;  %v2057_v17 = vmul.f32 %v1993_v34, %v6246_v36 }
 0x2f3   : > { %v1481_v57 = vadd.f32 -1.4531521, %v1417_v8  ;;  %v6336_v2 = vmul.f32 %v2436_v26, %v6111_v24  ;;  %v2438_v7 = vadd.f32 1.0, %v2374_v39  ;;  %v1738_v43 = vadd.f32 -0.28449672, %v1674_v1  ;;  %v6796_v26 = vld [vmem:[#allocation58_spill] sm:$0xff] }
 0x2f4   : > { %v1230_v18 = vmul.f32 0.3275911, %v1166_v48  ;;  %v6338_v5 = vpop.eup %3862  ;;  %v2373_v35 = vmul.f32 %v2309_v28, %v6218_v55  ;;  %v1995_v16 = vsub.f32 0.0, %v6273_v12  ;;  %v6344_v20 = vmul.f32 0.70710677, %v6322_v22 }
 0x2f5   : > { %v1545_v23 = vmul.f32 %v6312_v29, %v1481_v57  ;;  %v2247_v49 = vmul.f32 %v3859_v60, %v1927_v44  ;;  %v1419_v36 = vmul.f32 1.0614054, %v6338_v5  ;;  %v1996_v24 = vsub.f32 0.0, %v6298_v9 }
 0x2f6   : > { %v1294_v15 = vadd.f32 1.0, %v1230_v18  ;;  %v1928_v0 = vmul.f32 %v6255_v30, %v1864_v42  ;;  %v2178_v34 = vmul.f32 1.442695, %v2057_v17  ;;  %v6351_v55 = vadd.f32 %v6796_v26, %v4345_v3 }
 0x2f7   : > { %v1609_v50 = vadd.f32 1.4214138, %v1545_v23  ;;  %v3865_v39 = vpop.eup %3864  ;;  %v1802_v28 = vmul.f32 %v6283_v21, %v1738_v43  ;;  %v6355_v1 = vmul.f32 0.5, %v6270_v11  ;;  %v1998_v60 = vsub.f32 0.0, %v1166_v48 }
 0x2f8   : > { %6797 = vst [vmem:[#allocation14_spill] sm:$0xff] %v6351_v55  ;;  %3870 = vrcp.f32 %v1294_v15  ;;  %v6358_v8 = vmul.f32 %v2438_v7, %v6141_v56  ;;  %v1483_v47 = vadd.f32 -1.4531521, %v1419_v36  ;;  %v2059_v30 = vmul.f32 %v1995_v16, %v6273_v12 }
 0x2f9   : > { %v1165_v44 = vand.u32 2147483647, %v6344_v20  ;;  %v2437_v3 = vadd.f32 1.0, %v2373_v35  ;;  %v2311_v57 = vsub.f32 1.0, %v2247_v49  ;;  %vm1036_vm10 = vcmp.ge.f32.partialorder %v6287_v37, 0.0 }
 0x2fa   : > { %v6362_v42 = vpop.eup %3866  ;;  %v2060_v17 = vmul.f32 %v1996_v24, %v6298_v9  ;;  %v2248_v11 = vmul.f32 %v3865_v39, %v1928_v0  ;;  %v1673_v43 = vmul.f32 %v6312_v29, %v1609_v50  ;;  %v6369_v56 = vmul.f32 0.70710677, %v6351_v55 }
 0x2fb   : > { %v1420_v18 = vmul.f32 1.0614054, %v6362_v42  ;;  %v1866_v7 = vadd.f32 0.2548296, %v1802_v28  ;;  %3872 = vpow2.f32 %v2178_v34  ;;  %v2062_v12 = vmul.f32 %v1998_v60, %v1166_v48  ;;  %v6799_v60 = vld [vmem:[#allocation21_spill] sm:$0xff] }
 0x2fc   : > { %6798 = vst [vmem:[#allocation15_spill] sm:$0xff] %v6369_v56  ;;  %v1229_v23 = vmul.f32 0.3275911, %v1165_v44  ;;  %v3869_v16 = vpop.eup %3868  ;;  %v1547_v35 = vmul.f32 %v6338_v5, %v1483_v47  ;;  %v2182_v49 = vmul.f32 1.442695, %v2059_v30  ;;  %v6373_v37 = vsel %vm1036_vm10, 1.0, %v6688_v45 }
 0x2fd   : > { %v1484_v9 = vadd.f32 -1.4531521, %v1420_v18  ;;  %v6376_v36 = vmul.f32 %v2437_v3, %v6199_v25  ;;  %v2375_v24 = vmul.f32 %v2311_v57, %v6250_v27  ;;  %v2184_v15 = vmul.f32 1.442695, %v2060_v17  ;;  %v6800_v47 = vld [vmem:[#allocation23_spill] sm:$0xff]  ;;  %v6802_v18 = vld [vmem:[#allocation40_spill] sm:$0xff] }
 0x2fe   : > { %v1293_v0 = vadd.f32 1.0, %v1229_v23  ;;  %v2312_v50 = vsub.f32 1.0, %v2248_v11  ;;  %v1737_v26 = vadd.f32 -0.28449672, %v1673_v43  ;;  %v6381_v34 = vand.u32 2147483647, %v6369_v56 }
 0x2ff   : > { %v1548_v48 = vmul.f32 %v6362_v42, %v1484_v9  ;;  %v1930_v39 = vmul.f32 %v6283_v21, %v1866_v7  ;;  %v2188_v28 = vmul.f32 1.442695, %v2062_v12  ;;  %v2533_v30 = vpack.c.bf16 %v6800_v47, %v6799_v60  ;;  %v6801_v43 = vld [vmem:[#allocation35_spill] sm:$0xff] }
 0x300   : > { %3874 = vrcp.f32 %v1293_v0  ;;  %v1611_v25 = vadd.f32 1.4214138, %v1547_v35  ;;  %v1231_v27 = vmul.f32 0.3275911, %v6381_v34  ;;  %v2439_v17 = vadd.f32 1.0, %v2375_v24  ;;  %v6803_v24 = vld [vmem:[#allocation34_spill] sm:$0xff] }
 0x301   : > { %3876 = vpow2.f32 %v2182_v49  ;;  %v1612_v3 = vadd.f32 1.4214138, %v1548_v48  ;;  %v1997_v11 = vsub.f32 0.0, %v1165_v44  ;;  %2856 = vmatprep.mubr.bf16.mxu0 %v2533_v30  ;;  %v2535_v23 = vpack.c.bf16 %v6802_v18, %v6801_v43  ;;  %v6805_v30 = vld [vmem:[#allocation17_spill] sm:$0xff] }
 0x302   : > { %v6387_v57 = vpop.eup %3870  ;;  %3878 = vpow2.f32 %v2184_v15  ;;  %v2376_v21 = vmul.f32 %v2312_v50, %v6295_v19  ;;  %v1801_v7 = vmul.f32 %v6312_v29, %v1737_v26  ;;  %v6395_v49 = vmul.f32 %v3869_v16, %v1930_v39  ;;  %v6804_v15 = vld [vmem:[#allocation36_spill] sm:$0xff]  ;;  %v6806_v19 = vld [vmem:[#allocation37_spill] sm:$0xff]  ;;  %v6807_v39 = vld [vmem:[#allocation27_spill] sm:$0xff] }
 0x303   : > { %v1676_v12 = vmul.f32 %v6362_v42, %v1612_v3  ;;  %v1422_v35 = vmul.f32 1.0614054, %v6387_v57  ;;  %3880 = vpow2.f32 %v2188_v28  ;;  %v1295_v9 = vadd.f32 1.0, %v1231_v27  ;;  %2953 = vmatprep.mubr.bf16.mxu1 %v2535_v23  ;;  %v6808_v28 = vld [vmem:[#allocation47_spill] sm:$0xff]  ;;  %v6809_v23 = vld [vmem:[#allocation44_spill] sm:$0xff] }
 0x304   : > { %v2532_v0 = vpack.c.bf16 %v6804_v15, %v6803_v24  ;;  %v1675_v48 = vmul.f32 %v6338_v5, %v1611_v25  ;;  %v2534_v50 = vpack.c.bf16 %v6806_v19, %v6805_v30  ;;  %v6405_v3 = vmul.f32 %v2439_v17, %v6242_v41  ;;  %v6811_v41 = vld [vmem:[#allocation25_spill] sm:$0xff] }
 0x305   : > { %v1740_v60 = vadd.f32 -0.28449672, %v1676_v12  ;;  %v1486_v47 = vadd.f32 -1.4531521, %v1422_v35  ;;  %v6402_v26 = vpop.eup %3872  ;;  %v2061_v16 = vmul.f32 %v1997_v11, %v1165_v44  ;;  %3882 = vrcp.f32 %v1295_v9  ;;  %v6810_v12 = vld [vmem:[#allocation48_spill] sm:$0xff]  ;;  %v6812_v44 = vld [vmem:[#allocation45_spill] sm:$0xff] }
 0x306   : > { %2857 = vmatmul.mubr.bf16.gmra.mrb[36].mxu0 %v2532_v0  ;;  %v2537_v27 = vpack.c.bf16 %v6808_v28, %v6807_v39  ;;  %v1865_v43 = vadd.f32 0.2548296, %v1801_v7  ;;  %2954 = vmatmul.mubr.bf16.gmra.mrb[36].mxu1 %v2534_v50  ;;  %v2539_v35 = vpack.c.bf16 %v6810_v12, %v6809_v23  ;;  %v2440_v24 = vadd.f32 1.0, %v2376_v21  ;;  %v6813_v11 = vld [vmem:[#allocation26_spill] sm:$0xff]  ;;  %v6817_v21 = vld [vmem:[#allocation51_spill] sm:$0xff]  ;;  %v6820_v12 = vld [vmem:[#allocation16_spill] sm:$0xff] }
 0x307   : > { %v1804_v18 = vmul.f32 %v6362_v42, %v1740_v60  ;;  %v1550_v25 = vmul.f32 %v6387_v57, %v1486_v47  ;;  %v2314_v15 = vsub.f32 1.0, %v6395_v49  ;;  %v2536_v17 = vpack.c.bf16 %v6812_v44, %v6811_v41  ;;  %v6814_v9 = vld [vmem:[#allocation46_spill] sm:$0xff]  ;;  %v6815_v60 = vld [vmem:[#allocation33_spill] sm:$0xff]  ;;  %v6816_v47 = vld [vmem:[#allocation55_spill] sm:$0xff] }
 0x308   : > { %2864 = vmatprep.mubr.bf16.mxu0 %v2537_v27  ;;  %v2538_v0 = vpack.c.bf16 %v6814_v9, %v6813_v11  ;;  %v1739_v30 = vadd.f32 -0.28449672, %v1675_v48  ;;  %2961 = vmatprep.mubr.bf16.mxu1 %v2539_v35  ;;  %v2541_v50 = vpack.c.bf16 %v6816_v47, %v6815_v60  ;;  %v2186_v28 = vmul.f32 1.442695, %v2061_v16  ;;  %v6818_v23 = vld [vmem:[#allocation19_spill] sm:$0xff]  ;;  %v6819_v27 = vld [vmem:[#allocation49_spill] sm:$0xff] }
 0x309   : > { %v1868_v7 = vadd.f32 0.2548296, %v1804_v18  ;;  %v1614_v19 = vadd.f32 1.4214138, %v1550_v25  ;;  %v2543_v49 = vpack.c.bf16 %v6818_v23, %v6817_v21  ;;  %v2540_v55 = vpack.c.bf16 %v6820_v12, %v6819_v27  ;;  %v6821_v41 = vld [vmem:[#allocation50_spill] sm:$0xff]  ;;  %v6822_v44 = vld [vmem:[#allocation53_spill] sm:$0xff] }
 0x30a   : > { %v6420_v39 = vpop.eup %3874  ;;  %v2542_v6 = vpack.c.bf16 %v6822_v44, %v6821_v41  ;;  %v1929_v48 = vmul.f32 %v6312_v29, %v1865_v43  ;;  %v1999_v9 = vsub.f32 0.0, %v6381_v34  ;;  %v6823_v60 = vld [vmem:[#allocation39_spill] sm:$0xff]  ;;  %v6824_v21 = vld [vmem:[#allocation24_spill] sm:$0xff]  ;;  %v6825_v27 = vld [vmem:[#allocation57_spill] sm:$0xff]  ;;  %v1803_v56 = vmul.f32 %v6338_v5, %v1739_v30 }
 0x30b   : > { %v6428_v11 = vpop.eup %3876  ;;  %v1932_v18 = vmul.f32 %v6362_v42, %v1868_v7  ;;  %v1678_v25 = vmul.f32 %v6387_v57, %v1614_v19  ;;  %v1421_v35 = vmul.f32 1.0614054, %v6420_v39  ;;  %v2545_v47 = vpack.c.bf16 %v5885_v53, %v6823_v60  ;;  %v6826_v12 = vld [vmem:[#allocation41_spill] sm:$0xff]  ;;  %v6827_v42 = vld [vmem:[#allocation22_spill] sm:$0xff] }
 0x30c   : > { %v3879_v16 = vpop.eup %3878  ;;  %v2547_v23 = vpack.c.bf16 %v5910_v38, %v6824_v21  ;;  %v2544_v41 = vpack.c.bf16 %v6826_v12, %v6825_v27  ;;  %v2546_v7 = vpack.c.bf16 %v5868_v4, %v6827_v42  ;;  %v6828_v38 = vld [vmem:[#allocation42_spill] sm:$0xff]  ;;  %v2063_v22 = vmul.f32 %v1999_v9, %v6381_v34  ;;  %v6834_v42 = vld [vmem:[#allocation20_spill] sm:$0xff] }
 0x30d   : > { %v2252_v44 = vmul.f32 %v3879_v16, %v1932_v18  ;;  %v1742_v29 = vadd.f32 -0.28449672, %v1678_v25  ;;  %v1485_v43 = vadd.f32 -1.4531521, %v1421_v35  ;;  %v3881_v19 = vpop.eup %3880  ;;  %v6829_v35 = vld [vmem:[#allocation43_spill] sm:$0xff]  ;;  %vm1038_vm11 = vcmp.ge.f32.partialorder %v6316_v51, 0.0 }
 0x30e   : > { %2865 = vmatmul.mubr.bf16.gmra.mrb[40].mxu0 %v2536_v17  ;;  %2962 = vmatmul.mubr.bf16.gmra.mrb[40].mxu1 %v2538_v0  ;;  %v6830_v16 = vld [vmem:[#allocation59_spill] sm:$0xff]  ;;  %v1867_v60 = vadd.f32 0.2548296, %v1803_v56  ;;  %3884 = vpow2.f32 %v2186_v28  ;;  %v2554_v34 = vpack.c.bf16 %v6358_v8, %v6258_v46  ;;  %v2190_v56 = vmul.f32 1.442695, %v2063_v22 }
 0x30f   : > { %v2316_v21 = vsub.f32 1.0, %v2252_v44  ;;  %v1806_v18 = vmul.f32 %v6387_v57, %v1742_v29  ;;  %v1549_v25 = vmul.f32 %v6420_v39, %v1485_v43  ;;  %2872 = vmatprep.mubr.bf16.mxu0 %v2541_v50  ;;  %v6454_v17 = vpop.eup %3882  ;;  %2969 = vmatprep.mubr.bf16.mxu1 %v2543_v49  ;;  %v6471_v29 = vmul.f32 %v2440_v24, %v6264_v58  ;;  %v6544_v46 = vld [vmem:[%s6640_s4] ss:$0 sm:$0xff] }
 0x310   : > { %v1423_v30 = vmul.f32 1.0614054, %v6454_v17  ;;  %vm1033_vm12 = vcmp.ge.f32.partialorder %v6228_v13, 0.0  ;;  %3886 = vpow2.f32 %v2190_v56  ;;  %vm1037_vm13 = vcmp.ge.f32.partialorder %v6344_v20, 0.0 }
 0x311   : > { %v2380_v0 = vmul.f32 %v2316_v21, %v6373_v37  ;;  %v1870_v50 = vadd.f32 0.2548296, %v1806_v18  ;;  %v1613_v43 = vadd.f32 1.4214138, %v1549_v25  ;;  %v2378_v37 = vmul.f32 %v2314_v15, %v6331_v33  ;;  %v6831_v15 = vld [vmem:[#allocation32_spill] sm:$0xff] }
 0x312   : > { %v1487_v53 = vadd.f32 -1.4531521, %v1423_v30  ;;  %v2249_v21 = vmul.f32 %v6402_v26, %v1929_v48  ;;  %v910_v48 = vmul.f32 0.5, %v6308_v62  ;;  %vm1035_vm14 = vcmp.ge.f32.partialorder %v6253_v40, 0.0 }
 0x313   : > { %v2444_v49 = vadd.f32 1.0, %v2380_v0  ;;  %v1934_v9 = vmul.f32 %v6387_v57, %v1870_v50  ;;  %v1677_v44 = vmul.f32 %v6420_v39, %v1613_v43  ;;  %v1931_v57 = vmul.f32 %v6338_v5, %v1867_v60 }
 0x314   : > { %v1551_v0 = vmul.f32 %v6454_v17, %v1487_v53  ;;  %v2442_v22 = vadd.f32 1.0, %v2378_v37  ;;  %v2313_v5 = vsub.f32 1.0, %v2249_v21  ;;  %v6832_v13 = vpack.c.bf16 %v6145_v61, %v6021_v54 }
 0x315   : > { %v6476_v18 = vmul.f32 %v2444_v49, %v6355_v1  ;;  %v2254_v28 = vmul.f32 %v3881_v19, %v1934_v9  ;;  %v1741_v25 = vadd.f32 -0.28449672, %v1677_v44  ;;  %v1102_v1 = vsel %vm1038_vm11, 1.0, %v6688_v45 }
 0x316   : > { %2873 = vmatmul.mubr.bf16.gmra.mrb[44].mxu0 %v2540_v55  ;;  %v1615_v58 = vadd.f32 1.4214138, %v1551_v0  ;;  %2970 = vmatmul.mubr.bf16.gmra.mrb[44].mxu1 %v2542_v6  ;;  %v906_v6 = vmul.f32 0.5, %v6831_v15  ;;  %v1101_v21 = vsel %vm1037_vm13, 1.0, %v6688_v45  ;;  %v6833_v40 = vpack.c.bf16 %v6174_v14, %v6051_v10 }
 0x317   : > { %v2318_v50 = vsub.f32 1.0, %v2254_v28  ;;  %v1805_v30 = vmul.f32 %v6420_v39, %v1741_v25  ;;  %2880 = vmatprep.mubr.bf16.mxu0 %v2545_v47  ;;  %v2556_v33 = vpack.c.bf16 %v6476_v18, %v6471_v29  ;;  %2977 = vmatprep.mubr.bf16.mxu1 %v2547_v23  ;;  %v2251_v47 = vmul.f32 %v6428_v11, %v1931_v57  ;;  %v6835_v25 = vld [vmem:[#allocation15_spill] sm:$0xff] }
 0x318   : > { %v1679_v24 = vmul.f32 %v6454_v17, %v1615_v58  ;;  %v3885_v44 = vpop.eup %3884  ;;  %v2506_v51 = vmul.f32 %v2442_v22, %v906_v6  ;;  %v1097_v23 = vsel %vm1033_vm12, 1.0, %v6688_v45  ;;  %v905_v28 = vmul.f32 0.5, %v6215_v59 }
 0x319   : > { %v2382_v55 = vmul.f32 %v2318_v50, %v1102_v1  ;;  %v1869_v26 = vadd.f32 0.2548296, %v1805_v30  ;;  %v2377_v43 = vmul.f32 %v2313_v5, %v1097_v23  ;;  %v2315_v62 = vsub.f32 1.0, %v2251_v47 }
 0x31a   : > { %v1743_v60 = vadd.f32 -0.28449672, %v1679_v24  ;;  %v3887_v56 = vpop.eup %3886  ;;  %v1099_v4 = vsel %vm1035_vm14, 1.0, %v6688_v45  ;;  %vm1039_vm15 = vcmp.ge.f32.partialorder %v6835_v25, 0.0  ;;  %v6837_v58 = vpack.c.bf16 %v6830_v16, %v6829_v35 }
 0x31b   : > { %v2446_v19 = vadd.f32 1.0, %v2382_v55  ;;  %v1933_v53 = vmul.f32 %v6420_v39, %v1869_v26  ;;  %v2441_v27 = vadd.f32 1.0, %v2377_v43  ;;  %v2379_v54 = vmul.f32 %v2315_v62, %v1099_v4  ;;  %v6841_v26 = vld [vmem:[#allocation14_spill] sm:$0xff] }
 0x31c   : > { %v1807_v37 = vmul.f32 %v6454_v17, %v1743_v60  ;;  %v1103_v14 = vsel %vm1039_vm15, 1.0, %v6688_v45  ;;  %v6838_v22 = vpack.c.bf16 %v6376_v36, %v6278_v52  ;;  %v6839_v5 = vpack.c.bf16 %v6405_v3, %v6325_v31  ;;  %v6840_v45 = vld [vmem:[#allocation13_spill] sm:$0xff] }
 0x31d   : > { %v2510_v49 = vmul.f32 %v2446_v19, %v910_v48  ;;  %v2253_v9 = vmul.f32 %v3885_v44, %v1933_v53  ;;  %v2505_v57 = vmul.f32 %v2441_v27, %v905_v28  ;;  %v2443_v30 = vadd.f32 1.0, %v2379_v54 }
 0x31e   : > { %2881 = vmatmul.mubr.bf16.gmra.mrb[48].mxu0 %v2544_v41  ;;  %v1871_v11 = vadd.f32 0.2548296, %v1807_v37  ;;  %2978 = vmatmul.mubr.bf16.gmra.mrb[48].mxu1 %v2546_v7  ;;  %v909_v7 = vmul.f32 0.5, %v6834_v42  ;;  %v907_v55 = vmul.f32 0.5, %v6840_v45  ;;  %v6842_v35 = vpack.c.bf16 %v6336_v2, %v6231_v32 }
 0x31f   : > { %v2317_v39 = vsub.f32 1.0, %v2253_v9  ;;  %2888 = vmatprep.mubr.bf16.mxu0 %v6832_v13  ;;  %v2558_v20 = vpack.c.bf16 %v2510_v49, %v2506_v51  ;;  %2985 = vmatprep.mubr.bf16.mxu1 %v6833_v40 }
 0x320   : > { %v1935_v41 = vmul.f32 %v6454_v17, %v1871_v11  ;;  %v6836_v17 = vpack.c.bf16 %v6091_v63, %v6828_v38  ;;  %v911_v63 = vmul.f32 0.5, %v6841_v26  ;;  %v2507_v24 = vmul.f32 %v2443_v30, %v907_v55 }
 0x321   : > { %v2381_v12 = vmul.f32 %v2317_v39, %v1101_v21 }
 0x322   : > { %v2255_v0 = vmul.f32 %v3887_v56, %v1935_v41 }
 0x323   : > { %v2445_v61 = vadd.f32 1.0, %v2381_v12 }
 0x324   : > { %v2319_v10 = vsub.f32 1.0, %v2255_v0 }
 0x325   : > { %v2509_v50 = vmul.f32 %v2445_v61, %v909_v7 }
 0x326   : > { %2889 = vmatmul.mubr.bf16.gmra.mrb[52].mxu0 %v6836_v17  ;;  %v2383_v59 = vmul.f32 %v2319_v10, %v1103_v14  ;;  %2986 = vmatmul.mubr.bf16.gmra.mrb[52].mxu1 %v6837_v58 }
 0x327   : > { %2896 = vmatprep.mubr.bf16.mxu0 %v6838_v22  ;;  %v2557_v1 = vpack.c.bf16 %v2509_v50, %v2505_v57  ;;  %2993 = vmatprep.mubr.bf16.mxu1 %v6839_v5 }
 0x328   : > { %v2447_v38 = vadd.f32 1.0, %v2383_v59 }
 0x32a   : > { %v2511_v15 = vmul.f32 %v2447_v38, %v911_v63 }
 0x32c   : > { %v2559_v6 = vpack.c.bf16 %v2511_v15, %v2507_v24 }
 0x32e   : > { %2897 = vmatmul.mubr.bf16.gmra.mrb[56].mxu0 %v6842_v35  ;;  %2994 = vmatmul.mubr.bf16.gmra.mrb[56].mxu1 %v2554_v34 }
 0x32f   : > { %2904 = vmatprep.mubr.bf16.mxu0 %v2557_v1  ;;  %3001 = vmatprep.mubr.bf16.mxu1 %v2559_v6 }
 0x336   : > { %2905 = vmatmul.mubr.bf16.gmra.mrb[60].mxu0 %v2556_v33  ;;  %3002 = vmatmul.mubr.bf16.gmra.mrb[60].mxu1 %v2558_v20 }
 0x3a3   : > { %v3341_v52 = vpop.f32.mrb[32].mxu0 }
 0x3a4   : > { %v3405_v31 = vpop.f32.mrb[32].mxu1  ;;  %v3342_v36 = vpop.f32.mrb[33].mxu0 }
 0x3a5   : > { %v3406_v3 = vpop.f32.mrb[33].mxu1  ;;  %v3343_v16 = vadd.f32 %v3342_v36, %v3341_v52  ;;  %v3344_v32 = vpop.f32.mrb[34].mxu0 }
 0x3a6   : > { %v3407_v48 = vadd.f32 %v3406_v3, %v3405_v31  ;;  %v3408_v2 = vpop.f32.mrb[34].mxu1  ;;  %v3345_v8 = vpop.f32.mrb[35].mxu0 }
 0x3a7   : > { %v3409_v34 = vpop.f32.mrb[35].mxu1  ;;  %v3346_v29 = vadd.f32 %v3345_v8, %v3344_v32 }
 0x3a8   : > { %v2948_v47 = vadd.f32 %v3407_v48, %v3343_v16  ;;  %v3410_v18 = vadd.f32 %v3409_v34, %v3408_v2 }
 0x3aa   : > { %v3068_v33 = vadd.f32 %v6544_v46, %v2948_v47  ;;  %v2951_v19 = vadd.f32 %v3410_v18, %v3346_v29 }
 0x3ac   : > { %3084 = vst [vmem:[%s6547_s9] sm:$0xff] %v3068_v33  ;;  %v3069_v53 = vadd.f32 %v6544_v46, %v2951_v19 }
 0x3ae   : > { %3085 = vst [vmem:[%s6547_s9 + $0x8] sm:$0xff] %v3069_v53 }
 0x3d9   : > { %v3347_v60 = vpop.f32.mrb[36].mxu0  ;;  %v3411_v44 = vpop.f32.mrb[36].mxu1 }
 0x3da   : > { %v3348_v51 = vpop.f32.mrb[37].mxu0  ;;  %v3412_v43 = vpop.f32.mrb[37].mxu1 }
 0x3db   : > { %v3349_v23 = vadd.f32 %v3348_v51, %v3347_v60  ;;  %v3350_v49 = vpop.f32.mrb[38].mxu0  ;;  %v3413_v9 = vadd.f32 %v3412_v43, %v3411_v44  ;;  %v3414_v37 = vpop.f32.mrb[38].mxu1 }
 0x3dc   : > { %v3351_v62 = vpop.f32.mrb[39].mxu0  ;;  %v3415_v11 = vpop.f32.mrb[39].mxu1 }
 0x3dd   : > { %v3352_v39 = vadd.f32 %v3351_v62, %v3350_v49  ;;  %v2956_v13 = vadd.f32 %v3413_v9, %v3349_v23  ;;  %v3416_v20 = vadd.f32 %v3415_v11, %v3414_v37 }
 0x3df   : > { %v3070_v21 = vadd.f32 %v6544_v46, %v2956_v13  ;;  %v2959_v40 = vadd.f32 %v3416_v20, %v3352_v39 }
 0x3e1   : > { %v3353_v27 = vpop.f32.mrb[40].mxu0  ;;  %3086 = vst [vmem:[%s6547_s9 + $0x10] sm:$0xff] %v3070_v21  ;;  %v3071_v12 = vadd.f32 %v6544_v46, %v2959_v40  ;;  %v3417_v41 = vpop.f32.mrb[40].mxu1 }
 0x3e2   : > { %v3354_v56 = vpop.f32.mrb[41].mxu0  ;;  %v3418_v4 = vpop.f32.mrb[41].mxu1 }
 0x3e3   : > { %v3355_v28 = vadd.f32 %v3354_v56, %v3353_v27  ;;  %v3356_v42 = vpop.f32.mrb[42].mxu0  ;;  %3087 = vst [vmem:[%s6547_s9 + $0x18] sm:$0xff] %v3071_v12  ;;  %v3419_v7 = vadd.f32 %v3418_v4, %v3417_v41  ;;  %v3420_v54 = vpop.f32.mrb[42].mxu1 }
 0x3e4   : > { %v3357_v61 = vpop.f32.mrb[43].mxu0  ;;  %v3421_v0 = vpop.f32.mrb[43].mxu1 }
 0x3e5   : > { %v3358_v25 = vadd.f32 %v3357_v61, %v3356_v42  ;;  %v2964_v57 = vadd.f32 %v3419_v7, %v3355_v28  ;;  %v3422_v50 = vadd.f32 %v3421_v0, %v3420_v54 }
 0x3e7   : > { %v3072_v10 = vadd.f32 %v6544_v46, %v2964_v57  ;;  %v2967_v14 = vadd.f32 %v3422_v50, %v3358_v25 }
 0x3e9   : > { %v3359_v17 = vpop.f32.mrb[44].mxu0  ;;  %3088 = vst [vmem:[%s6547_s9 + $0x20] sm:$0xff] %v3072_v10  ;;  %v3073_v30 = vadd.f32 %v6544_v46, %v2967_v14  ;;  %v3423_v59 = vpop.f32.mrb[44].mxu1 }
 0x3ea   : > { %v3360_v58 = vpop.f32.mrb[45].mxu0  ;;  %v3424_v1 = vpop.f32.mrb[45].mxu1 }
 0x3eb   : > { %v3361_v22 = vadd.f32 %v3360_v58, %v3359_v17  ;;  %v3362_v5 = vpop.f32.mrb[46].mxu0  ;;  %3089 = vst [vmem:[%s6547_s9 + $0x28] sm:$0xff] %v3073_v30  ;;  %v3425_v45 = vadd.f32 %v3424_v1, %v3423_v59  ;;  %v3426_v55 = vpop.f32.mrb[46].mxu1 }
 0x3ec   : > { %v3363_v26 = vpop.f32.mrb[47].mxu0  ;;  %v3427_v38 = vpop.f32.mrb[47].mxu1 }
 0x3ed   : > { %v3364_v63 = vadd.f32 %v3363_v26, %v3362_v5  ;;  %v2972_v24 = vadd.f32 %v3425_v45, %v3361_v22  ;;  %v3428_v15 = vadd.f32 %v3427_v38, %v3426_v55 }
 0x3ef   : > { %v3074_v6 = vadd.f32 %v6544_v46, %v2972_v24  ;;  %v2975_v35 = vadd.f32 %v3428_v15, %v3364_v63 }
 0x3f1   : > { %v3365_v52 = vpop.f32.mrb[48].mxu0  ;;  %3090 = vst [vmem:[%s6547_s9 + $0x30] sm:$0xff] %v3074_v6  ;;  %v3075_v31 = vadd.f32 %v6544_v46, %v2975_v35  ;;  %v3429_v36 = vpop.f32.mrb[48].mxu1 }
 0x3f2   : > { %v3366_v3 = vpop.f32.mrb[49].mxu0  ;;  %v3430_v48 = vpop.f32.mrb[49].mxu1 }
 0x3f3   : > { %v3367_v16 = vadd.f32 %v3366_v3, %v3365_v52  ;;  %v3368_v32 = vpop.f32.mrb[50].mxu0  ;;  %3091 = vst [vmem:[%s6547_s9 + $0x38] sm:$0xff] %v3075_v31  ;;  %v3431_v2 = vadd.f32 %v3430_v48, %v3429_v36  ;;  %v3432_v8 = vpop.f32.mrb[50].mxu1 }
 0x3f4   : > { %v3369_v34 = vpop.f32.mrb[51].mxu0  ;;  %v3433_v29 = vpop.f32.mrb[51].mxu1 }
 0x3f5   : > { %v3370_v47 = vadd.f32 %v3369_v34, %v3368_v32  ;;  %v2980_v18 = vadd.f32 %v3431_v2, %v3367_v16  ;;  %v3434_v33 = vadd.f32 %v3433_v29, %v3432_v8 }
 0x3f7   : > { %v3076_v19 = vadd.f32 %v6544_v46, %v2980_v18  ;;  %v2983_v53 = vadd.f32 %v3434_v33, %v3370_v47 }
 0x3f9   : > { %v3371_v60 = vpop.f32.mrb[52].mxu0  ;;  %3092 = vst [vmem:[%s6547_s9 + $0x40] sm:$0xff] %v3076_v19  ;;  %v3077_v44 = vadd.f32 %v6544_v46, %v2983_v53  ;;  %v3435_v51 = vpop.f32.mrb[52].mxu1 }
 0x3fa   : > { %v3372_v23 = vpop.f32.mrb[53].mxu0  ;;  %v3436_v49 = vpop.f32.mrb[53].mxu1 }
 0x3fb   : > { %v3373_v43 = vadd.f32 %v3372_v23, %v3371_v60  ;;  %v3374_v9 = vpop.f32.mrb[54].mxu0  ;;  %3093 = vst [vmem:[%s6547_s9 + $0x48] sm:$0xff] %v3077_v44  ;;  %v3437_v37 = vadd.f32 %v3436_v49, %v3435_v51  ;;  %v3438_v62 = vpop.f32.mrb[54].mxu1 }
 0x3fc   : > { %v3375_v39 = vpop.f32.mrb[55].mxu0  ;;  %v3439_v13 = vpop.f32.mrb[55].mxu1 }
 0x3fd   : > { %v3376_v11 = vadd.f32 %v3375_v39, %v3374_v9  ;;  %v2988_v20 = vadd.f32 %v3437_v37, %v3373_v43  ;;  %v3440_v21 = vadd.f32 %v3439_v13, %v3438_v62 }
 0x3ff   : > { %v3078_v40 = vadd.f32 %v6544_v46, %v2988_v20  ;;  %v2991_v27 = vadd.f32 %v3440_v21, %v3376_v11 }
 0x401   : > { %v3377_v12 = vpop.f32.mrb[56].mxu0  ;;  %3094 = vst [vmem:[%s6547_s9 + $0x50] sm:$0xff] %v3078_v40  ;;  %v3079_v41 = vadd.f32 %v6544_v46, %v2991_v27  ;;  %v3441_v56 = vpop.f32.mrb[56].mxu1 }
 0x402   : > { %v3378_v28 = vpop.f32.mrb[57].mxu0  ;;  %v3442_v42 = vpop.f32.mrb[57].mxu1 }
 0x403   : > { %v3379_v4 = vadd.f32 %v3378_v28, %v3377_v12  ;;  %v3380_v7 = vpop.f32.mrb[58].mxu0  ;;  %3095 = vst [vmem:[%s6547_s9 + $0x58] sm:$0xff] %v3079_v41  ;;  %v3443_v54 = vadd.f32 %v3442_v42, %v3441_v56  ;;  %v3444_v61 = vpop.f32.mrb[58].mxu1 }
 0x404   : > { %v3381_v25 = vpop.f32.mrb[59].mxu0  ;;  %v3445_v57 = vpop.f32.mrb[59].mxu1 }
 0x405   : > { %v3382_v0 = vadd.f32 %v3381_v25, %v3380_v7  ;;  %v2996_v50 = vadd.f32 %v3443_v54, %v3379_v4  ;;  %v3446_v10 = vadd.f32 %v3445_v57, %v3444_v61 }
 0x407   : > { %v3080_v14 = vadd.f32 %v6544_v46, %v2996_v50  ;;  %v2999_v17 = vadd.f32 %v3446_v10, %v3382_v0 }
 0x409   : > { %v3383_v30 = vpop.f32.mrb[60].mxu0  ;;  %3096 = vst [vmem:[%s6547_s9 + $0x60] sm:$0xff] %v3080_v14  ;;  %v3081_v59 = vadd.f32 %v6544_v46, %v2999_v17  ;;  %v3447_v58 = vpop.f32.mrb[60].mxu1 }
 0x40a   : > { %v3384_v22 = vpop.f32.mrb[61].mxu0  ;;  %v3448_v5 = vpop.f32.mrb[61].mxu1 }
 0x40b   : > { %v3385_v1 = vadd.f32 %v3384_v22, %v3383_v30  ;;  %v3386_v45 = vpop.f32.mrb[62].mxu0  ;;  %3097 = vst [vmem:[%s6547_s9 + $0x68] sm:$0xff] %v3081_v59  ;;  %v3449_v55 = vadd.f32 %v3448_v5, %v3447_v58  ;;  %v3450_v26 = vpop.f32.mrb[62].mxu1 }
 0x40c   : > { %v3387_v63 = vpop.f32.mrb[63].mxu0  ;;  %v3451_v24 = vpop.f32.mrb[63].mxu1 }
 0x40d   : > { %v3388_v38 = vadd.f32 %v3387_v63, %v3386_v45  ;;  %v3004_v15 = vadd.f32 %v3449_v55, %v3385_v1  ;;  %v3452_v6 = vadd.f32 %v3451_v24, %v3450_v26 }
 0x40f   : > { %v3082_v35 = vadd.f32 %v6544_v46, %v3004_v15  ;;  %v3007_v52 = vadd.f32 %v3452_v6, %v3388_v38 }
 0x411   : > { %3098 = vst [vmem:[%s6547_s9 + $0x70] sm:$0xff] %v3082_v35  ;;  %v3083_v31 = vadd.f32 %v6544_v46, %v3007_v52 }
 0x413   : > { %3099 = vst [vmem:[%s6547_s9 + $0x78] sm:$0xff] %v3083_v31 }
 0x414   : > { %3987 = shalt.err (!%p3984_p11)
}
 0x415   : > { %s3988_s28 = scalar_lea.hbm %s6582_s14, 2048  ;;  %s3992_s6 = scalar_lea.hbm %s6641_s5, 4096 }
 0x416   : > { %p3989_p0 = scmp.ne.s32.totalorder %s6582_s14, %s3988_s28  ;;  %p3993_p6 = scmp.lt.u32.totalorder %s6582_s14, %s6641_s5 }
 0x417   : > { %p3994_p7 = scmp.lt.u32.totalorder %s3992_s6, %s3988_s28  ;;  %p3996_p8 = scmp.lt.u32.totalorder %s3988_s28, %s6582_s14 }
 0x418   : > { %p3990_p4 = pnand %p3989_p0, %p6843_p12 }
 0x419   : > { %p3995_p2 = por %p3994_p7, %p3993_p6 }
 0x41a   : > { %p3991_p13 = pneg %p3990_p4 }
 0x41b   : > { %p3997_p1 = por %p3996_p8, %p3995_p2 }
 0x41d   : > { %p3998_p10 = pnand %p3997_p1, %p3991_p13 }
 0x41f   : > { %4001 = shalt.err (!%p3998_p10)
}
 0x420   : > { %s4072_s16 = smov 128   ;;  %s4073_s7 = smov 8  }
 0x421   : > { %3463 = dma.vmem_to_hbm [thread:$0]  (%p6843_p12), %s6584_s13, 2048, %s6582_s14, %s3101_s27, %s4072_s16, %s4072_s16, %s4073_s7  }
 0x422 PF: > { %s3129_s21 = sand.u32 1, %s4040_s18   ;;  %p6844_p3 = scmp.ne.s32.totalorder %s6667_s29, 0 }
 0x423   : > { %p6845_p5 = scmp.ge.s32.totalorder %s4060_s23, 2  ;;  %s3130_s15 = scalar_lea.sflag [#allocation5], %s3129_s21 }
 0x425   : > { %p3477_p9 = pnand %p6845_p5, %p6844_p3 }
 0x427   : > { %4035 = dma.done.wait (!%p3477_p9), %s3130_s15, 2048  }
 0x428   : > { %4037 = vsyncadd (!%p3477_p9), %s3130_s15, 4294965248  ;;  %s22_s23 = sadd.s32 1, %s4060_s23   ;;  %s6846_s18 = smov %s4044_s19 }
 0x429   : > { %p19_p11 = scmp.ge.s32.totalorder %s22_s23, 4   ;;  %s6847_s19 = smov %s4048_s20 }
 0x42a   : > { %s6848_s20 = smov %s4249_s17  ;;  %s6849_s21 = smov %s4056_s22 }
 0x42b   : > { %s6850_s22 = smov %s6852_s12  ;;  %21 = sbr.rel (!%p19_p11) target bundleno = 7 (0x7), region = 106 }
 0x432   :  { %3135 = vsyncpa [#allocation4], 1 }
 0x433   :  { %3137 = vsyncpa [#allocation4 + $0x1], 1 }
 0x434   :  { %3138 = vsyncpa [#allocation7], 1 }
 0x435   :  { %3139 = vsyncpa [#allocation5], 1 }
 0x436   :  { %3141 = vsyncpa [#allocation5 + $0x1], 1 }

</bundles_post_ra>
